<compile_context>
chip_gen: v7x
topology: tpu7x:2x2x1
jax: 0.10.0
libtpu: 0.0.40
codegen_flags: <defaults>
</compile_context>

<pallas_src>
import numpy as np
import jax
import jax.numpy as jnp
from jax import lax
from jax.experimental import pallas as pl
from jax.experimental.pallas import tpu as pltpu

FEATURE_DIM = 32   # self.feature_dim in the PyTorch module
GATE_PAD = 128     # each LSTM gate padded to a full 128-lane tile
SUBLANE = 8        # f32 sublane group


# ----------------------------- Pallas kernel -----------------------------
def make_lstm_kernel(T, B, L, GP):
    """Build the kernel for static (time steps, padded batch, layers, gate pad)."""

    def kernel(x_ref,      # (T*B, n_input)
               wenc_ref,   # (n_input, GP)
               benc_ref,   # (1, GP)
               wih_ref,    # (L, GP, 4*GP)   gate-tile-padded input weights
               whh_ref,    # (L, GP, 4*GP)   gate-tile-padded recurrent weights
               b_ref,      # (L, 1, 4*GP)    b_ih + b_hh, gate-tile-padded
               w1_ref,     # (GP, 64)
               b1_ref,     # (1, 64)
               w2_ref,     # (64, n_out)
               b2_ref,     # (1, n_out)
               out_ref,    # (B, n_out)
               seq_ref,    # scratch (T*B, GP)      per-layer sequence buffer
               xg_ref):    # scratch (T*B, 4*GP)    hoisted input-gate projections
        # --- encoder: Linear(n_input -> 32) + ReLU for ALL time steps at once ---
        seq_ref[...] = jnp.maximum(
            jnp.dot(x_ref[...], wenc_ref[...],
                    preferred_element_type=jnp.float32) + benc_ref[...],
            0.0)

        h = jnp.zeros((B, GP), jnp.float32)

        # --- stacked unidirectional LSTM (zero init state, gate order i,f,g,o) ---
        for layer in range(L):
            # Hoisted input projection for the whole sequence: one big matmul.
            # (seq_ref is fully consumed here, so in-place overwrite below is safe.)
            xg_ref[...] = (
                jnp.dot(seq_ref[...], wih_ref[layer],
                        preferred_element_type=jnp.float32) + b_ref[layer])

            h = jnp.zeros((B, GP), jnp.float32)
            c = jnp.zeros((B, GP), jnp.float32)
            last_layer = (layer == L - 1)

            # Fully unrolled recurrence; h/c stay in vregs.
            for t in range(T):
                row = t * B
                gates = (xg_ref[pl.ds(row, B), :]
                         + jnp.dot(h, whh_ref[layer],
                                   preferred_element_type=jnp.float32))  # (B, 4*GP)
                # Each gate occupies a full 128-lane tile -> tile-aligned slices.
                i_g = jax.nn.sigmoid(gates[:, 0 * GP:1 * GP])
                f_g = jax.nn.sigmoid(gates[:, 1 * GP:2 * GP])
                g_g = jnp.tanh(gates[:, 2 * GP:3 * GP])
                o_g = jax.nn.sigmoid(gates[:, 3 * GP:4 * GP])
                c = f_g * c + i_g * g_g
                h = o_g * jnp.tanh(c)
                if not last_layer:
                    # becomes the input sequence for the next layer
                    seq_ref[pl.ds(row, B), :] = h

        # --- head on the last time step: Linear -> ReLU -> Linear ---
        a = jnp.maximum(
            jnp.dot(h, w1_ref[...], preferred_element_type=jnp.float32)
            + b1_ref[...], 0.0)
        out_ref[...] = (jnp.dot(a, w2_ref[...],
                                preferred_element_type=jnp.float32) + b2_ref[...])

    return kernel


# ----------------------------- wrapper -----------------------------
def _pad_gate_cols(w, H, GP):
    """(..., 4H) -> (..., 4*GP): zero-pad each of the 4 gate blocks to GP lanes."""
    lead = w.shape[:-1]
    w4 = w.reshape(lead + (4, H))
    w4 = jnp.pad(w4, [(0, 0)] * len(lead) + [(0, 0), (0, GP - H)])
    return w4.reshape(lead + (4 * GP,))


def lstm_forward(x_btf, params):
    """x_btf: (B, T, n_input) float32 -> (B, n_output) float32."""
    B, T, n_in = x_btf.shape
    F = params["W_enc"].shape[1]
    H = params["W_hh"].shape[1]
    L = params["W_ih"].shape[0]
    n_out = params["W2"].shape[1]
    GP = GATE_PAD

    # Pad batch to a full sublane group (8 rows for f32): no masked sublanes.
    Bp = max(SUBLANE, ((B + SUBLANE - 1) // SUBLANE) * SUBLANE)
    x_pad = jnp.pad(x_btf, ((0, Bp - B), (0, 0), (0, 0)))
    # Time-major, flattened to 2D so each time step is a contiguous sublane range.
    x_2d = jnp.transpose(x_pad, (1, 0, 2)).reshape(T * Bp, n_in)

    # Zero-pad weights so every gate is its own full 128-lane tile and every
    # contraction dim is padded to GP (pad lanes of seq/h are exactly zero).
    wenc = jnp.pad(params["W_enc"], ((0, 0), (0, GP - F)))               # (n_in, GP)
    benc = jnp.pad(params["b_enc"], ((0, 0), (0, GP - F)))               # (1, GP)
    wih = jnp.pad(_pad_gate_cols(params["W_ih"], H, GP),
                  ((0, 0), (0, GP - F), (0, 0)))                         # (L, GP, 4GP)
    whh = jnp.pad(_pad_gate_cols(params["W_hh"], H, GP),
                  ((0, 0), (0, GP - H), (0, 0)))                         # (L, GP, 4GP)
    b = _pad_gate_cols(params["b"], H, GP)                               # (L, 1, 4GP)
    w1 = jnp.pad(params["W1"], ((0, GP - H), (0, 0)))                    # (GP, 64)

    kernel = make_lstm_kernel(T, Bp, L, GP)
    vmem = pl.BlockSpec(memory_space=pltpu.MemorySpace.VMEM)
    out = pl.pallas_call(
        kernel,
        out_shape=jax.ShapeDtypeStruct((Bp, n_out), jnp.float32),
        in_specs=[vmem] * 10,
        out_specs=vmem,
        scratch_shapes=[
            pltpu.VMEM((T * Bp, GP), jnp.float32),       # per-layer sequence buffer
            pltpu.VMEM((T * Bp, 4 * GP), jnp.float32),   # hoisted input projections
        ],
    )(x_2d, wenc, benc, wih, whh, b, w1,
      params["b1"], params["W2"], params["b2"])
    return out[:B]


# ----------------------------- params & reference -----------------------------
def init_params(key, n_input, n_output, n_hidden, n_layers):
    F = FEATURE_DIM
    assert F == n_hidden, "weights are stacked per layer; requires feature_dim == n_hidden"
    keys = list(jax.random.split(key, 6 + 4 * n_layers))

    def u(k, shape, fan_in):
        bound = 1.0 / np.sqrt(fan_in)
        return jax.random.uniform(k, shape, jnp.float32, -bound, bound)

    p = {}
    p["W_enc"] = u(keys[0], (n_input, F), n_input)
    p["b_enc"] = u(keys[1], (1, F), n_input)
    wih, whh, bsum = [], [], []
    ki = 2
    for _ in range(n_layers):
        wih.append(u(keys[ki], (F, 4 * n_hidden), n_hidden)); ki += 1
        whh.append(u(keys[ki], (n_hidden, 4 * n_hidden), n_hidden)); ki += 1
        b_ih = u(keys[ki], (1, 4 * n_hidden), n_hidden); ki += 1
        b_hh = u(keys[ki], (1, 4 * n_hidden), n_hidden); ki += 1
        bsum.append(b_ih + b_hh)
    p["W_ih"] = jnp.stack(wih)     # (L, F, 4H)
    p["W_hh"] = jnp.stack(whh)     # (L, H, 4H)
    p["b"] = jnp.stack(bsum)       # (L, 1, 4H)
    p["W1"] = u(keys[ki], (n_hidden, 64), n_hidden); ki += 1
    p["b1"] = u(keys[ki], (1, 64), n_hidden); ki += 1
    p["W2"] = u(keys[ki], (64, n_output), 64); ki += 1
    p["b2"] = u(keys[ki], (1, n_output), 64)
    return p


def ref_forward(x_btf, p):
    """Pure-JAX reference matching the PyTorch forward semantics."""
    B = x_btf.shape[0]
    H = p["W_hh"].shape[1]
    L = p["W_ih"].shape[0]
    enc = jax.nn.relu(jnp.einsum("btn,nf->btf", x_btf, p["W_enc"]) + p["b_enc"])
    seq = jnp.transpose(enc, (1, 0, 2))   # (T, B, F)
    h = None
    for l in range(L):
        def step(carry, x_t, l=l):
            h, c = carry
            gates = x_t @ p["W_ih"][l] + h @ p["W_hh"][l] + p["b"][l]
            i = jax.nn.sigmoid(gates[:, 0 * H:1 * H])
            f = jax.nn.sigmoid(gates[:, 1 * H:2 * H])
            g = jnp.tanh(gates[:, 2 * H:3 * H])
            o = jax.nn.sigmoid(gates[:, 3 * H:4 * H])
            c = f * c + i * g
            h = o * jnp.tanh(c)
            return (h, c), h
        init = (jnp.zeros((B, H), jnp.float32), jnp.zeros((B, H), jnp.float32))
        (h, _), seq = lax.scan(step, init, seq)
    a = jax.nn.relu(h @ p["W1"] + p["b1"])
    return a @ p["W2"] + p["b2"]


# ----------------------------- main -----------------------------
if __name__ == "__main__":
    B, T = 2, 8
    n_input, n_output, n_hidden, n_layers = 16, 4, 32, 2

    key = jax.random.PRNGKey(0)
    k_x, k_p = jax.random.split(key)
    x = jax.random.normal(k_x, (B, T, n_input), dtype=jnp.float32)
    params = init_params(k_p, n_input, n_output, n_hidden, n_layers)

    out = jax.jit(lstm_forward)(x, params)
    out = jax.block_until_ready(out)

    ref = ref_forward(x, params)
    np.testing.assert_allclose(np.asarray(out), np.asarray(ref), rtol=1e-2, atol=1e-2)

    print("KERNEL_OK")
</pallas_src>

<mosaic_0001>
module attributes {stable_mosaic.version = 11 : i64} {
  func.func @kernel(%arg0: memref<64x16xf32, #tpu.memory_space<vmem>>, %arg1: memref<16x128xf32, #tpu.memory_space<vmem>>, %arg2: memref<1x128xf32, #tpu.memory_space<vmem>>, %arg3: memref<2x128x512xf32, #tpu.memory_space<vmem>>, %arg4: memref<2x128x512xf32, #tpu.memory_space<vmem>>, %arg5: memref<2x1x512xf32, #tpu.memory_space<vmem>>, %arg6: memref<128x64xf32, #tpu.memory_space<vmem>>, %arg7: memref<1x64xf32, #tpu.memory_space<vmem>>, %arg8: memref<64x4xf32, #tpu.memory_space<vmem>>, %arg9: memref<1x4xf32, #tpu.memory_space<vmem>>, %arg10: memref<8x4xf32, #tpu.memory_space<vmem>>, %arg11: memref<64x128xf32, #tpu.memory_space<vmem>>, %arg12: memref<64x512xf32, #tpu.memory_space<vmem>>) attributes {dimension_semantics = [], scalar_prefetch = 0 : i64, scratch_operands = 2 : i64, tpu.core_type = #tpu.core_type<tc>} {
    %c0 = arith.constant 0 : index
    %c0_0 = arith.constant 0 : index
    %0 = vector.load %arg0[%c0, %c0_0] : memref<64x16xf32, #tpu.memory_space<vmem>>, vector<64x16xf32>
    %c0_1 = arith.constant 0 : index
    %c0_2 = arith.constant 0 : index
    %1 = vector.load %arg1[%c0_1, %c0_2] : memref<16x128xf32, #tpu.memory_space<vmem>>, vector<16x128xf32>
    %cst = arith.constant dense<0.000000e+00> : vector<64x128xf32>
    %2 = tpu.matmul %0, %1, %cst {dimension_numbers = #tpu.dot_dimension_numbers<[1], [0], [0], [1], [0, 0, 1, 1], [], []>} : vector<64x16xf32>, vector<16x128xf32>, vector<64x128xf32> -> vector<64x128xf32>
    %c0_3 = arith.constant 0 : index
    %c0_4 = arith.constant 0 : index
    %3 = vector.load %arg2[%c0_3, %c0_4] : memref<1x128xf32, #tpu.memory_space<vmem>>, vector<1x128xf32>
    %4 = vector.broadcast %3 : vector<1x128xf32> to vector<64x128xf32>
    %5 = arith.addf %2, %4 : vector<64x128xf32>
    %cst_5 = arith.constant 0.000000e+00 : f32
    %6 = vector.broadcast %cst_5 : f32 to vector<64x128xf32>
    %7 = arith.maximumf %5, %6 : vector<64x128xf32>
    %c0_6 = arith.constant 0 : index
    %c0_7 = arith.constant 0 : index
    %8 = vector.load %arg11[%c0_6, %c0_7] : memref<64x128xf32, #tpu.memory_space<vmem>>, vector<64x128xf32>
    tpu.vector_store %arg11[%c0_6, %c0_7], %7 {strides = array<i32>} : memref<64x128xf32, #tpu.memory_space<vmem>>, vector<64x128xf32>,
    %c0_8 = arith.constant 0 : index
    %c0_9 = arith.constant 0 : index
    %9 = vector.load %arg11[%c0_8, %c0_9] : memref<64x128xf32, #tpu.memory_space<vmem>>, vector<64x128xf32>
    %c0_10 = arith.constant 0 : index
    %c0_11 = arith.constant 0 : index
    %c0_12 = arith.constant 0 : index
    %10 = vector.load %arg3[%c0_10, %c0_11, %c0_12] : memref<2x128x512xf32, #tpu.memory_space<vmem>>, vector<1x128x512xf32>
    %11 = vector.shape_cast %10 : vector<1x128x512xf32> to vector<128x512xf32>
    %cst_13 = arith.constant dense<0.000000e+00> : vector<64x512xf32>
    %12 = tpu.matmul %9, %11, %cst_13 {dimension_numbers = #tpu.dot_dimension_numbers<[1], [0], [0], [1], [0, 0, 1, 1], [], []>} : vector<64x128xf32>, vector<128x512xf32>, vector<64x512xf32> -> vector<64x512xf32>
    %c0_14 = arith.constant 0 : index
    %c0_15 = arith.constant 0 : index
    %c0_16 = arith.constant 0 : index
    %13 = vector.load %arg5[%c0_14, %c0_15, %c0_16] : memref<2x1x512xf32, #tpu.memory_space<vmem>>, vector<1x1x512xf32>
    %14 = vector.shape_cast %13 : vector<1x1x512xf32> to vector<1x512xf32>
    %15 = vector.broadcast %14 : vector<1x512xf32> to vector<64x512xf32>
    %16 = arith.addf %12, %15 : vector<64x512xf32>
    %c0_17 = arith.constant 0 : index
    %c0_18 = arith.constant 0 : index
    %17 = vector.load %arg12[%c0_17, %c0_18] : memref<64x512xf32, #tpu.memory_space<vmem>>, vector<64x512xf32>
    tpu.vector_store %arg12[%c0_17, %c0_18], %16 {strides = array<i32>} : memref<64x512xf32, #tpu.memory_space<vmem>>, vector<64x512xf32>,
    %cst_19 = arith.constant 0.000000e+00 : f32
    %18 = vector.broadcast %cst_19 : f32 to vector<8x128xf32>
    %cst_20 = arith.constant 0.000000e+00 : f32
    %19 = vector.broadcast %cst_20 : f32 to vector<8x128xf32>
    %c0_21 = arith.constant 0 : index
    %c0_22 = arith.constant 0 : index
    %20 = vector.load %arg12[%c0_21, %c0_22] : memref<64x512xf32, #tpu.memory_space<vmem>>, vector<8x512xf32>
    %c0_23 = arith.constant 0 : index
    %c0_24 = arith.constant 0 : index
    %c0_25 = arith.constant 0 : index
    %21 = vector.load %arg4[%c0_23, %c0_24, %c0_25] : memref<2x128x512xf32, #tpu.memory_space<vmem>>, vector<1x128x512xf32>
    %22 = vector.shape_cast %21 : vector<1x128x512xf32> to vector<128x512xf32>
    %cst_26 = arith.constant dense<0.000000e+00> : vector<8x512xf32>
    %23 = tpu.matmul %18, %22, %cst_26 {dimension_numbers = #tpu.dot_dimension_numbers<[1], [0], [0], [1], [0, 0, 1, 1], [], []>} : vector<8x128xf32>, vector<128x512xf32>, vector<8x512xf32> -> vector<8x512xf32>
    %24 = arith.addf %20, %23 : vector<8x512xf32>
    %25 = vector.extract_strided_slice %24 {offsets = [0, 0], sizes = [8, 128], strides = [1, 1]} : vector<8x512xf32> to vector<8x128xf32>
    %26 = arith.negf %25 : vector<8x128xf32>
    %27 = math.exp %26 : vector<8x128xf32>
    %cst_27 = arith.constant 1.000000e+00 : f32
    %28 = vector.broadcast %cst_27 : f32 to vector<8x128xf32>
    %29 = arith.addf %28, %27 : vector<8x128xf32>
    %30 = arith.divf %28, %29 : vector<8x128xf32>
    %31 = vector.extract_strided_slice %24 {offsets = [0, 128], sizes = [8, 128], strides = [1, 1]} : vector<8x512xf32> to vector<8x128xf32>
    %32 = arith.negf %31 : vector<8x128xf32>
    %33 = math.exp %32 : vector<8x128xf32>
    %cst_28 = arith.constant 1.000000e+00 : f32
    %34 = vector.broadcast %cst_28 : f32 to vector<8x128xf32>
    %35 = arith.addf %34, %33 : vector<8x128xf32>
    %36 = arith.divf %34, %35 : vector<8x128xf32>
    %37 = vector.extract_strided_slice %24 {offsets = [0, 256], sizes = [8, 128], strides = [1, 1]} : vector<8x512xf32> to vector<8x128xf32>
    %38 = math.tanh %37 : vector<8x128xf32>
    %39 = vector.extract_strided_slice %24 {offsets = [0, 384], sizes = [8, 128], strides = [1, 1]} : vector<8x512xf32> to vector<8x128xf32>
    %40 = arith.negf %39 : vector<8x128xf32>
    %41 = math.exp %40 : vector<8x128xf32>
    %cst_29 = arith.constant 1.000000e+00 : f32
    %42 = vector.broadcast %cst_29 : f32 to vector<8x128xf32>
    %43 = arith.addf %42, %41 : vector<8x128xf32>
    %44 = arith.divf %42, %43 : vector<8x128xf32>
    %45 = arith.mulf %36, %19 : vector<8x128xf32>
    %46 = arith.mulf %30, %38 : vector<8x128xf32>
    %47 = arith.addf %45, %46 : vector<8x128xf32>
    %48 = math.tanh %47 : vector<8x128xf32>
    %49 = arith.mulf %44, %48 : vector<8x128xf32>
    %c0_30 = arith.constant 0 : index
    %c0_31 = arith.constant 0 : index
    %50 = vector.load %arg11[%c0_30, %c0_31] : memref<64x128xf32, #tpu.memory_space<vmem>>, vector<8x128xf32>
    tpu.vector_store %arg11[%c0_30, %c0_31], %49 {strides = array<i32>} : memref<64x128xf32, #tpu.memory_space<vmem>>, vector<8x128xf32>,
    %c8 = arith.constant 8 : index
    %c0_32 = arith.constant 0 : index
    %51 = vector.load %arg12[%c8, %c0_32] : memref<64x512xf32, #tpu.memory_space<vmem>>, vector<8x512xf32>
    %c0_33 = arith.constant 0 : index
    %c0_34 = arith.constant 0 : index
    %c0_35 = arith.constant 0 : index
    %52 = vector.load %arg4[%c0_33, %c0_34, %c0_35] : memref<2x128x512xf32, #tpu.memory_space<vmem>>, vector<1x128x512xf32>
    %53 = vector.shape_cast %52 : vector<1x128x512xf32> to vector<128x512xf32>
    %cst_36 = arith.constant dense<0.000000e+00> : vector<8x512xf32>
    %54 = tpu.matmul %49, %53, %cst_36 {dimension_numbers = #tpu.dot_dimension_numbers<[1], [0], [0], [1], [0, 0, 1, 1], [], []>} : vector<8x128xf32>, vector<128x512xf32>, vector<8x512xf32> -> vector<8x512xf32>
    %55 = arith.addf %51, %54 : vector<8x512xf32>
    %56 = vector.extract_strided_slice %55 {offsets = [0, 0], sizes = [8, 128], strides = [1, 1]} : vector<8x512xf32> to vector<8x128xf32>
    %57 = arith.negf %56 : vector<8x128xf32>
    %58 = math.exp %57 : vector<8x128xf32>
    %cst_37 = arith.constant 1.000000e+00 : f32
    %59 = vector.broadcast %cst_37 : f32 to vector<8x128xf32>
    %60 = arith.addf %59, %58 : vector<8x128xf32>
    %61 = arith.divf %59, %60 : vector<8x128xf32>
    %62 = vector.extract_strided_slice %55 {offsets = [0, 128], sizes = [8, 128], strides = [1, 1]} : vector<8x512xf32> to vector<8x128xf32>
    %63 = arith.negf %62 : vector<8x128xf32>
    %64 = math.exp %63 : vector<8x128xf32>
    %cst_38 = arith.constant 1.000000e+00 : f32
    %65 = vector.broadcast %cst_38 : f32 to vector<8x128xf32>
    %66 = arith.addf %65, %64 : vector<8x128xf32>
    %67 = arith.divf %65, %66 : vector<8x128xf32>
    %68 = vector.extract_strided_slice %55 {offsets = [0, 256], sizes = [8, 128], strides = [1, 1]} : vector<8x512xf32> to vector<8x128xf32>
    %69 = math.tanh %68 : vector<8x128xf32>
    %70 = vector.extract_strided_slice %55 {offsets = [0, 384], sizes = [8, 128], strides = [1, 1]} : vector<8x512xf32> to vector<8x128xf32>
    %71 = arith.negf %70 : vector<8x128xf32>
    %72 = math.exp %71 : vector<8x128xf32>
    %cst_39 = arith.constant 1.000000e+00 : f32
    %73 = vector.broadcast %cst_39 : f32 to vector<8x128xf32>
    %74 = arith.addf %73, %72 : vector<8x128xf32>
    %75 = arith.divf %73, %74 : vector<8x128xf32>
    %76 = arith.mulf %67, %47 : vector<8x128xf32>
    %77 = arith.mulf %61, %69 : vector<8x128xf32>
    %78 = arith.addf %76, %77 : vector<8x128xf32>
    %79 = math.tanh %78 : vector<8x128xf32>
    %80 = arith.mulf %75, %79 : vector<8x128xf32>
    %c8_40 = arith.constant 8 : index
    %c0_41 = arith.constant 0 : index
    %81 = vector.load %arg11[%c8_40, %c0_41] : memref<64x128xf32, #tpu.memory_space<vmem>>, vector<8x128xf32>
    tpu.vector_store %arg11[%c8_40, %c0_41], %80 {strides = array<i32>} : memref<64x128xf32, #tpu.memory_space<vmem>>, vector<8x128xf32>,
    %c16 = arith.constant 16 : index
    %c0_42 = arith.constant 0 : index
    %82 = vector.load %arg12[%c16, %c0_42] : memref<64x512xf32, #tpu.memory_space<vmem>>, vector<8x512xf32>
    %c0_43 = arith.constant 0 : index
    %c0_44 = arith.constant 0 : index
    %c0_45 = arith.constant 0 : index
    %83 = vector.load %arg4[%c0_43, %c0_44, %c0_45] : memref<2x128x512xf32, #tpu.memory_space<vmem>>, vector<1x128x512xf32>
    %84 = vector.shape_cast %83 : vector<1x128x512xf32> to vector<128x512xf32>
    %cst_46 = arith.constant dense<0.000000e+00> : vector<8x512xf32>
    %85 = tpu.matmul %80, %84, %cst_46 {dimension_numbers = #tpu.dot_dimension_numbers<[1], [0], [0], [1], [0, 0, 1, 1], [], []>} : vector<8x128xf32>, vector<128x512xf32>, vector<8x512xf32> -> vector<8x512xf32>
    %86 = arith.addf %82, %85 : vector<8x512xf32>
    %87 = vector.extract_strided_slice %86 {offsets = [0, 0], sizes = [8, 128], strides = [1, 1]} : vector<8x512xf32> to vector<8x128xf32>
    %88 = arith.negf %87 : vector<8x128xf32>
    %89 = math.exp %88 : vector<8x128xf32>
    %cst_47 = arith.constant 1.000000e+00 : f32
    %90 = vector.broadcast %cst_47 : f32 to vector<8x128xf32>
    %91 = arith.addf %90, %89 : vector<8x128xf32>
    %92 = arith.divf %90, %91 : vector<8x128xf32>
    %93 = vector.extract_strided_slice %86 {offsets = [0, 128], sizes = [8, 128], strides = [1, 1]} : vector<8x512xf32> to vector<8x128xf32>
    %94 = arith.negf %93 : vector<8x128xf32>
    %95 = math.exp %94 : vector<8x128xf32>
    %cst_48 = arith.constant 1.000000e+00 : f32
    %96 = vector.broadcast %cst_48 : f32 to vector<8x128xf32>
    %97 = arith.addf %96, %95 : vector<8x128xf32>
    %98 = arith.divf %96, %97 : vector<8x128xf32>
    %99 = vector.extract_strided_slice %86 {offsets = [0, 256], sizes = [8, 128], strides = [1, 1]} : vector<8x512xf32> to vector<8x128xf32>
    %100 = math.tanh %99 : vector<8x128xf32>
    %101 = vector.extract_strided_slice %86 {offsets = [0, 384], sizes = [8, 128], strides = [1, 1]} : vector<8x512xf32> to vector<8x128xf32>
    %102 = arith.negf %101 : vector<8x128xf32>
    %103 = math.exp %102 : vector<8x128xf32>
    %cst_49 = arith.constant 1.000000e+00 : f32
    %104 = vector.broadcast %cst_49 : f32 to vector<8x128xf32>
    %105 = arith.addf %104, %103 : vector<8x128xf32>
    %106 = arith.divf %104, %105 : vector<8x128xf32>
    %107 = arith.mulf %98, %78 : vector<8x128xf32>
    %108 = arith.mulf %92, %100 : vector<8x128xf32>
    %109 = arith.addf %107, %108 : vector<8x128xf32>
    %110 = math.tanh %109 : vector<8x128xf32>
    %111 = arith.mulf %106, %110 : vector<8x128xf32>
    %c16_50 = arith.constant 16 : index
    %c0_51 = arith.constant 0 : index
    %112 = vector.load %arg11[%c16_50, %c0_51] : memref<64x128xf32, #tpu.memory_space<vmem>>, vector<8x128xf32>
    tpu.vector_store %arg11[%c16_50, %c0_51], %111 {strides = array<i32>} : memref<64x128xf32, #tpu.memory_space<vmem>>, vector<8x128xf32>,
    %c24 = arith.constant 24 : index
    %c0_52 = arith.constant 0 : index
    %113 = vector.load %arg12[%c24, %c0_52] : memref<64x512xf32, #tpu.memory_space<vmem>>, vector<8x512xf32>
    %c0_53 = arith.constant 0 : index
    %c0_54 = arith.constant 0 : index
    %c0_55 = arith.constant 0 : index
    %114 = vector.load %arg4[%c0_53, %c0_54, %c0_55] : memref<2x128x512xf32, #tpu.memory_space<vmem>>, vector<1x128x512xf32>
    %115 = vector.shape_cast %114 : vector<1x128x512xf32> to vector<128x512xf32>
    %cst_56 = arith.constant dense<0.000000e+00> : vector<8x512xf32>
    %116 = tpu.matmul %111, %115, %cst_56 {dimension_numbers = #tpu.dot_dimension_numbers<[1], [0], [0], [1], [0, 0, 1, 1], [], []>} : vector<8x128xf32>, vector<128x512xf32>, vector<8x512xf32> -> vector<8x512xf32>
    %117 = arith.addf %113, %116 : vector<8x512xf32>
    %118 = vector.extract_strided_slice %117 {offsets = [0, 0], sizes = [8, 128], strides = [1, 1]} : vector<8x512xf32> to vector<8x128xf32>
    %119 = arith.negf %118 : vector<8x128xf32>
    %120 = math.exp %119 : vector<8x128xf32>
    %cst_57 = arith.constant 1.000000e+00 : f32
    %121 = vector.broadcast %cst_57 : f32 to vector<8x128xf32>
    %122 = arith.addf %121, %120 : vector<8x128xf32>
    %123 = arith.divf %121, %122 : vector<8x128xf32>
    %124 = vector.extract_strided_slice %117 {offsets = [0, 128], sizes = [8, 128], strides = [1, 1]} : vector<8x512xf32> to vector<8x128xf32>
    %125 = arith.negf %124 : vector<8x128xf32>
    %126 = math.exp %125 : vector<8x128xf32>
    %cst_58 = arith.constant 1.000000e+00 : f32
    %127 = vector.broadcast %cst_58 : f32 to vector<8x128xf32>
    %128 = arith.addf %127, %126 : vector<8x128xf32>
    %129 = arith.divf %127, %128 : vector<8x128xf32>
    %130 = vector.extract_strided_slice %117 {offsets = [0, 256], sizes = [8, 128], strides = [1, 1]} : vector<8x512xf32> to vector<8x128xf32>
    %131 = math.tanh %130 : vector<8x128xf32>
    %132 = vector.extract_strided_slice %117 {offsets = [0, 384], sizes = [8, 128], strides = [1, 1]} : vector<8x512xf32> to vector<8x128xf32>
    %133 = arith.negf %132 : vector<8x128xf32>
    %134 = math.exp %133 : vector<8x128xf32>
    %cst_59 = arith.constant 1.000000e+00 : f32
    %135 = vector.broadcast %cst_59 : f32 to vector<8x128xf32>
    %136 = arith.addf %135, %134 : vector<8x128xf32>
    %137 = arith.divf %135, %136 : vector<8x128xf32>
    %138 = arith.mulf %129, %109 : vector<8x128xf32>
    %139 = arith.mulf %123, %131 : vector<8x128xf32>
    %140 = arith.addf %138, %139 : vector<8x128xf32>
    %141 = math.tanh %140 : vector<8x128xf32>
    %142 = arith.mulf %137, %141 : vector<8x128xf32>
    %c24_60 = arith.constant 24 : index
    %c0_61 = arith.constant 0 : index
    %143 = vector.load %arg11[%c24_60, %c0_61] : memref<64x128xf32, #tpu.memory_space<vmem>>, vector<8x128xf32>
    tpu.vector_store %arg11[%c24_60, %c0_61], %142 {strides = array<i32>} : memref<64x128xf32, #tpu.memory_space<vmem>>, vector<8x128xf32>,
    %c32 = arith.constant 32 : index
    %c0_62 = arith.constant 0 : index
    %144 = vector.load %arg12[%c32, %c0_62] : memref<64x512xf32, #tpu.memory_space<vmem>>, vector<8x512xf32>
    %c0_63 = arith.constant 0 : index
    %c0_64 = arith.constant 0 : index
    %c0_65 = arith.constant 0 : index
    %145 = vector.load %arg4[%c0_63, %c0_64, %c0_65] : memref<2x128x512xf32, #tpu.memory_space<vmem>>, vector<1x128x512xf32>
    %146 = vector.shape_cast %145 : vector<1x128x512xf32> to vector<128x512xf32>
    %cst_66 = arith.constant dense<0.000000e+00> : vector<8x512xf32>
    %147 = tpu.matmul %142, %146, %cst_66 {dimension_numbers = #tpu.dot_dimension_numbers<[1], [0], [0], [1], [0, 0, 1, 1], [], []>} : vector<8x128xf32>, vector<128x512xf32>, vector<8x512xf32> -> vector<8x512xf32>
    %148 = arith.addf %144, %147 : vector<8x512xf32>
    %149 = vector.extract_strided_slice %148 {offsets = [0, 0], sizes = [8, 128], strides = [1, 1]} : vector<8x512xf32> to vector<8x128xf32>
    %150 = arith.negf %149 : vector<8x128xf32>
    %151 = math.exp %150 : vector<8x128xf32>
    %cst_67 = arith.constant 1.000000e+00 : f32
    %152 = vector.broadcast %cst_67 : f32 to vector<8x128xf32>
    %153 = arith.addf %152, %151 : vector<8x128xf32>
    %154 = arith.divf %152, %153 : vector<8x128xf32>
    %155 = vector.extract_strided_slice %148 {offsets = [0, 128], sizes = [8, 128], strides = [1, 1]} : vector<8x512xf32> to vector<8x128xf32>
    %156 = arith.negf %155 : vector<8x128xf32>
    %157 = math.exp %156 : vector<8x128xf32>
    %cst_68 = arith.constant 1.000000e+00 : f32
    %158 = vector.broadcast %cst_68 : f32 to vector<8x128xf32>
    %159 = arith.addf %158, %157 : vector<8x128xf32>
    %160 = arith.divf %158, %159 : vector<8x128xf32>
    %161 = vector.extract_strided_slice %148 {offsets = [0, 256], sizes = [8, 128], strides = [1, 1]} : vector<8x512xf32> to vector<8x128xf32>
    %162 = math.tanh %161 : vector<8x128xf32>
    %163 = vector.extract_strided_slice %148 {offsets = [0, 384], sizes = [8, 128], strides = [1, 1]} : vector<8x512xf32> to vector<8x128xf32>
    %164 = arith.negf %163 : vector<8x128xf32>
    %165 = math.exp %164 : vector<8x128xf32>
    %cst_69 = arith.constant 1.000000e+00 : f32
    %166 = vector.broadcast %cst_69 : f32 to vector<8x128xf32>
    %167 = arith.addf %166, %165 : vector<8x128xf32>
    %168 = arith.divf %166, %167 : vector<8x128xf32>
    %169 = arith.mulf %160, %140 : vector<8x128xf32>
    %170 = arith.mulf %154, %162 : vector<8x128xf32>
    %171 = arith.addf %169, %170 : vector<8x128xf32>
    %172 = math.tanh %171 : vector<8x128xf32>
    %173 = arith.mulf %168, %172 : vector<8x128xf32>
    %c32_70 = arith.constant 32 : index
    %c0_71 = arith.constant 0 : index
    %174 = vector.load %arg11[%c32_70, %c0_71] : memref<64x128xf32, #tpu.memory_space<vmem>>, vector<8x128xf32>
    tpu.vector_store %arg11[%c32_70, %c0_71], %173 {strides = array<i32>} : memref<64x128xf32, #tpu.memory_space<vmem>>, vector<8x128xf32>,
    %c40 = arith.constant 40 : index
    %c0_72 = arith.constant 0 : index
    %175 = vector.load %arg12[%c40, %c0_72] : memref<64x512xf32, #tpu.memory_space<vmem>>, vector<8x512xf32>
    %c0_73 = arith.constant 0 : index
    %c0_74 = arith.constant 0 : index
    %c0_75 = arith.constant 0 : index
    %176 = vector.load %arg4[%c0_73, %c0_74, %c0_75] : memref<2x128x512xf32, #tpu.memory_space<vmem>>, vector<1x128x512xf32>
    %177 = vector.shape_cast %176 : vector<1x128x512xf32> to vector<128x512xf32>
    %cst_76 = arith.constant dense<0.000000e+00> : vector<8x512xf32>
    %178 = tpu.matmul %173, %177, %cst_76 {dimension_numbers = #tpu.dot_dimension_numbers<[1], [0], [0], [1], [0, 0, 1, 1], [], []>} : vector<8x128xf32>, vector<128x512xf32>, vector<8x512xf32> -> vector<8x512xf32>
    %179 = arith.addf %175, %178 : vector<8x512xf32>
    %180 = vector.extract_strided_slice %179 {offsets = [0, 0], sizes = [8, 128], strides = [1, 1]} : vector<8x512xf32> to vector<8x128xf32>
    %181 = arith.negf %180 : vector<8x128xf32>
    %182 = math.exp %181 : vector<8x128xf32>
    %cst_77 = arith.constant 1.000000e+00 : f32
    %183 = vector.broadcast %cst_77 : f32 to vector<8x128xf32>
    %184 = arith.addf %183, %182 : vector<8x128xf32>
    %185 = arith.divf %183, %184 : vector<8x128xf32>
    %186 = vector.extract_strided_slice %179 {offsets = [0, 128], sizes = [8, 128], strides = [1, 1]} : vector<8x512xf32> to vector<8x128xf32>
    %187 = arith.negf %186 : vector<8x128xf32>
    %188 = math.exp %187 : vector<8x128xf32>
    %cst_78 = arith.constant 1.000000e+00 : f32
    %189 = vector.broadcast %cst_78 : f32 to vector<8x128xf32>
    %190 = arith.addf %189, %188 : vector<8x128xf32>
    %191 = arith.divf %189, %190 : vector<8x128xf32>
    %192 = vector.extract_strided_slice %179 {offsets = [0, 256], sizes = [8, 128], strides = [1, 1]} : vector<8x512xf32> to vector<8x128xf32>
    %193 = math.tanh %192 : vector<8x128xf32>
    %194 = vector.extract_strided_slice %179 {offsets = [0, 384], sizes = [8, 128], strides = [1, 1]} : vector<8x512xf32> to vector<8x128xf32>
    %195 = arith.negf %194 : vector<8x128xf32>
    %196 = math.exp %195 : vector<8x128xf32>
    %cst_79 = arith.constant 1.000000e+00 : f32
    %197 = vector.broadcast %cst_79 : f32 to vector<8x128xf32>
    %198 = arith.addf %197, %196 : vector<8x128xf32>
    %199 = arith.divf %197, %198 : vector<8x128xf32>
    %200 = arith.mulf %191, %171 : vector<8x128xf32>
    %201 = arith.mulf %185, %193 : vector<8x128xf32>
    %202 = arith.addf %200, %201 : vector<8x128xf32>
    %203 = math.tanh %202 : vector<8x128xf32>
    %204 = arith.mulf %199, %203 : vector<8x128xf32>
    %c40_80 = arith.constant 40 : index
    %c0_81 = arith.constant 0 : index
    %205 = vector.load %arg11[%c40_80, %c0_81] : memref<64x128xf32, #tpu.memory_space<vmem>>, vector<8x128xf32>
    tpu.vector_store %arg11[%c40_80, %c0_81], %204 {strides = array<i32>} : memref<64x128xf32, #tpu.memory_space<vmem>>, vector<8x128xf32>,
    %c48 = arith.constant 48 : index
    %c0_82 = arith.constant 0 : index
    %206 = vector.load %arg12[%c48, %c0_82] : memref<64x512xf32, #tpu.memory_space<vmem>>, vector<8x512xf32>
    %c0_83 = arith.constant 0 : index
    %c0_84 = arith.constant 0 : index
    %c0_85 = arith.constant 0 : index
    %207 = vector.load %arg4[%c0_83, %c0_84, %c0_85] : memref<2x128x512xf32, #tpu.memory_space<vmem>>, vector<1x128x512xf32>
    %208 = vector.shape_cast %207 : vector<1x128x512xf32> to vector<128x512xf32>
    %cst_86 = arith.constant dense<0.000000e+00> : vector<8x512xf32>
    %209 = tpu.matmul %204, %208, %cst_86 {dimension_numbers = #tpu.dot_dimension_numbers<[1], [0], [0], [1], [0, 0, 1, 1], [], []>} : vector<8x128xf32>, vector<128x512xf32>, vector<8x512xf32> -> vector<8x512xf32>
    %210 = arith.addf %206, %209 : vector<8x512xf32>
    %211 = vector.extract_strided_slice %210 {offsets = [0, 0], sizes = [8, 128], strides = [1, 1]} : vector<8x512xf32> to vector<8x128xf32>
    %212 = arith.negf %211 : vector<8x128xf32>
    %213 = math.exp %212 : vector<8x128xf32>
    %cst_87 = arith.constant 1.000000e+00 : f32
    %214 = vector.broadcast %cst_87 : f32 to vector<8x128xf32>
    %215 = arith.addf %214, %213 : vector<8x128xf32>
    %216 = arith.divf %214, %215 : vector<8x128xf32>
    %217 = vector.extract_strided_slice %210 {offsets = [0, 128], sizes = [8, 128], strides = [1, 1]} : vector<8x512xf32> to vector<8x128xf32>
    %218 = arith.negf %217 : vector<8x128xf32>
    %219 = math.exp %218 : vector<8x128xf32>
    %cst_88 = arith.constant 1.000000e+00 : f32
    %220 = vector.broadcast %cst_88 : f32 to vector<8x128xf32>
    %221 = arith.addf %220, %219 : vector<8x128xf32>
    %222 = arith.divf %220, %221 : vector<8x128xf32>
    %223 = vector.extract_strided_slice %210 {offsets = [0, 256], sizes = [8, 128], strides = [1, 1]} : vector<8x512xf32> to vector<8x128xf32>
    %224 = math.tanh %223 : vector<8x128xf32>
    %225 = vector.extract_strided_slice %210 {offsets = [0, 384], sizes = [8, 128], strides = [1, 1]} : vector<8x512xf32> to vector<8x128xf32>
    %226 = arith.negf %225 : vector<8x128xf32>
    %227 = math.exp %226 : vector<8x128xf32>
    %cst_89 = arith.constant 1.000000e+00 : f32
    %228 = vector.broadcast %cst_89 : f32 to vector<8x128xf32>
    %229 = arith.addf %228, %227 : vector<8x128xf32>
    %230 = arith.divf %228, %229 : vector<8x128xf32>
    %231 = arith.mulf %222, %202 : vector<8x128xf32>
    %232 = arith.mulf %216, %224 : vector<8x128xf32>
    %233 = arith.addf %231, %232 : vector<8x128xf32>
    %234 = math.tanh %233 : vector<8x128xf32>
    %235 = arith.mulf %230, %234 : vector<8x128xf32>
    %c48_90 = arith.constant 48 : index
    %c0_91 = arith.constant 0 : index
    %236 = vector.load %arg11[%c48_90, %c0_91] : memref<64x128xf32, #tpu.memory_space<vmem>>, vector<8x128xf32>
    tpu.vector_store %arg11[%c48_90, %c0_91], %235 {strides = array<i32>} : memref<64x128xf32, #tpu.memory_space<vmem>>, vector<8x128xf32>,
    %c56 = arith.constant 56 : index
    %c0_92 = arith.constant 0 : index
    %237 = vector.load %arg12[%c56, %c0_92] : memref<64x512xf32, #tpu.memory_space<vmem>>, vector<8x512xf32>
    %c0_93 = arith.constant 0 : index
    %c0_94 = arith.constant 0 : index
    %c0_95 = arith.constant 0 : index
    %238 = vector.load %arg4[%c0_93, %c0_94, %c0_95] : memref<2x128x512xf32, #tpu.memory_space<vmem>>, vector<1x128x512xf32>
    %239 = vector.shape_cast %238 : vector<1x128x512xf32> to vector<128x512xf32>
    %cst_96 = arith.constant dense<0.000000e+00> : vector<8x512xf32>
    %240 = tpu.matmul %235, %239, %cst_96 {dimension_numbers = #tpu.dot_dimension_numbers<[1], [0], [0], [1], [0, 0, 1, 1], [], []>} : vector<8x128xf32>, vector<128x512xf32>, vector<8x512xf32> -> vector<8x512xf32>
    %241 = arith.addf %237, %240 : vector<8x512xf32>
    %242 = vector.extract_strided_slice %241 {offsets = [0, 0], sizes = [8, 128], strides = [1, 1]} : vector<8x512xf32> to vector<8x128xf32>
    %243 = arith.negf %242 : vector<8x128xf32>
    %244 = math.exp %243 : vector<8x128xf32>
    %cst_97 = arith.constant 1.000000e+00 : f32
    %245 = vector.broadcast %cst_97 : f32 to vector<8x128xf32>
    %246 = arith.addf %245, %244 : vector<8x128xf32>
    %247 = arith.divf %245, %246 : vector<8x128xf32>
    %248 = vector.extract_strided_slice %241 {offsets = [0, 128], sizes = [8, 128], strides = [1, 1]} : vector<8x512xf32> to vector<8x128xf32>
    %249 = arith.negf %248 : vector<8x128xf32>
    %250 = math.exp %249 : vector<8x128xf32>
    %cst_98 = arith.constant 1.000000e+00 : f32
    %251 = vector.broadcast %cst_98 : f32 to vector<8x128xf32>
    %252 = arith.addf %251, %250 : vector<8x128xf32>
    %253 = arith.divf %251, %252 : vector<8x128xf32>
    %254 = vector.extract_strided_slice %241 {offsets = [0, 256], sizes = [8, 128], strides = [1, 1]} : vector<8x512xf32> to vector<8x128xf32>
    %255 = math.tanh %254 : vector<8x128xf32>
    %256 = vector.extract_strided_slice %241 {offsets = [0, 384], sizes = [8, 128], strides = [1, 1]} : vector<8x512xf32> to vector<8x128xf32>
    %257 = arith.negf %256 : vector<8x128xf32>
    %258 = math.exp %257 : vector<8x128xf32>
    %cst_99 = arith.constant 1.000000e+00 : f32
    %259 = vector.broadcast %cst_99 : f32 to vector<8x128xf32>
    %260 = arith.addf %259, %258 : vector<8x128xf32>
    %261 = arith.divf %259, %260 : vector<8x128xf32>
    %262 = arith.mulf %253, %233 : vector<8x128xf32>
    %263 = arith.mulf %247, %255 : vector<8x128xf32>
    %264 = arith.addf %262, %263 : vector<8x128xf32>
    %265 = math.tanh %264 : vector<8x128xf32>
    %266 = arith.mulf %261, %265 : vector<8x128xf32>
    %c56_100 = arith.constant 56 : index
    %c0_101 = arith.constant 0 : index
    %267 = vector.load %arg11[%c56_100, %c0_101] : memref<64x128xf32, #tpu.memory_space<vmem>>, vector<8x128xf32>
    tpu.vector_store %arg11[%c56_100, %c0_101], %266 {strides = array<i32>} : memref<64x128xf32, #tpu.memory_space<vmem>>, vector<8x128xf32>,
    %c0_102 = arith.constant 0 : index
    %c0_103 = arith.constant 0 : index
    %268 = vector.load %arg11[%c0_102, %c0_103] : memref<64x128xf32, #tpu.memory_space<vmem>>, vector<64x128xf32>
    %c1 = arith.constant 1 : index
    %c0_104 = arith.constant 0 : index
    %c0_105 = arith.constant 0 : index
    %269 = vector.load %arg3[%c1, %c0_104, %c0_105] : memref<2x128x512xf32, #tpu.memory_space<vmem>>, vector<1x128x512xf32>
    %270 = vector.shape_cast %269 : vector<1x128x512xf32> to vector<128x512xf32>
    %cst_106 = arith.constant dense<0.000000e+00> : vector<64x512xf32>
    %271 = tpu.matmul %268, %270, %cst_106 {dimension_numbers = #tpu.dot_dimension_numbers<[1], [0], [0], [1], [0, 0, 1, 1], [], []>} : vector<64x128xf32>, vector<128x512xf32>, vector<64x512xf32> -> vector<64x512xf32>
    %c1_107 = arith.constant 1 : index
    %c0_108 = arith.constant 0 : index
    %c0_109 = arith.constant 0 : index
    %272 = vector.load %arg5[%c1_107, %c0_108, %c0_109] : memref<2x1x512xf32, #tpu.memory_space<vmem>>, vector<1x1x512xf32>
    %273 = vector.shape_cast %272 : vector<1x1x512xf32> to vector<1x512xf32>
    %274 = vector.broadcast %273 : vector<1x512xf32> to vector<64x512xf32>
    %275 = arith.addf %271, %274 : vector<64x512xf32>
    %c0_110 = arith.constant 0 : index
    %c0_111 = arith.constant 0 : index
    %276 = vector.load %arg12[%c0_110, %c0_111] : memref<64x512xf32, #tpu.memory_space<vmem>>, vector<64x512xf32>
    tpu.vector_store %arg12[%c0_110, %c0_111], %275 {strides = array<i32>} : memref<64x512xf32, #tpu.memory_space<vmem>>, vector<64x512xf32>,
    %cst_112 = arith.constant 0.000000e+00 : f32
    %277 = vector.broadcast %cst_112 : f32 to vector<8x128xf32>
    %cst_113 = arith.constant 0.000000e+00 : f32
    %278 = vector.broadcast %cst_113 : f32 to vector<8x128xf32>
    %c0_114 = arith.constant 0 : index
    %c0_115 = arith.constant 0 : index
    %279 = vector.load %arg12[%c0_114, %c0_115] : memref<64x512xf32, #tpu.memory_space<vmem>>, vector<8x512xf32>
    %c1_116 = arith.constant 1 : index
    %c0_117 = arith.constant 0 : index
    %c0_118 = arith.constant 0 : index
    %280 = vector.load %arg4[%c1_116, %c0_117, %c0_118] : memref<2x128x512xf32, #tpu.memory_space<vmem>>, vector<1x128x512xf32>
    %281 = vector.shape_cast %280 : vector<1x128x512xf32> to vector<128x512xf32>
    %cst_119 = arith.constant dense<0.000000e+00> : vector<8x512xf32>
    %282 = tpu.matmul %277, %281, %cst_119 {dimension_numbers = #tpu.dot_dimension_numbers<[1], [0], [0], [1], [0, 0, 1, 1], [], []>} : vector<8x128xf32>, vector<128x512xf32>, vector<8x512xf32> -> vector<8x512xf32>
    %283 = arith.addf %279, %282 : vector<8x512xf32>
    %284 = vector.extract_strided_slice %283 {offsets = [0, 0], sizes = [8, 128], strides = [1, 1]} : vector<8x512xf32> to vector<8x128xf32>
    %285 = arith.negf %284 : vector<8x128xf32>
    %286 = math.exp %285 : vector<8x128xf32>
    %cst_120 = arith.constant 1.000000e+00 : f32
    %287 = vector.broadcast %cst_120 : f32 to vector<8x128xf32>
    %288 = arith.addf %287, %286 : vector<8x128xf32>
    %289 = arith.divf %287, %288 : vector<8x128xf32>
    %290 = vector.extract_strided_slice %283 {offsets = [0, 128], sizes = [8, 128], strides = [1, 1]} : vector<8x512xf32> to vector<8x128xf32>
    %291 = arith.negf %290 : vector<8x128xf32>
    %292 = math.exp %291 : vector<8x128xf32>
    %cst_121 = arith.constant 1.000000e+00 : f32
    %293 = vector.broadcast %cst_121 : f32 to vector<8x128xf32>
    %294 = arith.addf %293, %292 : vector<8x128xf32>
    %295 = arith.divf %293, %294 : vector<8x128xf32>
    %296 = vector.extract_strided_slice %283 {offsets = [0, 256], sizes = [8, 128], strides = [1, 1]} : vector<8x512xf32> to vector<8x128xf32>
    %297 = math.tanh %296 : vector<8x128xf32>
    %298 = vector.extract_strided_slice %283 {offsets = [0, 384], sizes = [8, 128], strides = [1, 1]} : vector<8x512xf32> to vector<8x128xf32>
    %299 = arith.negf %298 : vector<8x128xf32>
    %300 = math.exp %299 : vector<8x128xf32>
    %cst_122 = arith.constant 1.000000e+00 : f32
    %301 = vector.broadcast %cst_122 : f32 to vector<8x128xf32>
    %302 = arith.addf %301, %300 : vector<8x128xf32>
    %303 = arith.divf %301, %302 : vector<8x128xf32>
    %304 = arith.mulf %295, %278 : vector<8x128xf32>
    %305 = arith.mulf %289, %297 : vector<8x128xf32>
    %306 = arith.addf %304, %305 : vector<8x128xf32>
    %307 = math.tanh %306 : vector<8x128xf32>
    %308 = arith.mulf %303, %307 : vector<8x128xf32>
    %c8_123 = arith.constant 8 : index
    %c0_124 = arith.constant 0 : index
    %309 = vector.load %arg12[%c8_123, %c0_124] : memref<64x512xf32, #tpu.memory_space<vmem>>, vector<8x512xf32>
    %c1_125 = arith.constant 1 : index
    %c0_126 = arith.constant 0 : index
    %c0_127 = arith.constant 0 : index
    %310 = vector.load %arg4[%c1_125, %c0_126, %c0_127] : memref<2x128x512xf32, #tpu.memory_space<vmem>>, vector<1x128x512xf32>
    %311 = vector.shape_cast %310 : vector<1x128x512xf32> to vector<128x512xf32>
    %cst_128 = arith.constant dense<0.000000e+00> : vector<8x512xf32>
    %312 = tpu.matmul %308, %311, %cst_128 {dimension_numbers = #tpu.dot_dimension_numbers<[1], [0], [0], [1], [0, 0, 1, 1], [], []>} : vector<8x128xf32>, vector<128x512xf32>, vector<8x512xf32> -> vector<8x512xf32>
    %313 = arith.addf %309, %312 : vector<8x512xf32>
    %314 = vector.extract_strided_slice %313 {offsets = [0, 0], sizes = [8, 128], strides = [1, 1]} : vector<8x512xf32> to vector<8x128xf32>
    %315 = arith.negf %314 : vector<8x128xf32>
    %316 = math.exp %315 : vector<8x128xf32>
    %cst_129 = arith.constant 1.000000e+00 : f32
    %317 = vector.broadcast %cst_129 : f32 to vector<8x128xf32>
    %318 = arith.addf %317, %316 : vector<8x128xf32>
    %319 = arith.divf %317, %318 : vector<8x128xf32>
    %320 = vector.extract_strided_slice %313 {offsets = [0, 128], sizes = [8, 128], strides = [1, 1]} : vector<8x512xf32> to vector<8x128xf32>
    %321 = arith.negf %320 : vector<8x128xf32>
    %322 = math.exp %321 : vector<8x128xf32>
    %cst_130 = arith.constant 1.000000e+00 : f32
    %323 = vector.broadcast %cst_130 : f32 to vector<8x128xf32>
    %324 = arith.addf %323, %322 : vector<8x128xf32>
    %325 = arith.divf %323, %324 : vector<8x128xf32>
    %326 = vector.extract_strided_slice %313 {offsets = [0, 256], sizes = [8, 128], strides = [1, 1]} : vector<8x512xf32> to vector<8x128xf32>
    %327 = math.tanh %326 : vector<8x128xf32>
    %328 = vector.extract_strided_slice %313 {offsets = [0, 384], sizes = [8, 128], strides = [1, 1]} : vector<8x512xf32> to vector<8x128xf32>
    %329 = arith.negf %328 : vector<8x128xf32>
    %330 = math.exp %329 : vector<8x128xf32>
    %cst_131 = arith.constant 1.000000e+00 : f32
    %331 = vector.broadcast %cst_131 : f32 to vector<8x128xf32>
    %332 = arith.addf %331, %330 : vector<8x128xf32>
    %333 = arith.divf %331, %332 : vector<8x128xf32>
    %334 = arith.mulf %325, %306 : vector<8x128xf32>
    %335 = arith.mulf %319, %327 : vector<8x128xf32>
    %336 = arith.addf %334, %335 : vector<8x128xf32>
    %337 = math.tanh %336 : vector<8x128xf32>
    %338 = arith.mulf %333, %337 : vector<8x128xf32>
    %c16_132 = arith.constant 16 : index
    %c0_133 = arith.constant 0 : index
    %339 = vector.load %arg12[%c16_132, %c0_133] : memref<64x512xf32, #tpu.memory_space<vmem>>, vector<8x512xf32>
    %c1_134 = arith.constant 1 : index
    %c0_135 = arith.constant 0 : index
    %c0_136 = arith.constant 0 : index
    %340 = vector.load %arg4[%c1_134, %c0_135, %c0_136] : memref<2x128x512xf32, #tpu.memory_space<vmem>>, vector<1x128x512xf32>
    %341 = vector.shape_cast %340 : vector<1x128x512xf32> to vector<128x512xf32>
    %cst_137 = arith.constant dense<0.000000e+00> : vector<8x512xf32>
    %342 = tpu.matmul %338, %341, %cst_137 {dimension_numbers = #tpu.dot_dimension_numbers<[1], [0], [0], [1], [0, 0, 1, 1], [], []>} : vector<8x128xf32>, vector<128x512xf32>, vector<8x512xf32> -> vector<8x512xf32>
    %343 = arith.addf %339, %342 : vector<8x512xf32>
    %344 = vector.extract_strided_slice %343 {offsets = [0, 0], sizes = [8, 128], strides = [1, 1]} : vector<8x512xf32> to vector<8x128xf32>
    %345 = arith.negf %344 : vector<8x128xf32>
    %346 = math.exp %345 : vector<8x128xf32>
    %cst_138 = arith.constant 1.000000e+00 : f32
    %347 = vector.broadcast %cst_138 : f32 to vector<8x128xf32>
    %348 = arith.addf %347, %346 : vector<8x128xf32>
    %349 = arith.divf %347, %348 : vector<8x128xf32>
    %350 = vector.extract_strided_slice %343 {offsets = [0, 128], sizes = [8, 128], strides = [1, 1]} : vector<8x512xf32> to vector<8x128xf32>
    %351 = arith.negf %350 : vector<8x128xf32>
    %352 = math.exp %351 : vector<8x128xf32>
    %cst_139 = arith.constant 1.000000e+00 : f32
    %353 = vector.broadcast %cst_139 : f32 to vector<8x128xf32>
    %354 = arith.addf %353, %352 : vector<8x128xf32>
    %355 = arith.divf %353, %354 : vector<8x128xf32>
    %356 = vector.extract_strided_slice %343 {offsets = [0, 256], sizes = [8, 128], strides = [1, 1]} : vector<8x512xf32> to vector<8x128xf32>
    %357 = math.tanh %356 : vector<8x128xf32>
    %358 = vector.extract_strided_slice %343 {offsets = [0, 384], sizes = [8, 128], strides = [1, 1]} : vector<8x512xf32> to vector<8x128xf32>
    %359 = arith.negf %358 : vector<8x128xf32>
    %360 = math.exp %359 : vector<8x128xf32>
    %cst_140 = arith.constant 1.000000e+00 : f32
    %361 = vector.broadcast %cst_140 : f32 to vector<8x128xf32>
    %362 = arith.addf %361, %360 : vector<8x128xf32>
    %363 = arith.divf %361, %362 : vector<8x128xf32>
    %364 = arith.mulf %355, %336 : vector<8x128xf32>
    %365 = arith.mulf %349, %357 : vector<8x128xf32>
    %366 = arith.addf %364, %365 : vector<8x128xf32>
    %367 = math.tanh %366 : vector<8x128xf32>
    %368 = arith.mulf %363, %367 : vector<8x128xf32>
    %c24_141 = arith.constant 24 : index
    %c0_142 = arith.constant 0 : index
    %369 = vector.load %arg12[%c24_141, %c0_142] : memref<64x512xf32, #tpu.memory_space<vmem>>, vector<8x512xf32>
    %c1_143 = arith.constant 1 : index
    %c0_144 = arith.constant 0 : index
    %c0_145 = arith.constant 0 : index
    %370 = vector.load %arg4[%c1_143, %c0_144, %c0_145] : memref<2x128x512xf32, #tpu.memory_space<vmem>>, vector<1x128x512xf32>
    %371 = vector.shape_cast %370 : vector<1x128x512xf32> to vector<128x512xf32>
    %cst_146 = arith.constant dense<0.000000e+00> : vector<8x512xf32>
    %372 = tpu.matmul %368, %371, %cst_146 {dimension_numbers = #tpu.dot_dimension_numbers<[1], [0], [0], [1], [0, 0, 1, 1], [], []>} : vector<8x128xf32>, vector<128x512xf32>, vector<8x512xf32> -> vector<8x512xf32>
    %373 = arith.addf %369, %372 : vector<8x512xf32>
    %374 = vector.extract_strided_slice %373 {offsets = [0, 0], sizes = [8, 128], strides = [1, 1]} : vector<8x512xf32> to vector<8x128xf32>
    %375 = arith.negf %374 : vector<8x128xf32>
    %376 = math.exp %375 : vector<8x128xf32>
    %cst_147 = arith.constant 1.000000e+00 : f32
    %377 = vector.broadcast %cst_147 : f32 to vector<8x128xf32>
    %378 = arith.addf %377, %376 : vector<8x128xf32>
    %379 = arith.divf %377, %378 : vector<8x128xf32>
    %380 = vector.extract_strided_slice %373 {offsets = [0, 128], sizes = [8, 128], strides = [1, 1]} : vector<8x512xf32> to vector<8x128xf32>
    %381 = arith.negf %380 : vector<8x128xf32>
    %382 = math.exp %381 : vector<8x128xf32>
    %cst_148 = arith.constant 1.000000e+00 : f32
    %383 = vector.broadcast %cst_148 : f32 to vector<8x128xf32>
    %384 = arith.addf %383, %382 : vector<8x128xf32>
    %385 = arith.divf %383, %384 : vector<8x128xf32>
    %386 = vector.extract_strided_slice %373 {offsets = [0, 256], sizes = [8, 128], strides = [1, 1]} : vector<8x512xf32> to vector<8x128xf32>
    %387 = math.tanh %386 : vector<8x128xf32>
    %388 = vector.extract_strided_slice %373 {offsets = [0, 384], sizes = [8, 128], strides = [1, 1]} : vector<8x512xf32> to vector<8x128xf32>
    %389 = arith.negf %388 : vector<8x128xf32>
    %390 = math.exp %389 : vector<8x128xf32>
    %cst_149 = arith.constant 1.000000e+00 : f32
    %391 = vector.broadcast %cst_149 : f32 to vector<8x128xf32>
    %392 = arith.addf %391, %390 : vector<8x128xf32>
    %393 = arith.divf %391, %392 : vector<8x128xf32>
    %394 = arith.mulf %385, %366 : vector<8x128xf32>
    %395 = arith.mulf %379, %387 : vector<8x128xf32>
    %396 = arith.addf %394, %395 : vector<8x128xf32>
    %397 = math.tanh %396 : vector<8x128xf32>
    %398 = arith.mulf %393, %397 : vector<8x128xf32>
    %c32_150 = arith.constant 32 : index
    %c0_151 = arith.constant 0 : index
    %399 = vector.load %arg12[%c32_150, %c0_151] : memref<64x512xf32, #tpu.memory_space<vmem>>, vector<8x512xf32>
    %c1_152 = arith.constant 1 : index
    %c0_153 = arith.constant 0 : index
    %c0_154 = arith.constant 0 : index
    %400 = vector.load %arg4[%c1_152, %c0_153, %c0_154] : memref<2x128x512xf32, #tpu.memory_space<vmem>>, vector<1x128x512xf32>
    %401 = vector.shape_cast %400 : vector<1x128x512xf32> to vector<128x512xf32>
    %cst_155 = arith.constant dense<0.000000e+00> : vector<8x512xf32>
    %402 = tpu.matmul %398, %401, %cst_155 {dimension_numbers = #tpu.dot_dimension_numbers<[1], [0], [0], [1], [0, 0, 1, 1], [], []>} : vector<8x128xf32>, vector<128x512xf32>, vector<8x512xf32> -> vector<8x512xf32>
    %403 = arith.addf %399, %402 : vector<8x512xf32>
    %404 = vector.extract_strided_slice %403 {offsets = [0, 0], sizes = [8, 128], strides = [1, 1]} : vector<8x512xf32> to vector<8x128xf32>
    %405 = arith.negf %404 : vector<8x128xf32>
    %406 = math.exp %405 : vector<8x128xf32>
    %cst_156 = arith.constant 1.000000e+00 : f32
    %407 = vector.broadcast %cst_156 : f32 to vector<8x128xf32>
    %408 = arith.addf %407, %406 : vector<8x128xf32>
    %409 = arith.divf %407, %408 : vector<8x128xf32>
    %410 = vector.extract_strided_slice %403 {offsets = [0, 128], sizes = [8, 128], strides = [1, 1]} : vector<8x512xf32> to vector<8x128xf32>
    %411 = arith.negf %410 : vector<8x128xf32>
    %412 = math.exp %411 : vector<8x128xf32>
    %cst_157 = arith.constant 1.000000e+00 : f32
    %413 = vector.broadcast %cst_157 : f32 to vector<8x128xf32>
    %414 = arith.addf %413, %412 : vector<8x128xf32>
    %415 = arith.divf %413, %414 : vector<8x128xf32>
    %416 = vector.extract_strided_slice %403 {offsets = [0, 256], sizes = [8, 128], strides = [1, 1]} : vector<8x512xf32> to vector<8x128xf32>
    %417 = math.tanh %416 : vector<8x128xf32>
    %418 = vector.extract_strided_slice %403 {offsets = [0, 384], sizes = [8, 128], strides = [1, 1]} : vector<8x512xf32> to vector<8x128xf32>
    %419 = arith.negf %418 : vector<8x128xf32>
    %420 = math.exp %419 : vector<8x128xf32>
    %cst_158 = arith.constant 1.000000e+00 : f32
    %421 = vector.broadcast %cst_158 : f32 to vector<8x128xf32>
    %422 = arith.addf %421, %420 : vector<8x128xf32>
    %423 = arith.divf %421, %422 : vector<8x128xf32>
    %424 = arith.mulf %415, %396 : vector<8x128xf32>
    %425 = arith.mulf %409, %417 : vector<8x128xf32>
    %426 = arith.addf %424, %425 : vector<8x128xf32>
    %427 = math.tanh %426 : vector<8x128xf32>
    %428 = arith.mulf %423, %427 : vector<8x128xf32>
    %c40_159 = arith.constant 40 : index
    %c0_160 = arith.constant 0 : index
    %429 = vector.load %arg12[%c40_159, %c0_160] : memref<64x512xf32, #tpu.memory_space<vmem>>, vector<8x512xf32>
    %c1_161 = arith.constant 1 : index
    %c0_162 = arith.constant 0 : index
    %c0_163 = arith.constant 0 : index
    %430 = vector.load %arg4[%c1_161, %c0_162, %c0_163] : memref<2x128x512xf32, #tpu.memory_space<vmem>>, vector<1x128x512xf32>
    %431 = vector.shape_cast %430 : vector<1x128x512xf32> to vector<128x512xf32>
    %cst_164 = arith.constant dense<0.000000e+00> : vector<8x512xf32>
    %432 = tpu.matmul %428, %431, %cst_164 {dimension_numbers = #tpu.dot_dimension_numbers<[1], [0], [0], [1], [0, 0, 1, 1], [], []>} : vector<8x128xf32>, vector<128x512xf32>, vector<8x512xf32> -> vector<8x512xf32>
    %433 = arith.addf %429, %432 : vector<8x512xf32>
    %434 = vector.extract_strided_slice %433 {offsets = [0, 0], sizes = [8, 128], strides = [1, 1]} : vector<8x512xf32> to vector<8x128xf32>
    %435 = arith.negf %434 : vector<8x128xf32>
    %436 = math.exp %435 : vector<8x128xf32>
    %cst_165 = arith.constant 1.000000e+00 : f32
    %437 = vector.broadcast %cst_165 : f32 to vector<8x128xf32>
    %438 = arith.addf %437, %436 : vector<8x128xf32>
    %439 = arith.divf %437, %438 : vector<8x128xf32>
    %440 = vector.extract_strided_slice %433 {offsets = [0, 128], sizes = [8, 128], strides = [1, 1]} : vector<8x512xf32> to vector<8x128xf32>
    %441 = arith.negf %440 : vector<8x128xf32>
    %442 = math.exp %441 : vector<8x128xf32>
    %cst_166 = arith.constant 1.000000e+00 : f32
    %443 = vector.broadcast %cst_166 : f32 to vector<8x128xf32>
    %444 = arith.addf %443, %442 : vector<8x128xf32>
    %445 = arith.divf %443, %444 : vector<8x128xf32>
    %446 = vector.extract_strided_slice %433 {offsets = [0, 256], sizes = [8, 128], strides = [1, 1]} : vector<8x512xf32> to vector<8x128xf32>
    %447 = math.tanh %446 : vector<8x128xf32>
    %448 = vector.extract_strided_slice %433 {offsets = [0, 384], sizes = [8, 128], strides = [1, 1]} : vector<8x512xf32> to vector<8x128xf32>
    %449 = arith.negf %448 : vector<8x128xf32>
    %450 = math.exp %449 : vector<8x128xf32>
    %cst_167 = arith.constant 1.000000e+00 : f32
    %451 = vector.broadcast %cst_167 : f32 to vector<8x128xf32>
    %452 = arith.addf %451, %450 : vector<8x128xf32>
    %453 = arith.divf %451, %452 : vector<8x128xf32>
    %454 = arith.mulf %445, %426 : vector<8x128xf32>
    %455 = arith.mulf %439, %447 : vector<8x128xf32>
    %456 = arith.addf %454, %455 : vector<8x128xf32>
    %457 = math.tanh %456 : vector<8x128xf32>
    %458 = arith.mulf %453, %457 : vector<8x128xf32>
    %c48_168 = arith.constant 48 : index
    %c0_169 = arith.constant 0 : index
    %459 = vector.load %arg12[%c48_168, %c0_169] : memref<64x512xf32, #tpu.memory_space<vmem>>, vector<8x512xf32>
    %c1_170 = arith.constant 1 : index
    %c0_171 = arith.constant 0 : index
    %c0_172 = arith.constant 0 : index
    %460 = vector.load %arg4[%c1_170, %c0_171, %c0_172] : memref<2x128x512xf32, #tpu.memory_space<vmem>>, vector<1x128x512xf32>
    %461 = vector.shape_cast %460 : vector<1x128x512xf32> to vector<128x512xf32>
    %cst_173 = arith.constant dense<0.000000e+00> : vector<8x512xf32>
    %462 = tpu.matmul %458, %461, %cst_173 {dimension_numbers = #tpu.dot_dimension_numbers<[1], [0], [0], [1], [0, 0, 1, 1], [], []>} : vector<8x128xf32>, vector<128x512xf32>, vector<8x512xf32> -> vector<8x512xf32>
    %463 = arith.addf %459, %462 : vector<8x512xf32>
    %464 = vector.extract_strided_slice %463 {offsets = [0, 0], sizes = [8, 128], strides = [1, 1]} : vector<8x512xf32> to vector<8x128xf32>
    %465 = arith.negf %464 : vector<8x128xf32>
    %466 = math.exp %465 : vector<8x128xf32>
    %cst_174 = arith.constant 1.000000e+00 : f32
    %467 = vector.broadcast %cst_174 : f32 to vector<8x128xf32>
    %468 = arith.addf %467, %466 : vector<8x128xf32>
    %469 = arith.divf %467, %468 : vector<8x128xf32>
    %470 = vector.extract_strided_slice %463 {offsets = [0, 128], sizes = [8, 128], strides = [1, 1]} : vector<8x512xf32> to vector<8x128xf32>
    %471 = arith.negf %470 : vector<8x128xf32>
    %472 = math.exp %471 : vector<8x128xf32>
    %cst_175 = arith.constant 1.000000e+00 : f32
    %473 = vector.broadcast %cst_175 : f32 to vector<8x128xf32>
    %474 = arith.addf %473, %472 : vector<8x128xf32>
    %475 = arith.divf %473, %474 : vector<8x128xf32>
    %476 = vector.extract_strided_slice %463 {offsets = [0, 256], sizes = [8, 128], strides = [1, 1]} : vector<8x512xf32> to vector<8x128xf32>
    %477 = math.tanh %476 : vector<8x128xf32>
    %478 = vector.extract_strided_slice %463 {offsets = [0, 384], sizes = [8, 128], strides = [1, 1]} : vector<8x512xf32> to vector<8x128xf32>
    %479 = arith.negf %478 : vector<8x128xf32>
    %480 = math.exp %479 : vector<8x128xf32>
    %cst_176 = arith.constant 1.000000e+00 : f32
    %481 = vector.broadcast %cst_176 : f32 to vector<8x128xf32>
    %482 = arith.addf %481, %480 : vector<8x128xf32>
    %483 = arith.divf %481, %482 : vector<8x128xf32>
    %484 = arith.mulf %475, %456 : vector<8x128xf32>
    %485 = arith.mulf %469, %477 : vector<8x128xf32>
    %486 = arith.addf %484, %485 : vector<8x128xf32>
    %487 = math.tanh %486 : vector<8x128xf32>
    %488 = arith.mulf %483, %487 : vector<8x128xf32>
    %c56_177 = arith.constant 56 : index
    %c0_178 = arith.constant 0 : index
    %489 = vector.load %arg12[%c56_177, %c0_178] : memref<64x512xf32, #tpu.memory_space<vmem>>, vector<8x512xf32>
    %c1_179 = arith.constant 1 : index
    %c0_180 = arith.constant 0 : index
    %c0_181 = arith.constant 0 : index
    %490 = vector.load %arg4[%c1_179, %c0_180, %c0_181] : memref<2x128x512xf32, #tpu.memory_space<vmem>>, vector<1x128x512xf32>
    %491 = vector.shape_cast %490 : vector<1x128x512xf32> to vector<128x512xf32>
    %cst_182 = arith.constant dense<0.000000e+00> : vector<8x512xf32>
    %492 = tpu.matmul %488, %491, %cst_182 {dimension_numbers = #tpu.dot_dimension_numbers<[1], [0], [0], [1], [0, 0, 1, 1], [], []>} : vector<8x128xf32>, vector<128x512xf32>, vector<8x512xf32> -> vector<8x512xf32>
    %493 = arith.addf %489, %492 : vector<8x512xf32>
    %494 = vector.extract_strided_slice %493 {offsets = [0, 0], sizes = [8, 128], strides = [1, 1]} : vector<8x512xf32> to vector<8x128xf32>
    %495 = arith.negf %494 : vector<8x128xf32>
    %496 = math.exp %495 : vector<8x128xf32>
    %cst_183 = arith.constant 1.000000e+00 : f32
    %497 = vector.broadcast %cst_183 : f32 to vector<8x128xf32>
    %498 = arith.addf %497, %496 : vector<8x128xf32>
    %499 = arith.divf %497, %498 : vector<8x128xf32>
    %500 = vector.extract_strided_slice %493 {offsets = [0, 128], sizes = [8, 128], strides = [1, 1]} : vector<8x512xf32> to vector<8x128xf32>
    %501 = arith.negf %500 : vector<8x128xf32>
    %502 = math.exp %501 : vector<8x128xf32>
    %cst_184 = arith.constant 1.000000e+00 : f32
    %503 = vector.broadcast %cst_184 : f32 to vector<8x128xf32>
    %504 = arith.addf %503, %502 : vector<8x128xf32>
    %505 = arith.divf %503, %504 : vector<8x128xf32>
    %506 = vector.extract_strided_slice %493 {offsets = [0, 256], sizes = [8, 128], strides = [1, 1]} : vector<8x512xf32> to vector<8x128xf32>
    %507 = math.tanh %506 : vector<8x128xf32>
    %508 = vector.extract_strided_slice %493 {offsets = [0, 384], sizes = [8, 128], strides = [1, 1]} : vector<8x512xf32> to vector<8x128xf32>
    %509 = arith.negf %508 : vector<8x128xf32>
    %510 = math.exp %509 : vector<8x128xf32>
    %cst_185 = arith.constant 1.000000e+00 : f32
    %511 = vector.broadcast %cst_185 : f32 to vector<8x128xf32>
    %512 = arith.addf %511, %510 : vector<8x128xf32>
    %513 = arith.divf %511, %512 : vector<8x128xf32>
    %514 = arith.mulf %505, %486 : vector<8x128xf32>
    %515 = arith.mulf %499, %507 : vector<8x128xf32>
    %516 = arith.addf %514, %515 : vector<8x128xf32>
    %517 = math.tanh %516 : vector<8x128xf32>
    %518 = arith.mulf %513, %517 : vector<8x128xf32>
    %c0_186 = arith.constant 0 : index
    %c0_187 = arith.constant 0 : index
    %519 = vector.load %arg6[%c0_186, %c0_187] : memref<128x64xf32, #tpu.memory_space<vmem>>, vector<128x64xf32>
    %cst_188 = arith.constant dense<0.000000e+00> : vector<8x64xf32>
    %520 = tpu.matmul %518, %519, %cst_188 {dimension_numbers = #tpu.dot_dimension_numbers<[1], [0], [0], [1], [0, 0, 1, 1], [], []>} : vector<8x128xf32>, vector<128x64xf32>, vector<8x64xf32> -> vector<8x64xf32>
    %c0_189 = arith.constant 0 : index
    %c0_190 = arith.constant 0 : index
    %521 = vector.load %arg7[%c0_189, %c0_190] : memref<1x64xf32, #tpu.memory_space<vmem>>, vector<1x64xf32>
    %522 = vector.broadcast %521 : vector<1x64xf32> to vector<8x64xf32>
    %523 = arith.addf %520, %522 : vector<8x64xf32>
    %cst_191 = arith.constant 0.000000e+00 : f32
    %524 = vector.broadcast %cst_191 : f32 to vector<8x64xf32>
    %525 = arith.maximumf %523, %524 : vector<8x64xf32>
    %c0_192 = arith.constant 0 : index
    %c0_193 = arith.constant 0 : index
    %526 = vector.load %arg8[%c0_192, %c0_193] : memref<64x4xf32, #tpu.memory_space<vmem>>, vector<64x4xf32>
    %cst_194 = arith.constant dense<0.000000e+00> : vector<8x4xf32>
    %527 = tpu.matmul %525, %526, %cst_194 {dimension_numbers = #tpu.dot_dimension_numbers<[1], [0], [0], [1], [0, 0, 1, 1], [], []>} : vector<8x64xf32>, vector<64x4xf32>, vector<8x4xf32> -> vector<8x4xf32>
    %c0_195 = arith.constant 0 : index
    %c0_196 = arith.constant 0 : index
    %528 = vector.load %arg9[%c0_195, %c0_196] : memref<1x4xf32, #tpu.memory_space<vmem>>, vector<1x4xf32>
    %529 = vector.broadcast %528 : vector<1x4xf32> to vector<8x4xf32>
    %530 = arith.addf %527, %529 : vector<8x4xf32>
    %c0_197 = arith.constant 0 : index
    %c0_198 = arith.constant 0 : index
    %531 = vector.load %arg10[%c0_197, %c0_198] : memref<8x4xf32, #tpu.memory_space<vmem>>, vector<8x4xf32>
    tpu.vector_store %arg10[%c0_197, %c0_198], %530 {strides = array<i32>} : memref<8x4xf32, #tpu.memory_space<vmem>>, vector<8x4xf32>,
    return
  }
}

</mosaic_0001>

<bundles_post_ra>
// kernel: lstm_forward.1
= control target key start
LH: loop header
LB: loop body
LE: loop exit
PB: predicated region body
PF: predicated region fallthrough
CT: control target
= control target key end

     0   :  { %vm52_vm0 = vcmask 130048   ;;  %vm6338_vm1 = vmmov 0   ;;  %vm4382_vm2 = vcmask 523264   ;;  %vm4456_vm3 = vcmask 31744   ;;  %s8527_s1 = inlined_call_operand.vmem [shape: f32[16,128], index: 1, kind: input, shape index: {}]   ;;  %s8528_s0 = inlined_call_operand.vmem [shape: f32[64,16], index: 0, kind: input, shape index: {}]   ;;  %s8529_s3 = inlined_call_operand.vmem [shape: f32[2,128,512], index: 3, kind: input, shape index: {}]   ;;  %s8530_s4 = inlined_call_operand.vmem [shape: f32[2,128,512], index: 4, kind: input, shape index: {}]   ;;  %s8531_s2 = inlined_call_operand.vmem [shape: f32[1,128], index: 2, kind: input, shape index: {}]   ;;  %s8532_s5 = inlined_call_operand.vmem [shape: f32[2,1,512], index: 5, kind: input, shape index: {}]   ;;  %s8533_s6 = inlined_call_operand.vmem [shape: f32[128,64], index: 6, kind: input, shape index: {}]   ;;  %s8534_s8 = inlined_call_operand.vmem [shape: f32[64,4], index: 8, kind: input, shape index: {}]   ;;  %s8535_s7 = inlined_call_operand.vmem [shape: f32[1,64], index: 7, kind: input, shape index: {}]   ;;  %s8536_s9 = inlined_call_operand.vmem [shape: f32[1,4], index: 9, kind: input, shape index: {}]   ;;  %s8537_s10 = inlined_call_operand.vmem [shape: f32[8,4], index: 10, kind: output, shape index: {}]  }
   0x1   :  { %v43_v0 = vld [vmem:[%s8527_s1] sm:$0xff]  ;;  %v44_v1 = vld [vmem:[%s8527_s1 + $0x8] sm:$0xff]  ;;  %v37_v5 = vld [vmem:[%s8528_s0 + $0x10] sm:$0xff] }
   0x2   :  { %v35_v2 = vld [vmem:[%s8528_s0] sm:$0xff]  ;;  %v4757_v3 = vpack.c.bf16 %v44_v1, %v43_v0  ;;  %v36_v4 = vld [vmem:[%s8528_s0 + $0x8] sm:$0xff]  ;;  %v209_v11 = vld [vmem:[%s8529_s3 + $0x18] sm:$0xff] }
   0x3   :  { %4691 = vmatprep.mubr.msk.f32.mxu0 %vm52_vm0, %v35_v2  ;;  %v207_v6 = vld [vmem:[%s8529_s3 + $0x8] sm:$0xff]  ;;  %v206_v9 = vld [vmem:[%s8529_s3] sm:$0xff]  ;;  %v213_v13 = vld [vmem:[%s8529_s3 + $0x38] sm:$0xff] }
   0x4   :  { %4758 = vmatprep.subr.bf16.mxu0 %v4757_v3  ;;  %v211_v7 = vld [vmem:[%s8529_s3 + $0x28] sm:$0xff]  ;;  %v210_v10 = vld [vmem:[%s8529_s3 + $0x20] sm:$0xff]  ;;  %v208_v14 = vld [vmem:[%s8529_s3 + $0x10] sm:$0xff]  ;;  %v4793_v17 = vpack.c.bf16 %v213_v13, %v209_v11 }
   0x5   :  { %4760 = vmatpush3.bf16.msra.mxu0 %v4757_v3  ;;  %v4761_v8 = vpack.c.bf16 %v211_v7, %v207_v6  ;;  %v4763_v12 = vpack.c.bf16 %v210_v10, %v206_v9  ;;  %v212_v15 = vld [vmem:[%s8529_s3 + $0x30] sm:$0xff]  ;;  %v38_v16 = vld [vmem:[%s8528_s0 + $0x18] sm:$0xff]  ;;  %v215_v19 = vld [vmem:[%s8529_s3 + $0x48] sm:$0xff] }
   0x6   :  { %v4795_v18 = vpack.c.bf16 %v212_v15, %v208_v14  ;;  %v219_v20 = vld [vmem:[%s8529_s3 + $0x68] sm:$0xff]  ;;  %v214_v21 = vld [vmem:[%s8529_s3 + $0x40] sm:$0xff]  ;;  %v217_v25 = vld [vmem:[%s8529_s3 + $0x58] sm:$0xff]  ;;  %4794 = vmatprep.subr.bf16.mxu0 %v4793_v17 }
   0x7   :  { %4762 = vmatprep.subr.bf16.mxu1 %v4761_v8  ;;  %v39_v22 = vld [vmem:[%s8528_s0 + $0x20] sm:$0xff]  ;;  %v4765_v23 = vpack.c.bf16 %v219_v20, %v215_v19  ;;  %v221_v26 = vld [vmem:[%s8529_s3 + $0x78] sm:$0xff]  ;;  %v216_v29 = vld [vmem:[%s8529_s3 + $0x50] sm:$0xff] }
   0x8   :  { %4692 = vmatmul.mubr.msk.f32.vlgmr.msra.gmra.mrb[0].mxu0 %vm52_vm0, %v36_v4  ;;  %4764 = vmatpush1.bf16.msra.mxu1 %v4763_v12  ;;  %v218_v24 = vld [vmem:[%s8529_s3 + $0x60] sm:$0xff]  ;;  %v4797_v28 = vpack.c.bf16 %v221_v26, %v217_v25  ;;  %v220_v30 = vld [vmem:[%s8529_s3 + $0x70] sm:$0xff]  ;;  %v223_v31 = vld [vmem:[%s8529_s3 + $0x88] sm:$0xff] }
   0x9   :  { %4694 = vmatprep.mubr.msk.f32.mxu0 %vm52_vm0, %v37_v5  ;;  %v4767_v27 = vpack.c.bf16 %v218_v24, %v214_v21  ;;  %4796 = vmatpush1.bf16.msra.mxu0 %v4795_v18  ;;  %v4799_v32 = vpack.c.bf16 %v220_v30, %v216_v29  ;;  %v227_v33 = vld [vmem:[%s8529_s3 + $0xa8] sm:$0xff]  ;;  %v222_v34 = vld [vmem:[%s8529_s3 + $0x80] sm:$0xff]  ;;  %v225_v38 = vld [vmem:[%s8529_s3 + $0x98] sm:$0xff] }
   0xa   :  { %4766 = vmatprep.subr.bf16.mxu1 %v4765_v23  ;;  %v226_v35 = vld [vmem:[%s8529_s3 + $0xa0] sm:$0xff]  ;;  %v40_v36 = vld [vmem:[%s8528_s0 + $0x28] sm:$0xff]  ;;  %4798 = vmatprep.subr.bf16.mxu0 %v4797_v28  ;;  %v4769_v37 = vpack.c.bf16 %v227_v33, %v223_v31  ;;  %v229_v39 = vld [vmem:[%s8529_s3 + $0xb8] sm:$0xff] }
   0xb   :  { %v224_v40 = vld [vmem:[%s8529_s3 + $0x90] sm:$0xff]  ;;  %v4771_v41 = vpack.c.bf16 %v226_v35, %v222_v34  ;;  %v4801_v42 = vpack.c.bf16 %v229_v39, %v225_v38  ;;  %v231_v44 = vld [vmem:[%s8529_s3 + $0xc8] sm:$0xff]  ;;  %v230_v47 = vld [vmem:[%s8529_s3 + $0xc0] sm:$0xff] }
   0xc   :  { %4695 = vmatmul.mubr.msk.f32.gmra.mrb[2].mxu0 %vm52_vm0, %v38_v16  ;;  %4768 = vmatpush1.bf16.msra.mxu1 %v4767_v27  ;;  %v228_v43 = vld [vmem:[%s8529_s3 + $0xb0] sm:$0xff]  ;;  %v235_v45 = vld [vmem:[%s8529_s3 + $0xe8] sm:$0xff]  ;;  %v234_v48 = vld [vmem:[%s8529_s3 + $0xe0] sm:$0xff] }
   0xd   :  { %4697 = vmatprep.mubr.msk.f32.mxu0 %vm52_vm0, %v39_v22  ;;  %4770 = vmatprep.subr.bf16.mxu1 %v4769_v37  ;;  %v4773_v46 = vpack.c.bf16 %v235_v45, %v231_v44  ;;  %v233_v49 = vld [vmem:[%s8529_s3 + $0xd8] sm:$0xff]  ;;  %v41_v50 = vld [vmem:[%s8528_s0 + $0x30] sm:$0xff]  ;;  %v4803_v51 = vpack.c.bf16 %v228_v43, %v224_v40  ;;  %v239_v56 = vld [vmem:[%s8529_s3 + $0x108] sm:$0xff]  ;;  %v4775_v58 = vpack.c.bf16 %v234_v48, %v230_v47  ;;  %v6336_v48 = vmov 0.0  }
   0xe   :  { %4800 = vmatpush1.bf16.msra.mxu0 %v4799_v32  ;;  %v237_v52 = vld [vmem:[%s8529_s3 + $0xf8] sm:$0xff]  ;;  %v232_v53 = vld [vmem:[%s8529_s3 + $0xd0] sm:$0xff]  ;;  %v243_v57 = vld [vmem:[%s8529_s3 + $0x128] sm:$0xff]  ;;  %356 = vmatprep.mubr.f32.mxu1 %v6336_v48 }
   0xf   :  { %4802 = vmatprep.subr.bf16.mxu0 %v4801_v42  ;;  %v4805_v54 = vpack.c.bf16 %v237_v52, %v233_v49  ;;  %v236_v55 = vld [vmem:[%s8529_s3 + $0xf0] sm:$0xff]  ;;  %v241_v59 = vld [vmem:[%s8529_s3 + $0x118] sm:$0xff]  ;;  %v4777_v62 = vpack.c.bf16 %v243_v57, %v239_v56  ;;  %v238_v63 = vld [vmem:[%s8529_s3 + $0x100] sm:$0xff] }
  0x10   :  { %4698 = vmatmul.mubr.msk.f32.gmra.mrb[4].mxu0 %vm52_vm0, %v40_v36  ;;  %4772 = vmatpush1.bf16.msra.mxu1 %v4771_v41  ;;  %v245_v60 = vld [vmem:[%s8529_s3 + $0x138] sm:$0xff]  ;;  %v242_v0 = vld [vmem:[%s8529_s3 + $0x120] sm:$0xff]  ;;  %v4807_v1 = vpack.c.bf16 %v236_v55, %v232_v53  ;;  %v247_v2 = vld [vmem:[%s8529_s3 + $0x148] sm:$0xff] }
  0x11   :  { %4700 = vmatprep.mubr.msk.f32.mxu0 %vm52_vm0, %v41_v50  ;;  %v42_v61 = vld [vmem:[%s8528_s0 + $0x38] sm:$0xff]  ;;  %4774 = vmatprep.subr.bf16.mxu1 %v4773_v46  ;;  %v251_v3 = vld [vmem:[%s8529_s3 + $0x168] sm:$0xff]  ;;  %v4809_v4 = vpack.c.bf16 %v245_v60, %v241_v59  ;;  %v240_v5 = vld [vmem:[%s8529_s3 + $0x110] sm:$0xff]  ;;  %v4779_v7 = vpack.c.bf16 %v242_v0, %v238_v63 }
  0x12   :  { %4804 = vmatpush1.bf16.msra.mxu0 %v4803_v51  ;;  %v244_v6 = vld [vmem:[%s8529_s3 + $0x130] sm:$0xff]  ;;  %v249_v8 = vld [vmem:[%s8529_s3 + $0x158] sm:$0xff]  ;;  %v4781_v10 = vpack.c.bf16 %v251_v3, %v247_v2  ;;  %v246_v11 = vld [vmem:[%s8529_s3 + $0x140] sm:$0xff] }
  0x13   :  { %4806 = vmatprep.subr.bf16.mxu0 %v4805_v54  ;;  %v253_v9 = vld [vmem:[%s8529_s3 + $0x178] sm:$0xff]  ;;  %v250_v12 = vld [vmem:[%s8529_s3 + $0x160] sm:$0xff]  ;;  %v4811_v13 = vpack.c.bf16 %v244_v6, %v240_v5  ;;  %v255_v14 = vld [vmem:[%s8529_s3 + $0x188] sm:$0xff] }
  0x14   :  { %4701 = vmatmul.mubr.msk.f32.gmra.mrb[6].mxu0 %vm52_vm0, %v42_v61  ;;  %4776 = vmatpush1.bf16.msra.mxu1 %v4775_v58  ;;  %v259_v15 = vld [vmem:[%s8529_s3 + $0x1a8] sm:$0xff]  ;;  %v4813_v16 = vpack.c.bf16 %v253_v9, %v249_v8  ;;  %v248_v17 = vld [vmem:[%s8529_s3 + $0x150] sm:$0xff]  ;;  %v4783_v19 = vpack.c.bf16 %v250_v12, %v246_v11  ;;  %v257_v20 = vld [vmem:[%s8529_s3 + $0x198] sm:$0xff] }
  0x15   :  { %4778 = vmatprep.subr.bf16.mxu1 %v4777_v62  ;;  %v252_v18 = vld [vmem:[%s8529_s3 + $0x170] sm:$0xff]  ;;  %v261_v21 = vld [vmem:[%s8529_s3 + $0x1b8] sm:$0xff]  ;;  %v4785_v22 = vpack.c.bf16 %v259_v15, %v255_v14  ;;  %v254_v23 = vld [vmem:[%s8529_s3 + $0x180] sm:$0xff]  ;;  %469 = vmatprep.mubr.f32.mxu0 %v6336_v48 }
  0x16   :  { %4808 = vmatpush1.bf16.msra.mxu0 %v4807_v1  ;;  %v258_v24 = vld [vmem:[%s8529_s3 + $0x1a0] sm:$0xff]  ;;  %v4815_v25 = vpack.c.bf16 %v252_v18, %v248_v17  ;;  %v4817_v26 = vpack.c.bf16 %v261_v21, %v257_v20  ;;  %v256_v27 = vld [vmem:[%s8529_s3 + $0x190] sm:$0xff]  ;;  %v263_v31 = vld [vmem:[%s8529_s3 + $0x1c8] sm:$0xff] }
  0x17   :  { %4810 = vmatprep.subr.bf16.mxu0 %v4809_v4  ;;  %v260_v28 = vld [vmem:[%s8529_s3 + $0x1b0] sm:$0xff]  ;;  %v4787_v29 = vpack.c.bf16 %v258_v24, %v254_v23  ;;  %v267_v32 = vld [vmem:[%s8529_s3 + $0x1e8] sm:$0xff]  ;;  %v265_v33 = vld [vmem:[%s8529_s3 + $0x1d8] sm:$0xff] }
  0x18   :  { %4780 = vmatpush1.bf16.msra.mxu1 %v4779_v7  ;;  %v4819_v30 = vpack.c.bf16 %v260_v28, %v256_v27  ;;  %v4789_v34 = vpack.c.bf16 %v267_v32, %v263_v31  ;;  %v262_v35 = vld [vmem:[%s8529_s3 + $0x1c0] sm:$0xff]  ;;  %v269_v38 = vld [vmem:[%s8529_s3 + $0x1f8] sm:$0xff]  ;;  %v264_v39 = vld [vmem:[%s8529_s3 + $0x1d0] sm:$0xff] }
  0x19   :  { %4782 = vmatprep.subr.bf16.mxu1 %v4781_v10  ;;  %v266_v36 = vld [vmem:[%s8529_s3 + $0x1e0] sm:$0xff]  ;;  %v268_v40 = vld [vmem:[%s8529_s3 + $0x1f0] sm:$0xff]  ;;  %v4821_v41 = vpack.c.bf16 %v269_v38, %v265_v33  ;;  %v555_v43 = vld [vmem:[%s8530_s4 + $0x8] sm:$0xff] }
  0x1a   :  { %4812 = vmatpush1.bf16.msra.mxu0 %v4811_v13  ;;  %v4791_v37 = vpack.c.bf16 %v266_v36, %v262_v35  ;;  %v4823_v42 = vpack.c.bf16 %v268_v40, %v264_v39  ;;  %v559_v44 = vld [vmem:[%s8530_s4 + $0x28] sm:$0xff]  ;;  %v557_v45 = vld [vmem:[%s8530_s4 + $0x18] sm:$0xff]  ;;  %v6647_v50 = vld [vmem:[%s8531_s2] ss:$0 sm:$0xff] }
  0x1b   :  { %4814 = vmatprep.subr.bf16.mxu0 %v4813_v16  ;;  %v6633_v46 = vpack.c.bf16 %v559_v44, %v555_v43  ;;  %v561_v47 = vld [vmem:[%s8530_s4 + $0x38] sm:$0xff]  ;;  %v554_v51 = vld [vmem:[%s8530_s4] sm:$0xff]  ;;  %v556_v54 = vld [vmem:[%s8530_s4 + $0x10] sm:$0xff] }
  0x1c   :  { %4784 = vmatpush1.bf16.msra.mxu1 %v4783_v19  ;;  %v6639_v49 = vpack.c.bf16 %v561_v47, %v557_v45  ;;  %v558_v53 = vld [vmem:[%s8530_s4 + $0x20] sm:$0xff]  ;;  %v560_v55 = vld [vmem:[%s8530_s4 + $0x30] sm:$0xff]  ;;  %v563_v57 = vld [vmem:[%s8530_s4 + $0x48] sm:$0xff] }
  0x1d   :  { %4786 = vmatprep.subr.bf16.mxu1 %v4785_v22  ;;  %v567_v59 = vld [vmem:[%s8530_s4 + $0x68] sm:$0xff]  ;;  %v565_v60 = vld [vmem:[%s8530_s4 + $0x58] sm:$0xff]  ;;  %v6674_v62 = vpack.c.bf16 %v558_v53, %v554_v51  ;;  %v6676_v63 = vpack.c.bf16 %v560_v55, %v556_v54  ;;  %v562_v0 = vld [vmem:[%s8530_s4 + $0x40] sm:$0xff] }
  0x1e   :  { %4816 = vmatpush1.bf16.msra.mxu0 %v4815_v25  ;;  %v569_v61 = vld [vmem:[%s8530_s4 + $0x78] sm:$0xff]  ;;  %v566_v4 = vld [vmem:[%s8530_s4 + $0x60] sm:$0xff]  ;;  %v564_v5 = vld [vmem:[%s8530_s4 + $0x50] sm:$0xff]  ;;  %v6691_v8 = vpack.c.bf16 %v567_v59, %v563_v57 }
  0x1f   :  { %4818 = vmatprep.subr.bf16.mxu0 %v4817_v26  ;;  %v568_v6 = vld [vmem:[%s8530_s4 + $0x70] sm:$0xff]  ;;  %v6693_v9 = vpack.c.bf16 %v569_v61, %v565_v60  ;;  %v571_v10 = vld [vmem:[%s8530_s4 + $0x88] sm:$0xff]  ;;  %v573_v13 = vld [vmem:[%s8530_s4 + $0x98] sm:$0xff]  ;;  %v6710_v15 = vpack.c.bf16 %v566_v4, %v562_v0 }
  0x20   :  { %4788 = vmatpush1.bf16.msra.mxu1 %v4787_v29  ;;  %v575_v12 = vld [vmem:[%s8530_s4 + $0xa8] sm:$0xff]  ;;  %v577_v14 = vld [vmem:[%s8530_s4 + $0xb8] sm:$0xff]  ;;  %v6712_v16 = vpack.c.bf16 %v568_v6, %v564_v5  ;;  %v570_v17 = vld [vmem:[%s8530_s4 + $0x80] sm:$0xff] }
  0x21   :  { %4790 = vmatprep.subr.bf16.mxu1 %v4789_v34  ;;  %v574_v19 = vld [vmem:[%s8530_s4 + $0xa0] sm:$0xff]  ;;  %v572_v21 = vld [vmem:[%s8530_s4 + $0x90] sm:$0xff]  ;;  %v6732_v23 = vpack.c.bf16 %v575_v12, %v571_v10  ;;  %v6734_v24 = vpack.c.bf16 %v577_v14, %v573_v13  ;;  %v579_v26 = vld [vmem:[%s8530_s4 + $0xc8] sm:$0xff] }
  0x22   :  { %4820 = vmatpush1.bf16.msra.mxu0 %v4819_v30  ;;  %v576_v22 = vld [vmem:[%s8530_s4 + $0xb0] sm:$0xff]  ;;  %v583_v28 = vld [vmem:[%s8530_s4 + $0xe8] sm:$0xff]  ;;  %v581_v29 = vld [vmem:[%s8530_s4 + $0xd8] sm:$0xff]  ;;  %v6750_v31 = vpack.c.bf16 %v574_v19, %v570_v17 }
  0x23   :  { %4822 = vmatprep.subr.bf16.mxu0 %v4821_v41  ;;  %v585_v30 = vld [vmem:[%s8530_s4 + $0xf8] sm:$0xff]  ;;  %v6752_v32 = vpack.c.bf16 %v576_v22, %v572_v21  ;;  %v578_v33 = vld [vmem:[%s8530_s4 + $0xc0] sm:$0xff]  ;;  %v580_v36 = vld [vmem:[%s8530_s4 + $0xd0] sm:$0xff]  ;;  %v6773_v39 = vpack.c.bf16 %v583_v28, %v579_v26 }
  0x24   :  { %4792 = vmatpush1.bf16.msra.mxu1 %v4791_v37  ;;  %v582_v35 = vld [vmem:[%s8530_s4 + $0xe0] sm:$0xff]  ;;  %v584_v37 = vld [vmem:[%s8530_s4 + $0xf0] sm:$0xff]  ;;  %v6775_v40 = vpack.c.bf16 %v585_v30, %v581_v29  ;;  %v587_v41 = vld [vmem:[%s8530_s4 + $0x108] sm:$0xff] }
  0x25   :  { %4826 = vmatprep.subr.bf16.mxu1 %v6633_v46  ;;  %v591_v44 = vld [vmem:[%s8530_s4 + $0x128] sm:$0xff]  ;;  %v589_v45 = vld [vmem:[%s8530_s4 + $0x118] sm:$0xff]  ;;  %v6792_v51 = vpack.c.bf16 %v582_v35, %v578_v33  ;;  %v586_v53 = vld [vmem:[%s8530_s4 + $0x100] sm:$0xff] }
  0x26   :  { %4824 = vmatpush1.bf16.msra.mxu0 %v4823_v42  ;;  %v593_v47 = vld [vmem:[%s8530_s4 + $0x138] sm:$0xff]  ;;  %v590_v55 = vld [vmem:[%s8530_s4 + $0x120] sm:$0xff]  ;;  %v592_v57 = vld [vmem:[%s8530_s4 + $0x130] sm:$0xff] }
  0x27   :  { %4858 = vmatprep.subr.bf16.mxu0 %v6639_v49  ;;  %v6814_v59 = vpack.c.bf16 %v593_v47, %v589_v45  ;;  %v595_v60 = vld [vmem:[%s8530_s4 + $0x148] sm:$0xff]  ;;  %v594_v5 = vld [vmem:[%s8530_s4 + $0x140] sm:$0xff]  ;;  %v596_v10 = vld [vmem:[%s8530_s4 + $0x150] sm:$0xff] }
  0x28   :  { %v599_v0 = vld [vmem:[%s8530_s4 + $0x168] sm:$0xff]  ;;  %v605_v19 = vld [vmem:[%s8530_s4 + $0x198] sm:$0xff]  ;;  %v604_v28 = vld [vmem:[%s8530_s4 + $0x190] sm:$0xff] }
  0x29   :  { %v6852_v12 = vpack.c.bf16 %v599_v0, %v595_v60  ;;  %v603_v14 = vld [vmem:[%s8530_s4 + $0x188] sm:$0xff]  ;;  %v608_v29 = vld [vmem:[%s8530_s4 + $0x1b0] sm:$0xff]  ;;  %v614_v47 = vld [vmem:[%s8530_s4 + $0x1e0] sm:$0xff]  ;;  %v272_v60 = vlaneseq }
  0xdb   :  { %v4693_v52 = vpop.f32.mrb[0].mxu0 }
  0xdc   :  { %v143_v56 = vpop.f32.mrb[1].mxu0  ;;  %v149_v1 = vadd.f32 %v4693_v52, %v6647_v50  ;;  %v6794_v52 = vpack.c.bf16 %v584_v37, %v580_v36  ;;  %v615_v36 = vld [vmem:[%s8530_s4 + $0x1e8] sm:$0xff]  ;;  %v613_v37 = vld [vmem:[%s8530_s4 + $0x1d8] sm:$0xff] }
  0xdd   :  { %v144_v58 = vadd.f32 %v6647_v50, %v143_v56  ;;  %v588_v56 = vld [vmem:[%s8530_s4 + $0x110] sm:$0xff] }
  0xde   :  { %v183_v18 = vmax.f32 %v149_v1, 0.0  ;;  %v597_v1 = vld [vmem:[%s8530_s4 + $0x158] sm:$0xff]  ;;  %v6832_v4 = vpack.c.bf16 %v592_v57, %v588_v56 }
  0xdf   :  { %v182_v2 = vmax.f32 %v144_v58, 0.0  ;;  %v4696_v3 = vpop.f32.mrb[2].mxu0  ;;  %v6812_v58 = vpack.c.bf16 %v591_v44, %v587_v41  ;;  %v617_v41 = vld [vmem:[%s8530_s4 + $0x1f8] sm:$0xff]  ;;  %v610_v44 = vld [vmem:[%s8530_s4 + $0x1c0] sm:$0xff] }
  0xe0   :  { %v153_v7 = vpop.f32.mrb[3].mxu0  ;;  %v159_v34 = vadd.f32 %v4696_v3, %v6647_v50  ;;  %v6830_v3 = vpack.c.bf16 %v590_v55, %v586_v53  ;;  %v612_v53 = vld [vmem:[%s8530_s4 + $0x1d0] sm:$0xff]  ;;  %v6937_v55 = vpack.c.bf16 %v614_v47, %v610_v44 }
  0xe1   :  { %357 = vmatmul.mubr.f32.vlgmr.msra.gmra.mrb[0].mxu1 %v182_v2  ;;  %470 = vmatmul.mubr.f32.vlgmr.msra.gmra.mrb[8].mxu0 %v182_v2  ;;  %v154_v11 = vadd.f32 %v6647_v50, %v153_v7  ;;  %v601_v2 = vld [vmem:[%s8530_s4 + $0x178] sm:$0xff]  ;;  %v598_v7 = vld [vmem:[%s8530_s4 + $0x160] sm:$0xff] }
  0xe2   :  { %4828 = vmatpush1.bf16.msra.mxu1 %v6674_v62  ;;  %4860 = vmatpush1.bf16.msra.mxu0 %v6676_v63  ;;  %v185_v54 = vmax.f32 %v159_v34, 0.0  ;;  %v6854_v13 = vpack.c.bf16 %v601_v2, %v597_v1  ;;  %v6871_v21 = vpack.c.bf16 %v598_v7, %v594_v5  ;;  %v611_v34 = vld [vmem:[%s8530_s4 + $0x1c8] sm:$0xff]  ;;  %v270_v1 = vld [vmem:[%s8532_s5] sm:$0xf] }
  0xe3   :  { %362 = vmatprep.mubr.f32.mxu1 %v6336_v48  ;;  %475 = vmatprep.mubr.f32.mxu0 %v6336_v48  ;;  %v6722_v20 = vpop.f32.mrb[4].mxu0  ;;  %v184_v27 = vmax.f32 %v154_v11, 0.0  ;;  %v600_v11 = vld [vmem:[%s8530_s4 + $0x170] sm:$0xff] }
  0xe4   :  { %4830 = vmatprep.subr.bf16.mxu1 %v6691_v8  ;;  %4862 = vmatprep.subr.bf16.mxu0 %v6693_v9  ;;  %v163_v25 = vpop.f32.mrb[5].mxu0  ;;  %v169_v6 = vadd.f32 %v6722_v20, %v6647_v50  ;;  %v609_v20 = vld [vmem:[%s8530_s4 + $0x1b8] sm:$0xff]  ;;  %v6873_v22 = vpack.c.bf16 %v600_v11, %v596_v10 }
  0xe5   :  { %363 = vmatmul.mubr.f32.gmra.mrb[2].mxu1 %v183_v18  ;;  %476 = vmatmul.mubr.f32.gmra.mrb[10].mxu0 %v183_v18  ;;  %v164_v43 = vadd.f32 %v6647_v50, %v163_v25  ;;  %v607_v18 = vld [vmem:[%s8530_s4 + $0x1a8] sm:$0xff]  ;;  %v602_v25 = vld [vmem:[%s8530_s4 + $0x180] sm:$0xff]  ;;  %v6893_v33 = vpack.c.bf16 %v609_v20, %v605_v19 }
  0xe6   :  { %4832 = vmatpush1.bf16.msra.mxu1 %v6710_v15  ;;  %4864 = vmatpush1.bf16.msra.mxu0 %v6712_v16  ;;  %v187_v26 = vmax.f32 %v169_v6, 0.0  ;;  %v6891_v30 = vpack.c.bf16 %v607_v18, %v603_v14 }
  0xe7   :  { %368 = vmatprep.mubr.f32.mxu1 %v6336_v48  ;;  %481 = vmatprep.mubr.f32.mxu0 %v6336_v48  ;;  %v6769_v38 = vpop.f32.mrb[6].mxu0  ;;  %v186_v61 = vmax.f32 %v164_v43, 0.0  ;;  %v6911_v43 = vpack.c.bf16 %v608_v29, %v604_v28 }
  0xe8   :  { %4834 = vmatprep.subr.bf16.mxu1 %v6732_v23  ;;  %4866 = vmatprep.subr.bf16.mxu0 %v6734_v24  ;;  %v173_v42 = vpop.f32.mrb[7].mxu0  ;;  %v179_v45 = vadd.f32 %v6769_v38, %v6647_v50  ;;  %v6933_v38 = vpack.c.bf16 %v617_v41, %v613_v37 }
  0xe9   :  { %369 = vmatmul.mubr.f32.gmra.mrb[4].mxu1 %v184_v27  ;;  %482 = vmatmul.mubr.f32.gmra.mrb[12].mxu0 %v184_v27  ;;  %v174_v17 = vadd.f32 %v6647_v50, %v173_v42  ;;  %v606_v27 = vld [vmem:[%s8530_s4 + $0x1a0] sm:$0xff]  ;;  %v6931_v50 = vpack.c.bf16 %v615_v36, %v611_v34 }
  0xea   :  { %4836 = vmatpush1.bf16.msra.mxu1 %v6750_v31  ;;  %4868 = vmatpush1.bf16.msra.mxu0 %v6752_v32  ;;  %v6909_v42 = vpack.c.bf16 %v606_v27, %v602_v25  ;;  %v189_v57 = vmax.f32 %v179_v45, 0.0 }
  0xeb   :  { %374 = vmatprep.mubr.f32.mxu1 %v6336_v48  ;;  %487 = vmatprep.mubr.f32.mxu0 %v6336_v48  ;;  %v188_v35 = vmax.f32 %v174_v17, 0.0 }
  0xec   :  { %4838 = vmatprep.subr.bf16.mxu1 %v6773_v39  ;;  %4870 = vmatprep.subr.bf16.mxu0 %v6775_v40 }
  0xed   :  { %375 = vmatmul.mubr.f32.gmra.mrb[6].mxu1 %v185_v54  ;;  %488 = vmatmul.mubr.f32.gmra.mrb[14].mxu0 %v185_v54  ;;  %v616_v54 = vld [vmem:[%s8530_s4 + $0x1f0] sm:$0xff] }
  0xee   :  { %4840 = vmatpush1.bf16.msra.mxu1 %v6792_v51  ;;  %4872 = vmatpush1.bf16.msra.mxu0 %v6794_v52  ;;  %v6939_v56 = vpack.c.bf16 %v616_v54, %v612_v53 }
  0xef   :  { %380 = vmatprep.mubr.f32.mxu1 %v6336_v48  ;;  %493 = vmatprep.mubr.f32.mxu0 %v6336_v48 }
  0xf0   :  { %4842 = vmatprep.subr.bf16.mxu1 %v6812_v58  ;;  %4874 = vmatprep.subr.bf16.mxu0 %v6814_v59 }
  0xf1   :  { %381 = vmatmul.mubr.f32.gmra.mrb[8].mxu1 %v186_v61  ;;  %494 = vmatmul.mubr.f32.gmra.mrb[16].mxu0 %v186_v61  ;;  %v6987_v61 = vshrl.u32 %v272_v60, 7 }
  0xf2   :  { %4844 = vmatpush1.bf16.msra.mxu1 %v6830_v3  ;;  %4876 = vmatpush1.bf16.msra.mxu0 %v6832_v4 }
  0xf3   :  { %386 = vmatprep.mubr.f32.mxu1 %v6336_v48  ;;  %499 = vmatprep.mubr.f32.mxu0 %v6336_v48  ;;  %v274_v0 = vsub.s32 0, %v6987_v61  ;;  %v278_v2 = vsub.s32 1, %v6987_v61  ;;  %v286_v7 = vsub.s32 3, %v6987_v61  ;;  %v282_v25 = vsub.s32 2, %v6987_v61 }
  0xf4   :  { %4846 = vmatprep.subr.bf16.mxu1 %v6852_v12  ;;  %4878 = vmatprep.subr.bf16.mxu0 %v6854_v13 }
  0xf5   :  { %387 = vmatmul.mubr.f32.gmra.mrb[10].mxu1 %v187_v26  ;;  %500 = vmatmul.mubr.f32.gmra.mrb[18].mxu0 %v187_v26  ;;  %v6996_v5 = vrot.slane %v270_v1, %v274_v0  ;;  %v7007_v20 = vrot.slane %v270_v1, %v286_v7  ;;  %v7013_v27 = vrot.slane %v270_v1, %v282_v25 }
  0xf6   :  { %4848 = vmatpush1.bf16.msra.mxu1 %v6871_v21  ;;  %4880 = vmatpush1.bf16.msra.mxu0 %v6873_v22 }
  0xf7   :  { %392 = vmatprep.mubr.f32.mxu1 %v6336_v48  ;;  %505 = vmatprep.mubr.f32.mxu0 %v6336_v48 }
  0xf8   :  { %4850 = vmatprep.subr.bf16.mxu1 %v6891_v30  ;;  %4882 = vmatprep.subr.bf16.mxu0 %v6893_v33 }
  0xf9   :  { %393 = vmatmul.mubr.f32.gmra.mrb[12].mxu1 %v188_v35  ;;  %506 = vmatmul.mubr.f32.gmra.mrb[20].mxu0 %v188_v35 }
  0xfa   :  { %4852 = vmatpush1.bf16.msra.mxu1 %v6909_v42  ;;  %4884 = vmatpush1.bf16.msra.mxu0 %v6911_v43 }
  0xfb   :  { %398 = vmatprep.mubr.f32.mxu1 %v6336_v48  ;;  %511 = vmatprep.mubr.f32.mxu0 %v6336_v48 }
  0xfc   :  { %4854 = vmatprep.subr.bf16.mxu1 %v6931_v50  ;;  %4886 = vmatprep.subr.bf16.mxu0 %v6933_v38 }
  0xfd   :  { %399 = vmatmul.mubr.f32.gmra.mrb[14].mxu1 %v189_v57  ;;  %512 = vmatmul.mubr.f32.gmra.mrb[22].mxu0 %v189_v57 }
  0xfe   :  { %4856 = vmatpush1.bf16.msra.mxu1 %v6937_v55  ;;  %4888 = vmatpush1.bf16.msra.mxu0 %v6939_v56 }
  0xff   :  { %682 = vmatprep.mubr.f32.mxu1 %v6336_v48  ;;  %753 = vmatprep.mubr.f32.mxu0 %v6336_v48 }
 0x100   :  { %4890 = vmatprep.subr.bf16.mxu1 %v6633_v46  ;;  %4922 = vmatprep.subr.bf16.mxu0 %v6639_v49 }
 0x101   :  { %683 = vmatmul.mubr.f32.vlgmr.msra.gmra.mrb[0].mxu1 %v6336_v48  ;;  %754 = vmatmul.mubr.f32.vlgmr.msra.gmra.mrb[8].mxu0 %v6336_v48 }
 0x102   :  { %4892 = vmatpush1.bf16.msra.mxu1 %v6674_v62  ;;  %4924 = vmatpush1.bf16.msra.mxu0 %v6676_v63 }
 0x103   :  { %4894 = vmatprep.subr.bf16.mxu1 %v6691_v8  ;;  %4926 = vmatprep.subr.bf16.mxu0 %v6693_v9 }
 0x104   :  { %921 = vmatprep.mubr.f32.mxu1 %v6336_v48  ;;  %992 = vmatprep.mubr.f32.mxu0 %v6336_v48 }
 0x106   :  { %4896 = vmatpush1.bf16.msra.mxu1 %v6710_v15  ;;  %4928 = vmatpush1.bf16.msra.mxu0 %v6712_v16 }
 0x107   :  { %4898 = vmatprep.subr.bf16.mxu1 %v6732_v23  ;;  %4930 = vmatprep.subr.bf16.mxu0 %v6734_v24 }
 0x10a   :  { %4900 = vmatpush1.bf16.msra.mxu1 %v6750_v31  ;;  %4932 = vmatpush1.bf16.msra.mxu0 %v6752_v32 }
 0x10b   :  { %4902 = vmatprep.subr.bf16.mxu1 %v6773_v39  ;;  %4934 = vmatprep.subr.bf16.mxu0 %v6775_v40 }
 0x10e   :  { %4904 = vmatpush1.bf16.msra.mxu1 %v6792_v51  ;;  %4936 = vmatpush1.bf16.msra.mxu0 %v6794_v52 }
 0x10f   :  { %4906 = vmatprep.subr.bf16.mxu1 %v6812_v58  ;;  %4938 = vmatprep.subr.bf16.mxu0 %v6814_v59 }
 0x112   :  { %4908 = vmatpush1.bf16.msra.mxu1 %v6830_v3  ;;  %4940 = vmatpush1.bf16.msra.mxu0 %v6832_v4 }
 0x113   :  { %4910 = vmatprep.subr.bf16.mxu1 %v6852_v12  ;;  %4942 = vmatprep.subr.bf16.mxu0 %v6854_v13 }
 0x116   :  { %4912 = vmatpush1.bf16.msra.mxu1 %v6871_v21  ;;  %4944 = vmatpush1.bf16.msra.mxu0 %v6873_v22 }
 0x117   :  { %4914 = vmatprep.subr.bf16.mxu1 %v6891_v30  ;;  %4946 = vmatprep.subr.bf16.mxu0 %v6893_v33 }
 0x11a   :  { %4916 = vmatpush1.bf16.msra.mxu1 %v6909_v42  ;;  %4948 = vmatpush1.bf16.msra.mxu0 %v6911_v43 }
 0x11b   :  { %4918 = vmatprep.subr.bf16.mxu1 %v6931_v50  ;;  %4950 = vmatprep.subr.bf16.mxu0 %v6933_v38 }
 0x11e   :  { %4920 = vmatpush1.bf16.msra.mxu1 %v6937_v55  ;;  %4952 = vmatpush1.bf16.msra.mxu0 %v6939_v56 }
 0x11f   :  { %4954 = vmatprep.subr.bf16.mxu1 %v6633_v46  ;;  %4986 = vmatprep.subr.bf16.mxu0 %v6639_v49  ;;  %v7000_v46 = vrot.slane %v270_v1, %v278_v2 }
 0x1d4   :  { %v684_v49 = vpop.f32.mrb[0].mxu1  ;;  %v755_v6 = vpop.f32.mrb[8].mxu0 }
 0x1d5   :  { %v5949_v10 = vadd.f32 %v684_v49, %v6996_v5  ;;  %v686_v11 = vpop.f32.mrb[1].mxu1  ;;  %v757_v14 = vpop.f32.mrb[9].mxu0  ;;  %v5965_v29 = vadd.f32 %v755_v6, %v7013_v27 }
 0x1d6   :  { %v5950_v17 = vadd.f32 %v686_v11, %v7000_v46  ;;  %v5966_v26 = vadd.f32 %v757_v14, %v7007_v20 }
 0x1d7   :  { %v4471_v18 = vmul.f32 -1.442695, %v5949_v10 }
 0x1d8   :  { %v4472_v19 = vmul.f32 -1.442695, %v5950_v17  ;;  %v4473_v28 = vmul.f32 -1.442695, %v5966_v26 }
 0x1d9   :  { %6080 = vpow2.f32 %v4471_v18 }
 0x1da   :  { %6082 = vpow2.f32 %v4472_v19 }
 0x1db   :  { %6084 = vpow2.f32 %v4473_v28 }
 0x1dc   :  { %6086 = vtanh.f32 %v5965_v29 }
 0x1e3   :  { %v6081_v34 = vpop.eup %6080 }
 0x1e4   :  { %v6083_v35 = vpop.eup %6082  ;;  %v767_v36 = vadd.f32 1.0, %v6081_v34 }
 0x1e5   :  { %v773_v37 = vadd.f32 1.0, %v6083_v35  ;;  %v6085_v41 = vpop.eup %6084 }
 0x1e6   :  { %6088 = vrcp.f32 %v767_v36  ;;  %v6087_v44 = vpop.eup %6086  ;;  %v780_v54 = vadd.f32 1.0, %v6085_v41 }
 0x1e7   :  { %6090 = vrcp.f32 %v773_v37 }
 0x1e8   :  { %6092 = vrcp.f32 %v780_v54  ;;  %v1276_v54 = vld [vmem:[%s8530_s4 + $0x28] sm:$0xff] }
 0x1f0   :  { %v6089_v45 = vpop.eup %6088 }
 0x1f1   :  { %v6091_v47 = vpop.eup %6090  ;;  %v784_v53 = vmul.f32 %v6089_v45, %v6087_v44 }
 0x1f2   :  { %v783_v57 = vmul.f32 0.0, %v6091_v47  ;;  %v6093_v1 = vpop.eup %6092 }
 0x1f4   :  { %v7016_v60 = vadd.f32 %v784_v53, %v783_v57  ;;  %v1272_v53 = vld [vmem:[%s8530_s4 + $0x8] sm:$0xff]  ;;  %v1274_v57 = vld [vmem:[%s8530_s4 + $0x18] sm:$0xff] }
 0x1f6   :  { %6094 = vtanh.f32 %v7016_v60 }
 0x200   :  { %v6095_v49 = vpop.eup %6094 }
 0x201   :  { %v7019_v6 = vmul.f32 %v6095_v49, %v6093_v1  ;;  %v1278_v1 = vld [vmem:[%s8530_s4 + $0x38] sm:$0xff]  ;;  %v1271_v49 = vld [vmem:[%s8530_s4] sm:$0xff] }
 0x203   :  { %922 = vmatmul.mubr.f32.vlgmr.msra.gmra.mrb[2].mxu1 %v7019_v6  ;;  %993 = vmatmul.mubr.f32.vlgmr.msra.gmra.mrb[10].mxu0 %v7019_v6 }
 0x204   :  { %4956 = vmatpush1.bf16.msra.mxu1 %v6674_v62  ;;  %4988 = vmatpush1.bf16.msra.mxu0 %v6676_v63 }
 0x205   :  { %4958 = vmatprep.subr.bf16.mxu1 %v6691_v8  ;;  %4990 = vmatprep.subr.bf16.mxu0 %v6693_v9 }
 0x206   :  { %1160 = vmatprep.mubr.f32.mxu1 %v6336_v48  ;;  %1231 = vmatprep.mubr.f32.mxu0 %v6336_v48 }
 0x208   :  { %4960 = vmatpush1.bf16.msra.mxu1 %v6710_v15  ;;  %4992 = vmatpush1.bf16.msra.mxu0 %v6712_v16 }
 0x209   :  { %4962 = vmatprep.subr.bf16.mxu1 %v6732_v23  ;;  %4994 = vmatprep.subr.bf16.mxu0 %v6734_v24 }
 0x20c   :  { %4964 = vmatpush1.bf16.msra.mxu1 %v6750_v31  ;;  %4996 = vmatpush1.bf16.msra.mxu0 %v6752_v32 }
 0x20d   :  { %4966 = vmatprep.subr.bf16.mxu1 %v6773_v39  ;;  %4998 = vmatprep.subr.bf16.mxu0 %v6775_v40 }
 0x210   :  { %4968 = vmatpush1.bf16.msra.mxu1 %v6792_v51  ;;  %5000 = vmatpush1.bf16.msra.mxu0 %v6794_v52 }
 0x211   :  { %4970 = vmatprep.subr.bf16.mxu1 %v6812_v58  ;;  %5002 = vmatprep.subr.bf16.mxu0 %v6814_v59 }
 0x214   :  { %4972 = vmatpush1.bf16.msra.mxu1 %v6830_v3  ;;  %5004 = vmatpush1.bf16.msra.mxu0 %v6832_v4 }
 0x215   :  { %4974 = vmatprep.subr.bf16.mxu1 %v6852_v12  ;;  %5006 = vmatprep.subr.bf16.mxu0 %v6854_v13 }
 0x218   :  { %4976 = vmatpush1.bf16.msra.mxu1 %v6871_v21  ;;  %5008 = vmatpush1.bf16.msra.mxu0 %v6873_v22 }
 0x219   :  { %4978 = vmatprep.subr.bf16.mxu1 %v6891_v30  ;;  %5010 = vmatprep.subr.bf16.mxu0 %v6893_v33 }
 0x21c   :  { %4980 = vmatpush1.bf16.msra.mxu1 %v6909_v42  ;;  %5012 = vmatpush1.bf16.msra.mxu0 %v6911_v43 }
 0x21d   :  { %4982 = vmatprep.subr.bf16.mxu1 %v6931_v50  ;;  %5014 = vmatprep.subr.bf16.mxu0 %v6933_v38 }
 0x220   :  { %4984 = vmatpush1.bf16.msra.mxu1 %v6937_v55  ;;  %5016 = vmatpush1.bf16.msra.mxu0 %v6939_v56 }
 0x2d6   :  { %v923_v62 = vpop.f32.mrb[2].mxu1  ;;  %v994_v63 = vpop.f32.mrb[10].mxu0 }
 0x2d7   :  { %v5951_v8 = vadd.f32 %v923_v62, %v6996_v5  ;;  %v925_v9 = vpop.f32.mrb[3].mxu1  ;;  %v996_v15 = vpop.f32.mrb[11].mxu0  ;;  %v5967_v11 = vadd.f32 %v994_v63, %v7013_v27  ;;  %v1275_v62 = vld [vmem:[%s8530_s4 + $0x20] sm:$0xff]  ;;  %v7089_v63 = vpack.c.bf16 %v1278_v1, %v1274_v57 }
 0x2d8   :  { %v5952_v16 = vadd.f32 %v925_v9, %v7000_v46  ;;  %v5968_v32 = vadd.f32 %v996_v15, %v7007_v20  ;;  %v1273_v9 = vld [vmem:[%s8530_s4 + $0x10] sm:$0xff] }
 0x2d9   :  { %v4474_v23 = vmul.f32 -1.442695, %v5951_v8  ;;  %v7091_v8 = vpack.c.bf16 %v1275_v62, %v1271_v49  ;;  %v1277_v15 = vld [vmem:[%s8530_s4 + $0x30] sm:$0xff]  ;;  %5050 = vmatprep.subr.bf16.mxu0 %v7089_v63 }
 0x2da   :  { %v4475_v31 = vmul.f32 -1.442695, %v5952_v16  ;;  %v4476_v10 = vmul.f32 -1.442695, %v5968_v32  ;;  %v7100_v16 = vpack.c.bf16 %v1277_v15, %v1273_v9  ;;  %v1282_v32 = vld [vmem:[%s8530_s4 + $0x58] sm:$0xff] }
 0x2db   :  { %6096 = vpow2.f32 %v4474_v23  ;;  %v1280_v23 = vld [vmem:[%s8530_s4 + $0x48] sm:$0xff] }
 0x2dc   :  { %6098 = vpow2.f32 %v4475_v31  ;;  %v1284_v31 = vld [vmem:[%s8530_s4 + $0x68] sm:$0xff] }
 0x2dd   :  { %6100 = vpow2.f32 %v4476_v10  ;;  %v7114_v10 = vpack.c.bf16 %v1284_v31, %v1280_v23  ;;  %v1533_v23 = vld [vmem:[%s8530_s4 + $0xb8] sm:$0xff] }
 0x2de   :  { %6102 = vtanh.f32 %v5967_v11  ;;  %v1286_v11 = vld [vmem:[%s8530_s4 + $0x78] sm:$0xff] }
 0x2e5   :  { %v6097_v14 = vpop.eup %6096 }
 0x2e6   :  { %v6099_v17 = vpop.eup %6098  ;;  %v1006_v18 = vadd.f32 1.0, %v6097_v14  ;;  %v1279_v14 = vld [vmem:[%s8530_s4 + $0x40] sm:$0xff] }
 0x2e7   :  { %v1012_v19 = vadd.f32 1.0, %v6099_v17  ;;  %v6101_v26 = vpop.eup %6100  ;;  %v1283_v17 = vld [vmem:[%s8530_s4 + $0x60] sm:$0xff] }
 0x2e8   :  { %6104 = vrcp.f32 %v1006_v18  ;;  %v6103_v28 = vpop.eup %6102  ;;  %v1019_v36 = vadd.f32 1.0, %v6101_v26  ;;  %v7125_v18 = vpack.c.bf16 %v1286_v11, %v1282_v32  ;;  %v1281_v26 = vld [vmem:[%s8530_s4 + $0x50] sm:$0xff]  ;;  %v1535_v32 = vld [vmem:[%s8530_s4 + $0xc8] sm:$0xff] }
 0x2e9   :  { %6106 = vrcp.f32 %v1012_v19  ;;  %v7127_v19 = vpack.c.bf16 %v1283_v17, %v1279_v14  ;;  %v1539_v11 = vld [vmem:[%s8530_s4 + $0xe8] sm:$0xff]  ;;  %v1537_v14 = vld [vmem:[%s8530_s4 + $0xd8] sm:$0xff] }
 0x2ea   :  { %6108 = vrcp.f32 %v1019_v36  ;;  %v7232_v17 = vpack.c.bf16 %v1539_v11, %v1535_v32  ;;  %v1561_v32 = vld [vmem:[%s8530_s4 + $0x198] sm:$0xff] }
 0x2eb   :  { %v1565_v11 = vld [vmem:[%s8530_s4 + $0x1b8] sm:$0xff] }
 0x2f2   :  { %v6105_v29 = vpop.eup %6104 }
 0x2f3   :  { %v6107_v34 = vpop.eup %6106  ;;  %v1023_v35 = vmul.f32 %v6105_v29, %v6103_v28  ;;  %v1285_v28 = vld [vmem:[%s8530_s4 + $0x70] sm:$0xff] }
 0x2f4   :  { %v1022_v37 = vmul.f32 %v6107_v34, %v7016_v60  ;;  %v6109_v44 = vpop.eup %6108  ;;  %v7078_v60 = vpack.c.bf16 %v1276_v54, %v1272_v53  ;;  %v7136_v29 = vpack.c.bf16 %v1285_v28, %v1281_v26  ;;  %v1288_v34 = vld [vmem:[%s8530_s4 + $0x88] sm:$0xff]  ;;  %v1293_v54 = vld [vmem:[%s8530_s4 + $0xb0] sm:$0xff]  ;;  %v1541_v26 = vld [vmem:[%s8530_s4 + $0xf8] sm:$0xff] }
 0x2f5   :  { %v1534_v28 = vld [vmem:[%s8530_s4 + $0xc0] sm:$0xff] }
 0x2f6   :  { %v7060_v41 = vadd.f32 %v1023_v35, %v1022_v37  ;;  %5018 = vmatprep.subr.bf16.mxu1 %v7078_v60  ;;  %v1292_v35 = vld [vmem:[%s8530_s4 + $0xa8] sm:$0xff]  ;;  %v1287_v37 = vld [vmem:[%s8530_s4 + $0x80] sm:$0xff] }
 0x2f7   :  { %v7147_v36 = vpack.c.bf16 %v1292_v35, %v1288_v34  ;;  %v1538_v34 = vld [vmem:[%s8530_s4 + $0xe0] sm:$0xff]  ;;  %v7243_v35 = vpack.c.bf16 %v1541_v26, %v1537_v14  ;;  %v7343_v26 = vpack.c.bf16 %v1565_v11, %v1561_v32 }
 0x2f8   :  { %6110 = vtanh.f32 %v7060_v41 }
 0x302   :  { %v6111_v45 = vpop.eup %6110 }
 0x303   :  { %v7063_v47 = vmul.f32 %v6111_v45, %v6109_v44  ;;  %v1291_v44 = vld [vmem:[%s8530_s4 + $0xa0] sm:$0xff]  ;;  %v1289_v45 = vld [vmem:[%s8530_s4 + $0x90] sm:$0xff] }
 0x304   :  { %v7159_v53 = vpack.c.bf16 %v1291_v44, %v1287_v37  ;;  %v7165_v57 = vpack.c.bf16 %v1293_v54, %v1289_v45  ;;  %v7245_v37 = vpack.c.bf16 %v1538_v34, %v1534_v28  ;;  %v1536_v44 = vld [vmem:[%s8530_s4 + $0xd0] sm:$0xff]  ;;  %v1558_v28 = vld [vmem:[%s8530_s4 + $0x180] sm:$0xff] }
 0x305   :  { %1161 = vmatmul.mubr.f32.vlgmr.msra.gmra.mrb[4].mxu1 %v7063_v47  ;;  %1232 = vmatmul.mubr.f32.vlgmr.msra.gmra.mrb[12].mxu0 %v7063_v47  ;;  %v1540_v45 = vld [vmem:[%s8530_s4 + $0xf0] sm:$0xff]  ;;  %v1562_v34 = vld [vmem:[%s8530_s4 + $0x1a0] sm:$0xff] }
 0x306   :  { %1399 = vmatprep.mubr.f32.mxu1 %v6336_v48  ;;  %1470 = vmatprep.mubr.f32.mxu0 %v6336_v48  ;;  %v7254_v54 = vpack.c.bf16 %v1540_v45, %v1536_v44  ;;  %v1560_v44 = vld [vmem:[%s8530_s4 + $0x190] sm:$0xff]  ;;  %v7355_v45 = vpack.c.bf16 %v1562_v34, %v1558_v28 }
 0x307   :  { %5020 = vmatpush1.bf16.msra.mxu1 %v7091_v8  ;;  %5052 = vmatpush1.bf16.msra.mxu0 %v7100_v16 }
 0x308   :  { %5022 = vmatprep.subr.bf16.mxu1 %v7114_v10  ;;  %5054 = vmatprep.subr.bf16.mxu0 %v7125_v18 }
 0x30b   :  { %5024 = vmatpush1.bf16.msra.mxu1 %v7127_v19  ;;  %5056 = vmatpush1.bf16.msra.mxu0 %v7136_v29 }
 0x30c   :  { %5058 = vmatprep.subr.bf16.mxu0 %v6734_v24  ;;  %5026 = vmatprep.subr.bf16.mxu1 %v7147_v36 }
 0x30f   :  { %5028 = vmatpush1.bf16.msra.mxu1 %v7159_v53  ;;  %5060 = vmatpush1.bf16.msra.mxu0 %v7165_v57 }
 0x310   :  { %5030 = vmatprep.subr.bf16.mxu1 %v6773_v39  ;;  %5062 = vmatprep.subr.bf16.mxu0 %v6775_v40 }
 0x313   :  { %5032 = vmatpush1.bf16.msra.mxu1 %v6792_v51  ;;  %5064 = vmatpush1.bf16.msra.mxu0 %v6794_v52 }
 0x314   :  { %5034 = vmatprep.subr.bf16.mxu1 %v6812_v58  ;;  %5066 = vmatprep.subr.bf16.mxu0 %v6814_v59 }
 0x317   :  { %5036 = vmatpush1.bf16.msra.mxu1 %v6830_v3  ;;  %5068 = vmatpush1.bf16.msra.mxu0 %v6832_v4 }
 0x318   :  { %5038 = vmatprep.subr.bf16.mxu1 %v6852_v12  ;;  %5070 = vmatprep.subr.bf16.mxu0 %v6854_v13 }
 0x31b   :  { %5040 = vmatpush1.bf16.msra.mxu1 %v6871_v21  ;;  %5072 = vmatpush1.bf16.msra.mxu0 %v6873_v22 }
 0x31c   :  { %5042 = vmatprep.subr.bf16.mxu1 %v6891_v30  ;;  %5074 = vmatprep.subr.bf16.mxu0 %v6893_v33 }
 0x31f   :  { %5044 = vmatpush1.bf16.msra.mxu1 %v6909_v42  ;;  %5076 = vmatpush1.bf16.msra.mxu0 %v6911_v43 }
 0x320   :  { %5046 = vmatprep.subr.bf16.mxu1 %v6931_v50  ;;  %5078 = vmatprep.subr.bf16.mxu0 %v6933_v38 }
 0x323   :  { %5048 = vmatpush1.bf16.msra.mxu1 %v6937_v55  ;;  %5080 = vmatpush1.bf16.msra.mxu0 %v6939_v56 }
 0x324   :  { %5082 = vmatprep.subr.bf16.mxu1 %v7078_v60  ;;  %5114 = vmatprep.subr.bf16.mxu0 %v7089_v63 }
 0x3d8   :  { %v1162_v24 = vpop.f32.mrb[4].mxu1  ;;  %v1233_v39 = vpop.f32.mrb[12].mxu0 }
 0x3d9   :  { %v5953_v40 = vadd.f32 %v1162_v24, %v6996_v5  ;;  %v1164_v51 = vpop.f32.mrb[5].mxu1  ;;  %v1235_v52 = vpop.f32.mrb[13].mxu0  ;;  %v5969_v13 = vadd.f32 %v1233_v39, %v7013_v27  ;;  %v1543_v24 = vld [vmem:[%s8530_s4 + $0x108] sm:$0xff] }
 0x3da   :  { %v5954_v58 = vadd.f32 %v1164_v51, %v7000_v46  ;;  %v5970_v4 = vadd.f32 %v1235_v52, %v7007_v20  ;;  %v1547_v39 = vld [vmem:[%s8530_s4 + $0x128] sm:$0xff]  ;;  %v1549_v52 = vld [vmem:[%s8530_s4 + $0x138] sm:$0xff] }
 0x3db   :  { %v4477_v59 = vmul.f32 -1.442695, %v5953_v40  ;;  %v1545_v40 = vld [vmem:[%s8530_s4 + $0x118] sm:$0xff]  ;;  %v7268_v51 = vpack.c.bf16 %v1547_v39, %v1543_v24  ;;  %v1564_v24 = vld [vmem:[%s8530_s4 + $0x1b0] sm:$0xff]  ;;  %v1567_v39 = vld [vmem:[%s8530_s4 + $0x1c8] sm:$0xff] }
 0x3dc   :  { %v4478_v3 = vmul.f32 -1.442695, %v5954_v58  ;;  %v4479_v12 = vmul.f32 -1.442695, %v5970_v4  ;;  %v1542_v58 = vld [vmem:[%s8530_s4 + $0x100] sm:$0xff] }
 0x3dd   :  { %6112 = vpow2.f32 %v4477_v59  ;;  %v1546_v59 = vld [vmem:[%s8530_s4 + $0x120] sm:$0xff] }
 0x3de   :  { %6114 = vpow2.f32 %v4478_v3  ;;  %v7279_v3 = vpack.c.bf16 %v1549_v52, %v1545_v40  ;;  %v7281_v4 = vpack.c.bf16 %v1546_v59, %v1542_v58  ;;  %v1571_v40 = vld [vmem:[%s8530_s4 + $0x1e8] sm:$0xff]  ;;  %v7368_v52 = vpack.c.bf16 %v1564_v24, %v1560_v44  ;;  %v1569_v59 = vld [vmem:[%s8530_s4 + $0x1d8] sm:$0xff] }
 0x3df   :  { %6116 = vpow2.f32 %v4479_v12  ;;  %v1544_v12 = vld [vmem:[%s8530_s4 + $0x110] sm:$0xff]  ;;  %v7370_v58 = vpack.c.bf16 %v1571_v40, %v1567_v39 }
 0x3e0   :  { %6118 = vtanh.f32 %v5969_v13  ;;  %v1548_v13 = vld [vmem:[%s8530_s4 + $0x130] sm:$0xff] }
 0x3e7   :  { %v6113_v21 = vpop.eup %6112 }
 0x3e8   :  { %v6115_v22 = vpop.eup %6114  ;;  %v1245_v30 = vadd.f32 1.0, %v6113_v21  ;;  %v7290_v21 = vpack.c.bf16 %v1548_v13, %v1544_v12  ;;  %v1573_v12 = vld [vmem:[%s8530_s4 + $0x1f8] sm:$0xff]  ;;  %v1566_v13 = vld [vmem:[%s8530_s4 + $0x1c0] sm:$0xff] }
 0x3e9   :  { %v1251_v33 = vadd.f32 1.0, %v6115_v22  ;;  %v6117_v42 = vpop.eup %6116  ;;  %v1551_v22 = vld [vmem:[%s8530_s4 + $0x148] sm:$0xff] }
 0x3ea   :  { %6120 = vrcp.f32 %v1245_v30  ;;  %v6119_v43 = vpop.eup %6118  ;;  %v1258_v56 = vadd.f32 1.0, %v6117_v42  ;;  %v1555_v30 = vld [vmem:[%s8530_s4 + $0x168] sm:$0xff] }
 0x3eb   :  { %6122 = vrcp.f32 %v1251_v33  ;;  %v1553_v33 = vld [vmem:[%s8530_s4 + $0x158] sm:$0xff]  ;;  %v7303_v42 = vpack.c.bf16 %v1555_v30, %v1551_v22  ;;  %v7382_v22 = vpack.c.bf16 %v1573_v12, %v1569_v59  ;;  %v1570_v30 = vld [vmem:[%s8530_s4 + $0x1e0] sm:$0xff] }
 0x3ec   :  { %6124 = vrcp.f32 %v1258_v56 }
 0x3f4   :  { %v6121_v50 = vpop.eup %6120 }
 0x3f5   :  { %v6123_v38 = vpop.eup %6122  ;;  %v1262_v55 = vmul.f32 %v6121_v50, %v6119_v43  ;;  %v1557_v43 = vld [vmem:[%s8530_s4 + $0x178] sm:$0xff]  ;;  %v1550_v50 = vld [vmem:[%s8530_s4 + $0x140] sm:$0xff] }
 0x3f6   :  { %v1261_v1 = vmul.f32 %v6123_v38, %v7060_v41  ;;  %v6125_v62 = vpop.eup %6124  ;;  %v1529_v41 = vld [vmem:[%s8530_s4 + $0x98] sm:$0xff]  ;;  %v1554_v38 = vld [vmem:[%s8530_s4 + $0x160] sm:$0xff] }
 0x3f7   :  { %v7219_v31 = vpack.c.bf16 %v1533_v23, %v1529_v41  ;;  %v7317_v56 = vpack.c.bf16 %v1554_v38, %v1550_v50  ;;  %v1563_v23 = vld [vmem:[%s8530_s4 + $0x1a8] sm:$0xff]  ;;  %v7394_v50 = vpack.c.bf16 %v1570_v30, %v1566_v13 }
 0x3f8   :  { %v7196_v49 = vadd.f32 %v1262_v55, %v1261_v1  ;;  %v7315_v55 = vpack.c.bf16 %v1557_v43, %v1553_v33  ;;  %v1552_v1 = vld [vmem:[%s8530_s4 + $0x150] sm:$0xff] }
 0x3f9   :  { %v1568_v33 = vld [vmem:[%s8530_s4 + $0x1d0] sm:$0xff] }
 0x3fa   :  { %6126 = vtanh.f32 %v7196_v49  ;;  %v1572_v43 = vld [vmem:[%s8530_s4 + $0x1f0] sm:$0xff] }
 0x3fb   :  { %v7398_v38 = vpack.c.bf16 %v1572_v43, %v1568_v33 }
 0x404   :  { %v6127_v9 = vpop.eup %6126 }
 0x405   :  { %v7199_v15 = vmul.f32 %v6127_v9, %v6125_v62  ;;  %v1556_v62 = vld [vmem:[%s8530_s4 + $0x170] sm:$0xff]  ;;  %v1559_v9 = vld [vmem:[%s8530_s4 + $0x188] sm:$0xff] }
 0x406   :  { %v7329_v41 = vpack.c.bf16 %v1556_v62, %v1552_v1  ;;  %v7341_v14 = vpack.c.bf16 %v1563_v23, %v1559_v9 }
 0x407   :  { %1400 = vmatmul.mubr.f32.vlgmr.msra.gmra.mrb[6].mxu1 %v7199_v15  ;;  %1471 = vmatmul.mubr.f32.vlgmr.msra.gmra.mrb[14].mxu0 %v7199_v15 }
 0x408   :  { %5084 = vmatpush1.bf16.msra.mxu1 %v7091_v8  ;;  %5116 = vmatpush1.bf16.msra.mxu0 %v7100_v16 }
 0x409   :  { %5086 = vmatprep.subr.bf16.mxu1 %v7114_v10  ;;  %5118 = vmatprep.subr.bf16.mxu0 %v7125_v18 }
 0x40a   :  { %1638 = vmatprep.mubr.f32.mxu1 %v6336_v48  ;;  %1709 = vmatprep.mubr.f32.mxu0 %v6336_v48 }
 0x40c   :  { %5088 = vmatpush1.bf16.msra.mxu1 %v7127_v19  ;;  %5120 = vmatpush1.bf16.msra.mxu0 %v7136_v29 }
 0x40d   :  { %5090 = vmatprep.subr.bf16.mxu1 %v7147_v36  ;;  %5122 = vmatprep.subr.bf16.mxu0 %v7219_v31 }
 0x410   :  { %5092 = vmatpush1.bf16.msra.mxu1 %v7159_v53  ;;  %5124 = vmatpush1.bf16.msra.mxu0 %v7165_v57 }
 0x411   :  { %5094 = vmatprep.subr.bf16.mxu1 %v7232_v17  ;;  %5126 = vmatprep.subr.bf16.mxu0 %v7243_v35 }
 0x414   :  { %5096 = vmatpush1.bf16.msra.mxu1 %v7245_v37  ;;  %5128 = vmatpush1.bf16.msra.mxu0 %v7254_v54 }
 0x415   :  { %5098 = vmatprep.subr.bf16.mxu1 %v7268_v51  ;;  %5130 = vmatprep.subr.bf16.mxu0 %v7279_v3 }
 0x418   :  { %5100 = vmatpush1.bf16.msra.mxu1 %v7281_v4  ;;  %5132 = vmatpush1.bf16.msra.mxu0 %v7290_v21 }
 0x419   :  { %5102 = vmatprep.subr.bf16.mxu1 %v7303_v42  ;;  %5134 = vmatprep.subr.bf16.mxu0 %v7315_v55 }
 0x41c   :  { %5104 = vmatpush1.bf16.msra.mxu1 %v7317_v56  ;;  %5136 = vmatpush1.bf16.msra.mxu0 %v7329_v41 }
 0x41d   :  { %5106 = vmatprep.subr.bf16.mxu1 %v7341_v14  ;;  %5138 = vmatprep.subr.bf16.mxu0 %v7343_v26 }
 0x420   :  { %5108 = vmatpush1.bf16.msra.mxu1 %v7355_v45  ;;  %5140 = vmatpush1.bf16.msra.mxu0 %v7368_v52 }
 0x421   :  { %5110 = vmatprep.subr.bf16.mxu1 %v7370_v58  ;;  %5142 = vmatprep.subr.bf16.mxu0 %v7382_v22 }
 0x424   :  { %5112 = vmatpush1.bf16.msra.mxu1 %v7394_v50  ;;  %5144 = vmatpush1.bf16.msra.mxu0 %v7398_v38 }
 0x425   :  { %5146 = vmatprep.subr.bf16.mxu1 %v7078_v60  ;;  %5178 = vmatprep.subr.bf16.mxu0 %v7089_v63 }
 0x4da   :  { %v1401_v1 = vpop.f32.mrb[6].mxu1  ;;  %v1472_v62 = vpop.f32.mrb[14].mxu0 }
 0x4db   :  { %v5955_v9 = vadd.f32 %v1401_v1, %v6996_v5  ;;  %v1403_v23 = vpop.f32.mrb[7].mxu1  ;;  %v1474_v32 = vpop.f32.mrb[15].mxu0  ;;  %v5971_v39 = vadd.f32 %v1472_v62, %v7013_v27 }
 0x4dc   :  { %v5956_v11 = vadd.f32 %v1403_v23, %v7000_v46  ;;  %v5972_v44 = vadd.f32 %v1474_v32, %v7007_v20 }
 0x4dd   :  { %v4480_v28 = vmul.f32 -1.442695, %v5955_v9 }
 0x4de   :  { %v4481_v34 = vmul.f32 -1.442695, %v5956_v11  ;;  %v4482_v24 = vmul.f32 -1.442695, %v5972_v44 }
 0x4df   :  { %6128 = vpow2.f32 %v4480_v28 }
 0x4e0   :  { %6130 = vpow2.f32 %v4481_v34 }
 0x4e1   :  { %6132 = vpow2.f32 %v4482_v24 }
 0x4e2   :  { %6134 = vtanh.f32 %v5971_v39 }
 0x4e9   :  { %v6129_v40 = vpop.eup %6128 }
 0x4ea   :  { %v6131_v59 = vpop.eup %6130  ;;  %v1484_v12 = vadd.f32 1.0, %v6129_v40 }
 0x4eb   :  { %v1490_v13 = vadd.f32 1.0, %v6131_v59  ;;  %v6133_v30 = vpop.eup %6132 }
 0x4ec   :  { %6136 = vrcp.f32 %v1484_v12  ;;  %v6135_v33 = vpop.eup %6134  ;;  %v1497_v23 = vadd.f32 1.0, %v6133_v30 }
 0x4ed   :  { %6138 = vrcp.f32 %v1490_v13 }
 0x4ee   :  { %6140 = vrcp.f32 %v1497_v23 }
 0x4f6   :  { %v6137_v43 = vpop.eup %6136 }
 0x4f7   :  { %v6139_v1 = vpop.eup %6138  ;;  %v1501_v9 = vmul.f32 %v6137_v43, %v6135_v33 }
 0x4f8   :  { %v1500_v11 = vmul.f32 %v6139_v1, %v7196_v49  ;;  %v6141_v62 = vpop.eup %6140 }
 0x4fa   :  { %v7410_v32 = vadd.f32 %v1501_v9, %v1500_v11 }
 0x4fc   :  { %6142 = vtanh.f32 %v7410_v32 }
 0x506   :  { %v6143_v28 = vpop.eup %6142 }
 0x507   :  { %v7413_v34 = vmul.f32 %v6143_v28, %v6141_v62 }
 0x509   :  { %1639 = vmatmul.mubr.f32.vlgmr.msra.gmra.mrb[8].mxu1 %v7413_v34  ;;  %1710 = vmatmul.mubr.f32.vlgmr.msra.gmra.mrb[16].mxu0 %v7413_v34 }
 0x50a   :  { %5148 = vmatpush1.bf16.msra.mxu1 %v7091_v8  ;;  %5180 = vmatpush1.bf16.msra.mxu0 %v7100_v16 }
 0x50b   :  { %5150 = vmatprep.subr.bf16.mxu1 %v7114_v10  ;;  %5182 = vmatprep.subr.bf16.mxu0 %v7125_v18 }
 0x50c   :  { %1877 = vmatprep.mubr.f32.mxu1 %v6336_v48  ;;  %1948 = vmatprep.mubr.f32.mxu0 %v6336_v48 }
 0x50e   :  { %5152 = vmatpush1.bf16.msra.mxu1 %v7127_v19  ;;  %5184 = vmatpush1.bf16.msra.mxu0 %v7136_v29 }
 0x50f   :  { %5154 = vmatprep.subr.bf16.mxu1 %v7147_v36  ;;  %5186 = vmatprep.subr.bf16.mxu0 %v7219_v31 }
 0x512   :  { %5156 = vmatpush1.bf16.msra.mxu1 %v7159_v53  ;;  %5188 = vmatpush1.bf16.msra.mxu0 %v7165_v57 }
 0x513   :  { %5158 = vmatprep.subr.bf16.mxu1 %v7232_v17  ;;  %5190 = vmatprep.subr.bf16.mxu0 %v7243_v35 }
 0x516   :  { %5160 = vmatpush1.bf16.msra.mxu1 %v7245_v37  ;;  %5192 = vmatpush1.bf16.msra.mxu0 %v7254_v54 }
 0x517   :  { %5162 = vmatprep.subr.bf16.mxu1 %v7268_v51  ;;  %5194 = vmatprep.subr.bf16.mxu0 %v7279_v3 }
 0x51a   :  { %5164 = vmatpush1.bf16.msra.mxu1 %v7281_v4  ;;  %5196 = vmatpush1.bf16.msra.mxu0 %v7290_v21 }
 0x51b   :  { %5166 = vmatprep.subr.bf16.mxu1 %v7303_v42  ;;  %5198 = vmatprep.subr.bf16.mxu0 %v7315_v55 }
 0x51e   :  { %5168 = vmatpush1.bf16.msra.mxu1 %v7317_v56  ;;  %5200 = vmatpush1.bf16.msra.mxu0 %v7329_v41 }
 0x51f   :  { %5170 = vmatprep.subr.bf16.mxu1 %v7341_v14  ;;  %5202 = vmatprep.subr.bf16.mxu0 %v7343_v26 }
 0x522   :  { %5172 = vmatpush1.bf16.msra.mxu1 %v7355_v45  ;;  %5204 = vmatpush1.bf16.msra.mxu0 %v7368_v52 }
 0x523   :  { %5174 = vmatprep.subr.bf16.mxu1 %v7370_v58  ;;  %5206 = vmatprep.subr.bf16.mxu0 %v7382_v22 }
 0x526   :  { %5176 = vmatpush1.bf16.msra.mxu1 %v7394_v50  ;;  %5208 = vmatpush1.bf16.msra.mxu0 %v7398_v38 }
 0x527   :  { %5210 = vmatprep.subr.bf16.mxu1 %v7078_v60  ;;  %5242 = vmatprep.subr.bf16.mxu0 %v7089_v63 }
 0x5dc   :  { %v1640_v49 = vpop.f32.mrb[8].mxu1  ;;  %v1711_v44 = vpop.f32.mrb[16].mxu0 }
 0x5dd   :  { %v5957_v24 = vadd.f32 %v1640_v49, %v6996_v5  ;;  %v1642_v39 = vpop.f32.mrb[9].mxu1  ;;  %v1713_v40 = vpop.f32.mrb[17].mxu0  ;;  %v5973_v43 = vadd.f32 %v1711_v44, %v7013_v27 }
 0x5de   :  { %v5958_v59 = vadd.f32 %v1642_v39, %v7000_v46  ;;  %v5974_v30 = vadd.f32 %v1713_v40, %v7007_v20 }
 0x5df   :  { %v4483_v12 = vmul.f32 -1.442695, %v5957_v24 }
 0x5e0   :  { %v4484_v13 = vmul.f32 -1.442695, %v5958_v59  ;;  %v4485_v33 = vmul.f32 -1.442695, %v5974_v30 }
 0x5e1   :  { %6144 = vpow2.f32 %v4483_v12 }
 0x5e2   :  { %6146 = vpow2.f32 %v4484_v13 }
 0x5e3   :  { %6148 = vpow2.f32 %v4485_v33 }
 0x5e4   :  { %6150 = vtanh.f32 %v5973_v43 }
 0x5eb   :  { %v6145_v60 = vpop.eup %6144 }
 0x5ec   :  { %v6147_v1 = vpop.eup %6146  ;;  %v1723_v63 = vadd.f32 1.0, %v6145_v60 }
 0x5ed   :  { %v1729_v9 = vadd.f32 1.0, %v6147_v1  ;;  %v6149_v23 = vpop.eup %6148 }
 0x5ee   :  { %6152 = vrcp.f32 %v1723_v63  ;;  %v6151_v11 = vpop.eup %6150  ;;  %v1736_v24 = vadd.f32 1.0, %v6149_v23 }
 0x5ef   :  { %6154 = vrcp.f32 %v1729_v9 }
 0x5f0   :  { %6156 = vrcp.f32 %v1736_v24 }
 0x5f8   :  { %v6153_v62 = vpop.eup %6152 }
 0x5f9   :  { %v6155_v28 = vpop.eup %6154  ;;  %v1740_v49 = vmul.f32 %v6153_v62, %v6151_v11 }
 0x5fa   :  { %v1739_v39 = vmul.f32 %v6155_v28, %v7410_v32  ;;  %v6157_v44 = vpop.eup %6156 }
 0x5fc   :  { %v7456_v40 = vadd.f32 %v1740_v49, %v1739_v39 }
 0x5fe   :  { %6158 = vtanh.f32 %v7456_v40 }
 0x608   :  { %v6159_v59 = vpop.eup %6158 }
 0x609   :  { %v7459_v12 = vmul.f32 %v6159_v59, %v6157_v44  ;;  %v2232_v59 = vld [vmem:[%s8530_s4 + $0x28] sm:$0xff] }
 0x60b   :  { %1878 = vmatmul.mubr.f32.vlgmr.msra.gmra.mrb[10].mxu1 %v7459_v12  ;;  %1949 = vmatmul.mubr.f32.vlgmr.msra.gmra.mrb[18].mxu0 %v7459_v12 }
 0x60c   :  { %5212 = vmatpush1.bf16.msra.mxu1 %v7091_v8  ;;  %5244 = vmatpush1.bf16.msra.mxu0 %v7100_v16 }
 0x60d   :  { %5214 = vmatprep.subr.bf16.mxu1 %v7114_v10  ;;  %5246 = vmatprep.subr.bf16.mxu0 %v7125_v18 }
 0x60e   :  { %2116 = vmatprep.mubr.f32.mxu1 %v6336_v48  ;;  %2187 = vmatprep.mubr.f32.mxu0 %v6336_v48 }
 0x610   :  { %5216 = vmatpush1.bf16.msra.mxu1 %v7127_v19  ;;  %5248 = vmatpush1.bf16.msra.mxu0 %v7136_v29 }
 0x611   :  { %5218 = vmatprep.subr.bf16.mxu1 %v7147_v36  ;;  %5250 = vmatprep.subr.bf16.mxu0 %v7219_v31 }
 0x614   :  { %5220 = vmatpush1.bf16.msra.mxu1 %v7159_v53  ;;  %5252 = vmatpush1.bf16.msra.mxu0 %v7165_v57 }
 0x615   :  { %5222 = vmatprep.subr.bf16.mxu1 %v7232_v17  ;;  %5254 = vmatprep.subr.bf16.mxu0 %v7243_v35 }
 0x618   :  { %5224 = vmatpush1.bf16.msra.mxu1 %v7245_v37  ;;  %5256 = vmatpush1.bf16.msra.mxu0 %v7254_v54 }
 0x619   :  { %5226 = vmatprep.subr.bf16.mxu1 %v7268_v51  ;;  %5258 = vmatprep.subr.bf16.mxu0 %v7279_v3 }
 0x61c   :  { %5228 = vmatpush1.bf16.msra.mxu1 %v7281_v4  ;;  %5260 = vmatpush1.bf16.msra.mxu0 %v7290_v21 }
 0x61d   :  { %5230 = vmatprep.subr.bf16.mxu1 %v7303_v42  ;;  %5262 = vmatprep.subr.bf16.mxu0 %v7315_v55 }
 0x620   :  { %5232 = vmatpush1.bf16.msra.mxu1 %v7317_v56  ;;  %5264 = vmatpush1.bf16.msra.mxu0 %v7329_v41 }
 0x621   :  { %5234 = vmatprep.subr.bf16.mxu1 %v7341_v14  ;;  %5266 = vmatprep.subr.bf16.mxu0 %v7343_v26 }
 0x624   :  { %5236 = vmatpush1.bf16.msra.mxu1 %v7355_v45  ;;  %5268 = vmatpush1.bf16.msra.mxu0 %v7368_v52 }
 0x625   :  { %5238 = vmatprep.subr.bf16.mxu1 %v7370_v58  ;;  %5270 = vmatprep.subr.bf16.mxu0 %v7382_v22 }
 0x628   :  { %5240 = vmatpush1.bf16.msra.mxu1 %v7394_v50  ;;  %5272 = vmatpush1.bf16.msra.mxu0 %v7398_v38 }
 0x6de   :  { %v1879_v8 = vpop.f32.mrb[10].mxu1  ;;  %v1950_v16 = vpop.f32.mrb[18].mxu0 }
 0x6df   :  { %v5959_v10 = vadd.f32 %v1879_v8, %v6996_v5  ;;  %v1881_v18 = vpop.f32.mrb[11].mxu1  ;;  %v1952_v19 = vpop.f32.mrb[19].mxu0  ;;  %v5975_v13 = vadd.f32 %v1950_v16, %v7013_v27  ;;  %v2230_v8 = vld [vmem:[%s8530_s4 + $0x18] sm:$0xff] }
 0x6e0   :  { %v5960_v29 = vadd.f32 %v1881_v18, %v7000_v46  ;;  %v5976_v57 = vadd.f32 %v1952_v19, %v7007_v20  ;;  %v2227_v18 = vld [vmem:[%s8530_s4] sm:$0xff] }
 0x6e1   :  { %v4486_v36 = vmul.f32 -1.442695, %v5959_v10  ;;  %v2234_v10 = vld [vmem:[%s8530_s4 + $0x38] sm:$0xff]  ;;  %v2231_v19 = vld [vmem:[%s8530_s4 + $0x20] sm:$0xff] }
 0x6e2   :  { %v4487_v53 = vmul.f32 -1.442695, %v5960_v29  ;;  %v4488_v32 = vmul.f32 -1.442695, %v5976_v57  ;;  %v5305_v29 = vpack.c.bf16 %v2234_v10, %v2230_v8  ;;  %v2233_v57 = vld [vmem:[%s8530_s4 + $0x30] sm:$0xff]  ;;  %v2247_v8 = vld [vmem:[%s8530_s4 + $0xa0] sm:$0xff] }
 0x6e3   :  { %6160 = vpow2.f32 %v4486_v36  ;;  %v5275_v36 = vpack.c.bf16 %v2231_v19, %v2227_v18  ;;  %v2249_v18 = vld [vmem:[%s8530_s4 + $0xb0] sm:$0xff] }
 0x6e4   :  { %6162 = vpow2.f32 %v4487_v53  ;;  %v2229_v53 = vld [vmem:[%s8530_s4 + $0x10] sm:$0xff]  ;;  %5306 = vmatprep.subr.bf16.mxu0 %v5305_v29 }
 0x6e5   :  { %6164 = vpow2.f32 %v4488_v32  ;;  %v5307_v32 = vpack.c.bf16 %v2233_v57, %v2229_v53 }
 0x6e6   :  { %6166 = vtanh.f32 %v5975_v13  ;;  %v2236_v13 = vld [vmem:[%s8530_s4 + $0x48] sm:$0xff] }
 0x6ed   :  { %v6161_v30 = vpop.eup %6160 }
 0x6ee   :  { %v6163_v33 = vpop.eup %6162  ;;  %v1962_v43 = vadd.f32 1.0, %v6161_v30  ;;  %v2240_v30 = vld [vmem:[%s8530_s4 + $0x68] sm:$0xff] }
 0x6ef   :  { %v1968_v60 = vadd.f32 1.0, %v6163_v33  ;;  %v6165_v1 = vpop.eup %6164  ;;  %v2238_v33 = vld [vmem:[%s8530_s4 + $0x58] sm:$0xff] }
 0x6f0   :  { %6168 = vrcp.f32 %v1962_v43  ;;  %v6167_v63 = vpop.eup %6166  ;;  %v1975_v62 = vadd.f32 1.0, %v6165_v1  ;;  %v5277_v43 = vpack.c.bf16 %v2240_v30, %v2236_v13  ;;  %v2235_v1 = vld [vmem:[%s8530_s4 + $0x40] sm:$0xff] }
 0x6f1   :  { %6170 = vrcp.f32 %v1968_v60  ;;  %v2242_v60 = vld [vmem:[%s8530_s4 + $0x78] sm:$0xff] }
 0x6f2   :  { %6172 = vrcp.f32 %v1975_v62  ;;  %v2241_v62 = vld [vmem:[%s8530_s4 + $0x70] sm:$0xff] }
 0x6fa   :  { %v6169_v9 = vpop.eup %6168 }
 0x6fb   :  { %v6171_v23 = vpop.eup %6170  ;;  %v1979_v11 = vmul.f32 %v6169_v9, %v6167_v63  ;;  %v2239_v63 = vld [vmem:[%s8530_s4 + $0x60] sm:$0xff]  ;;  %v5309_v9 = vpack.c.bf16 %v2242_v60, %v2238_v33 }
 0x6fc   :  { %v1978_v28 = vmul.f32 %v6171_v23, %v7456_v40  ;;  %v6173_v24 = vpop.eup %6172  ;;  %v2228_v40 = vld [vmem:[%s8530_s4 + $0x8] sm:$0xff]  ;;  %v5279_v23 = vpack.c.bf16 %v2239_v63, %v2235_v1  ;;  %v4499_v60 = vld [vmem:[%s8529_s3 + $0x220] sm:$0xff]  ;;  %v4497_v1 = vld [vmem:[%s8529_s3 + $0x210] sm:$0xff] }
 0x6fd   :  { %v5273_v16 = vpack.c.bf16 %v2232_v59, %v2228_v40  ;;  %v2243_v59 = vld [vmem:[%s8530_s4 + $0x80] sm:$0xff]  ;;  %v4504_v63 = vld [vmem:[%s8529_s3 + $0x248] sm:$0xff] }
 0x6fe   :  { %v7500_v49 = vadd.f32 %v1979_v11, %v1978_v28  ;;  %v2237_v11 = vld [vmem:[%s8530_s4 + $0x50] sm:$0xff]  ;;  %v5283_v10 = vpack.c.bf16 %v2247_v8, %v2243_v59  ;;  %v4507_v59 = vld [vmem:[%s8529_s3 + $0x260] sm:$0xff] }
 0x6ff   :  { %5274 = vmatprep.subr.bf16.mxu1 %v5273_v16  ;;  %v5311_v28 = vpack.c.bf16 %v2241_v62, %v2237_v11  ;;  %v2245_v16 = vld [vmem:[%s8530_s4 + $0x90] sm:$0xff]  ;;  %v4510_v11 = vld [vmem:[%s8529_s3 + $0x278] sm:$0xff] }
 0x700   :  { %6174 = vtanh.f32 %v7500_v49  ;;  %v5315_v19 = vpack.c.bf16 %v2249_v18, %v2245_v16  ;;  %v4505_v18 = vld [vmem:[%s8529_s3 + $0x250] sm:$0xff] }
 0x70a   :  { %v6175_v39 = vpop.eup %6174 }
 0x70b   :  { %v7503_v44 = vmul.f32 %v6175_v39, %v6173_v24  ;;  %v2244_v24 = vld [vmem:[%s8530_s4 + $0x88] sm:$0xff] }
 0x70c   :  { %v2248_v39 = vld [vmem:[%s8530_s4 + $0xa8] sm:$0xff] }
 0x70d   :  { %2117 = vmatmul.mubr.f32.vlgmr.msra.gmra.mrb[12].mxu1 %v7503_v44  ;;  %2188 = vmatmul.mubr.f32.vlgmr.msra.gmra.mrb[20].mxu0 %v7503_v44  ;;  %v5281_v40 = vpack.c.bf16 %v2248_v39, %v2244_v24 }
 0x70e   :  { %2355 = vmatprep.mubr.f32.mxu1 %v6336_v48  ;;  %2426 = vmatprep.mubr.f32.mxu0 %v6336_v48 }
 0x70f   :  { %5276 = vmatpush1.bf16.msra.mxu1 %v5275_v36  ;;  %5308 = vmatpush1.bf16.msra.mxu0 %v5307_v32 }
 0x710   :  { %5278 = vmatprep.subr.bf16.mxu1 %v5277_v43  ;;  %5310 = vmatprep.subr.bf16.mxu0 %v5309_v9  ;;  %v4495_v43 = vld [vmem:[%s8529_s3 + $0x200] sm:$0xff]  ;;  %v4508_v9 = vld [vmem:[%s8529_s3 + $0x268] sm:$0xff] }
 0x711   :  { %v5339_v24 = vpack.c.bf16 %v4499_v60, %v4495_v43  ;;  %v5341_v16 = vpack.c.bf16 %v4508_v9, %v4504_v63 }
 0x713   :  { %5280 = vmatpush1.bf16.msra.mxu1 %v5279_v23  ;;  %5312 = vmatpush1.bf16.msra.mxu0 %v5311_v28  ;;  %v4506_v23 = vld [vmem:[%s8529_s3 + $0x258] sm:$0xff] }
 0x714   :  { %5314 = vmatprep.subr.bf16.mxu0 %v7219_v31  ;;  %5282 = vmatprep.subr.bf16.mxu1 %v5281_v40  ;;  %v4496_v31 = vld [vmem:[%s8529_s3 + $0x208] sm:$0xff]  ;;  %v4503_v40 = vld [vmem:[%s8529_s3 + $0x240] sm:$0xff] }
 0x717   :  { %5284 = vmatpush1.bf16.msra.mxu1 %v5283_v10  ;;  %5316 = vmatpush1.bf16.msra.mxu0 %v5315_v19  ;;  %v5373_v10 = vpack.c.bf16 %v4510_v11, %v4506_v23  ;;  %v4509_v19 = vld [vmem:[%s8529_s3 + $0x270] sm:$0xff] }
 0x718   :  { %5286 = vmatprep.subr.bf16.mxu1 %v7232_v17  ;;  %5318 = vmatprep.subr.bf16.mxu0 %v7243_v35  ;;  %v4500_v17 = vld [vmem:[%s8529_s3 + $0x228] sm:$0xff]  ;;  %v4498_v35 = vld [vmem:[%s8529_s3 + $0x218] sm:$0xff]  ;;  %v4529_v23 = vld [vmem:[%s8529_s3 + $0x310] sm:$0xff] }
 0x719   :  { %v4533_v11 = vld [vmem:[%s8529_s3 + $0x330] sm:$0xff] }
 0x71b   :  { %5288 = vmatpush1.bf16.msra.mxu1 %v7245_v37  ;;  %5320 = vmatpush1.bf16.msra.mxu0 %v7254_v54  ;;  %v4502_v37 = vld [vmem:[%s8529_s3 + $0x238] sm:$0xff]  ;;  %v5337_v54 = vpack.c.bf16 %v4500_v17, %v4496_v31  ;;  %v4512_v31 = vld [vmem:[%s8529_s3 + $0x288] sm:$0xff] }
 0x71c   :  { %5290 = vmatprep.subr.bf16.mxu1 %v7268_v51  ;;  %5322 = vmatprep.subr.bf16.mxu0 %v7279_v3  ;;  %v5369_v51 = vpack.c.bf16 %v4502_v37, %v4498_v35  ;;  %v4516_v17 = vld [vmem:[%s8529_s3 + $0x2a8] sm:$0xff]  ;;  %v4514_v35 = vld [vmem:[%s8529_s3 + $0x298] sm:$0xff] }
 0x71d   :  { %v4518_v37 = vld [vmem:[%s8529_s3 + $0x2b8] sm:$0xff] }
 0x71f   :  { %5292 = vmatpush1.bf16.msra.mxu1 %v7281_v4  ;;  %5324 = vmatpush1.bf16.msra.mxu0 %v7290_v21 }
 0x720   :  { %5294 = vmatprep.subr.bf16.mxu1 %v7303_v42  ;;  %5326 = vmatprep.subr.bf16.mxu0 %v7315_v55 }
 0x723   :  { %5296 = vmatpush1.bf16.msra.mxu1 %v7317_v56  ;;  %5328 = vmatpush1.bf16.msra.mxu0 %v7329_v41 }
 0x724   :  { %5298 = vmatprep.subr.bf16.mxu1 %v7341_v14  ;;  %5330 = vmatprep.subr.bf16.mxu0 %v7343_v26 }
 0x727   :  { %5300 = vmatpush1.bf16.msra.mxu1 %v7355_v45  ;;  %5332 = vmatpush1.bf16.msra.mxu0 %v7368_v52 }
 0x728   :  { %5302 = vmatprep.subr.bf16.mxu1 %v7370_v58  ;;  %5334 = vmatprep.subr.bf16.mxu0 %v7382_v22 }
 0x72b   :  { %5304 = vmatpush1.bf16.msra.mxu1 %v7394_v50  ;;  %5336 = vmatpush1.bf16.msra.mxu0 %v7398_v38 }
 0x72c   :  { %5338 = vmatprep.subr.bf16.mxu1 %v5337_v54  ;;  %5370 = vmatprep.subr.bf16.mxu0 %v5369_v51  ;;  %v5343_v54 = vpack.c.bf16 %v4507_v59, %v4503_v40  ;;  %v5375_v51 = vpack.c.bf16 %v4509_v19, %v4505_v18  ;;  %v5387_v59 = vpack.c.bf16 %v4533_v11, %v4529_v23  ;;  %v4573_v23 = vld [vmem:[%s8530_s4 + $0x268] sm:$0xff]  ;;  %v4571_v11 = vld [vmem:[%s8530_s4 + $0x258] sm:$0xff] }
 0x7e0   :  { %v2118_v3 = vpop.f32.mrb[12].mxu1  ;;  %v2189_v4 = vpop.f32.mrb[20].mxu0 }
 0x7e1   :  { %v5961_v21 = vadd.f32 %v2118_v3, %v6996_v5  ;;  %v2120_v42 = vpop.f32.mrb[13].mxu1  ;;  %v2191_v55 = vpop.f32.mrb[21].mxu0  ;;  %v5977_v52 = vadd.f32 %v2189_v4, %v7013_v27  ;;  %v4511_v3 = vld [vmem:[%s8529_s3 + $0x280] sm:$0xff] }
 0x7e2   :  { %v5962_v56 = vadd.f32 %v2120_v42, %v7000_v46  ;;  %v5978_v26 = vadd.f32 %v2191_v55, %v7007_v20  ;;  %v4515_v4 = vld [vmem:[%s8529_s3 + $0x2a0] sm:$0xff]  ;;  %v5377_v42 = vpack.c.bf16 %v4518_v37, %v4514_v35  ;;  %v4513_v55 = vld [vmem:[%s8529_s3 + $0x290] sm:$0xff]  ;;  %v4544_v35 = vld [vmem:[%s8529_s3 + $0x388] sm:$0xff] }
 0x7e3   :  { %v4489_v41 = vmul.f32 -1.442695, %v5961_v21  ;;  %v5345_v21 = vpack.c.bf16 %v4516_v17, %v4512_v31  ;;  %v4537_v31 = vld [vmem:[%s8529_s3 + $0x350] sm:$0xff]  ;;  %v4548_v37 = vld [vmem:[%s8529_s3 + $0x3a8] sm:$0xff] }
 0x7e4   :  { %v4490_v14 = vmul.f32 -1.442695, %v5962_v56  ;;  %v4491_v45 = vmul.f32 -1.442695, %v5978_v26  ;;  %v4517_v56 = vld [vmem:[%s8529_s3 + $0x2b0] sm:$0xff]  ;;  %v4522_v26 = vld [vmem:[%s8529_s3 + $0x2d8] sm:$0xff] }
 0x7e5   :  { %6176 = vpow2.f32 %v4489_v41  ;;  %v4520_v41 = vld [vmem:[%s8529_s3 + $0x2c8] sm:$0xff]  ;;  %v4541_v17 = vld [vmem:[%s8529_s3 + $0x370] sm:$0xff] }
 0x7e6   :  { %6178 = vpow2.f32 %v4490_v14  ;;  %v4524_v14 = vld [vmem:[%s8529_s3 + $0x2e8] sm:$0xff] }
 0x7e7   :  { %6180 = vpow2.f32 %v4491_v45  ;;  %v4526_v45 = vld [vmem:[%s8529_s3 + $0x2f8] sm:$0xff] }
 0x7e8   :  { %6182 = vtanh.f32 %v5977_v52  ;;  %v5347_v52 = vpack.c.bf16 %v4515_v4, %v4511_v3  ;;  %v5391_v4 = vpack.c.bf16 %v4541_v17, %v4537_v31  ;;  %v4581_v31 = vld [vmem:[%s8530_s4 + $0x2a8] sm:$0xff]  ;;  %v4579_v17 = vld [vmem:[%s8530_s4 + $0x298] sm:$0xff] }
 0x7ef   :  { %v6177_v58 = vpop.eup %6176 }
 0x7f0   :  { %v6179_v22 = vpop.eup %6178  ;;  %v2201_v50 = vadd.f32 1.0, %v6177_v58  ;;  %v5379_v58 = vpack.c.bf16 %v4517_v56, %v4513_v55  ;;  %v5361_v55 = vpack.c.bf16 %v4548_v37, %v4544_v35  ;;  %v4576_v37 = vld [vmem:[%s8530_s4 + $0x280] sm:$0xff] }
 0x7f1   :  { %v2207_v38 = vadd.f32 1.0, %v6179_v22  ;;  %v6181_v29 = vpop.eup %6180  ;;  %v4519_v22 = vld [vmem:[%s8529_s3 + $0x2c0] sm:$0xff] }
 0x7f2   :  { %6184 = vrcp.f32 %v2201_v50  ;;  %v6183_v36 = vpop.eup %6182  ;;  %v2214_v13 = vadd.f32 1.0, %v6181_v29  ;;  %v4523_v50 = vld [vmem:[%s8529_s3 + $0x2e0] sm:$0xff]  ;;  %v5381_v29 = vpack.c.bf16 %v4526_v45, %v4522_v26  ;;  %v4552_v26 = vld [vmem:[%s8529_s3 + $0x3c8] sm:$0xff] }
 0x7f3   :  { %6186 = vrcp.f32 %v2207_v38  ;;  %v5349_v38 = vpack.c.bf16 %v4524_v14, %v4520_v41  ;;  %v5351_v43 = vpack.c.bf16 %v4523_v50, %v4519_v22  ;;  %v4545_v41 = vld [vmem:[%s8529_s3 + $0x390] sm:$0xff]  ;;  %v4556_v45 = vld [vmem:[%s8529_s3 + $0x3e8] sm:$0xff] }
 0x7f4   :  { %6188 = vrcp.f32 %v2214_v13  ;;  %v4530_v13 = vld [vmem:[%s8529_s3 + $0x318] sm:$0xff]  ;;  %v4549_v14 = vld [vmem:[%s8529_s3 + $0x3b0] sm:$0xff] }
 0x7f5   :  { %v5395_v50 = vpack.c.bf16 %v4549_v14, %v4545_v41  ;;  %v4589_v41 = vld [vmem:[%s8530_s4 + $0x2e8] sm:$0xff]  ;;  %v4587_v14 = vld [vmem:[%s8530_s4 + $0x2d8] sm:$0xff] }
 0x7fc   :  { %v6185_v53 = vpop.eup %6184 }
 0x7fd   :  { %v6187_v57 = vpop.eup %6186  ;;  %v2218_v32 = vmul.f32 %v6185_v53, %v6183_v36  ;;  %v4521_v36 = vld [vmem:[%s8529_s3 + $0x2d0] sm:$0xff] }
 0x7fe   :  { %v2217_v30 = vmul.f32 %v6187_v57, %v7500_v49  ;;  %v4501_v49 = vld [vmem:[%s8529_s3 + $0x230] sm:$0xff]  ;;  %v6189_v62 = vpop.eup %6188  ;;  %v4528_v57 = vld [vmem:[%s8529_s3 + $0x308] sm:$0xff] }
 0x7ff   :  { %v5371_v39 = vpack.c.bf16 %v4501_v49, %v4497_v1  ;;  %v4525_v53 = vld [vmem:[%s8529_s3 + $0x2f0] sm:$0xff]  ;;  %v4527_v1 = vld [vmem:[%s8529_s3 + $0x300] sm:$0xff] }
 0x800   :  { %v7613_v33 = vadd.f32 %v2218_v32, %v2217_v30  ;;  %v4532_v32 = vld [vmem:[%s8529_s3 + $0x328] sm:$0xff]  ;;  %v4534_v30 = vld [vmem:[%s8529_s3 + $0x338] sm:$0xff]  ;;  %v5383_v60 = vpack.c.bf16 %v4525_v53, %v4521_v36  ;;  %v4531_v49 = vld [vmem:[%s8529_s3 + $0x320] sm:$0xff] }
 0x801   :  { %v5353_v63 = vpack.c.bf16 %v4532_v32, %v4528_v57  ;;  %v5385_v9 = vpack.c.bf16 %v4534_v30, %v4530_v13  ;;  %v5355_v40 = vpack.c.bf16 %v4531_v49, %v4527_v1  ;;  %v4555_v53 = vld [vmem:[%s8529_s3 + $0x3e0] sm:$0xff]  ;;  %v4553_v57 = vld [vmem:[%s8529_s3 + $0x3d0] sm:$0xff] }
 0x802   :  { %6190 = vtanh.f32 %v7613_v33  ;;  %v4557_v32 = vld [vmem:[%s8529_s3 + $0x3f0] sm:$0xff] }
 0x803   :  { %v5399_v30 = vpack.c.bf16 %v4557_v32, %v4553_v57  ;;  %v4562_v1 = vld [vmem:[%s8530_s4 + $0x210] sm:$0xff]  ;;  %v4597_v57 = vld [vmem:[%s8530_s4 + $0x328] sm:$0xff]  ;;  %v4592_v32 = vld [vmem:[%s8530_s4 + $0x300] sm:$0xff] }
 0x804   :  { %v4566_v49 = vld [vmem:[%s8530_s4 + $0x230] sm:$0xff] }
 0x80c   :  { %v6191_v28 = vpop.eup %6190 }
 0x80d   :  { %v7646_v8 = vmul.f32 %v6191_v28, %v6189_v62  ;;  %v4536_v62 = vld [vmem:[%s8529_s3 + $0x348] sm:$0xff] }
 0x80e   :  { %v4540_v28 = vld [vmem:[%s8529_s3 + $0x368] sm:$0xff] }
 0x80f   :  { %2356 = vmatmul.mubr.f32.vlgmr.msra.gmra.mrb[14].mxu1 %v7646_v8  ;;  %2427 = vmatmul.mubr.f32.vlgmr.msra.gmra.mrb[22].mxu0 %v7646_v8  ;;  %v5357_v18 = vpack.c.bf16 %v4540_v28, %v4536_v62  ;;  %v4568_v28 = vld [vmem:[%s8530_s4 + $0x240] sm:$0xff] }
 0x810   :  { %5340 = vmatpush1.bf16.msra.mxu1 %v5339_v24  ;;  %5372 = vmatpush1.bf16.msra.mxu0 %v5371_v39  ;;  %v4538_v24 = vld [vmem:[%s8529_s3 + $0x358] sm:$0xff] }
 0x811   :  { %5342 = vmatprep.subr.bf16.mxu1 %v5341_v16  ;;  %5374 = vmatprep.subr.bf16.mxu0 %v5373_v10  ;;  %v4542_v39 = vld [vmem:[%s8529_s3 + $0x378] sm:$0xff]  ;;  %v4535_v16 = vld [vmem:[%s8529_s3 + $0x340] sm:$0xff] }
 0x812   :  { %2622 = vmatprep.mubr.f32.mxu1 %v6336_v48  ;;  %2735 = vmatprep.mubr.f32.mxu0 %v6336_v48  ;;  %v4539_v10 = vld [vmem:[%s8529_s3 + $0x360] sm:$0xff]  ;;  %v5389_v19 = vpack.c.bf16 %v4542_v39, %v4538_v24  ;;  %v4575_v39 = vld [vmem:[%s8530_s4 + $0x278] sm:$0xff] }
 0x813   :  { %v5359_v3 = vpack.c.bf16 %v4539_v10, %v4535_v16  ;;  %v4572_v24 = vld [vmem:[%s8530_s4 + $0x260] sm:$0xff]  ;;  %v4570_v16 = vld [vmem:[%s8530_s4 + $0x250] sm:$0xff] }
 0x814   :  { %5344 = vmatpush1.bf16.msra.mxu1 %v5343_v54  ;;  %5376 = vmatpush1.bf16.msra.mxu0 %v5375_v51  ;;  %v4546_v54 = vld [vmem:[%s8529_s3 + $0x398] sm:$0xff]  ;;  %v4574_v10 = vld [vmem:[%s8530_s4 + $0x270] sm:$0xff] }
 0x815   :  { %5346 = vmatprep.subr.bf16.mxu1 %v5345_v21  ;;  %5378 = vmatprep.subr.bf16.mxu0 %v5377_v42  ;;  %v4550_v51 = vld [vmem:[%s8529_s3 + $0x3b8] sm:$0xff]  ;;  %v4543_v21 = vld [vmem:[%s8529_s3 + $0x380] sm:$0xff] }
 0x816   :  { %v4547_v42 = vld [vmem:[%s8529_s3 + $0x3a0] sm:$0xff]  ;;  %v5393_v56 = vpack.c.bf16 %v4550_v51, %v4546_v54  ;;  %v4583_v51 = vld [vmem:[%s8530_s4 + $0x2b8] sm:$0xff] }
 0x817   :  { %v5363_v22 = vpack.c.bf16 %v4547_v42, %v4543_v21  ;;  %v4580_v54 = vld [vmem:[%s8530_s4 + $0x2a0] sm:$0xff]  ;;  %v4578_v21 = vld [vmem:[%s8530_s4 + $0x290] sm:$0xff] }
 0x818   :  { %5348 = vmatpush1.bf16.msra.mxu1 %v5347_v52  ;;  %5380 = vmatpush1.bf16.msra.mxu0 %v5379_v58  ;;  %v4554_v52 = vld [vmem:[%s8529_s3 + $0x3d8] sm:$0xff]  ;;  %v4582_v42 = vld [vmem:[%s8530_s4 + $0x2b0] sm:$0xff] }
 0x819   :  { %5350 = vmatprep.subr.bf16.mxu1 %v5349_v38  ;;  %5382 = vmatprep.subr.bf16.mxu0 %v5381_v29  ;;  %v4558_v58 = vld [vmem:[%s8529_s3 + $0x3f8] sm:$0xff]  ;;  %v4551_v38 = vld [vmem:[%s8529_s3 + $0x3c0] sm:$0xff]  ;;  %v5365_v29 = vpack.c.bf16 %v4556_v45, %v4552_v26 }
 0x81a   :  { %v5397_v36 = vpack.c.bf16 %v4558_v58, %v4554_v52  ;;  %v5367_v13 = vpack.c.bf16 %v4555_v53, %v4551_v38  ;;  %v4584_v45 = vld [vmem:[%s8530_s4 + $0x2c0] sm:$0xff]  ;;  %v4591_v58 = vld [vmem:[%s8530_s4 + $0x2f8] sm:$0xff]  ;;  %v4586_v38 = vld [vmem:[%s8530_s4 + $0x2d0] sm:$0xff] }
 0x81b   :  { %v4588_v52 = vld [vmem:[%s8530_s4 + $0x2e0] sm:$0xff] }
 0x81c   :  { %5352 = vmatpush1.bf16.msra.mxu1 %v5351_v43  ;;  %5384 = vmatpush1.bf16.msra.mxu0 %v5383_v60 }
 0x81d   :  { %5354 = vmatprep.subr.bf16.mxu1 %v5353_v63  ;;  %5386 = vmatprep.subr.bf16.mxu0 %v5385_v9  ;;  %v7861_v63 = vpack.c.bf16 %v4566_v49, %v4562_v1  ;;  %v4569_v9 = vld [vmem:[%s8530_s4 + $0x248] sm:$0xff] }
 0x81e   :  { %v7875_v62 = vpack.c.bf16 %v4573_v23, %v4569_v9  ;;  %v4601_v1 = vld [vmem:[%s8530_s4 + $0x348] sm:$0xff] }
 0x81f   :  { %v4605_v49 = vld [vmem:[%s8530_s4 + $0x368] sm:$0xff] }
 0x820   :  { %5356 = vmatpush1.bf16.msra.mxu1 %v5355_v40  ;;  %5388 = vmatpush1.bf16.msra.mxu0 %v5387_v59  ;;  %v7886_v40 = vpack.c.bf16 %v4572_v24, %v4568_v28  ;;  %v7888_v59 = vpack.c.bf16 %v4575_v39, %v4571_v11  ;;  %v8013_v23 = vpack.c.bf16 %v4605_v49, %v4601_v1  ;;  %v4600_v11 = vld [vmem:[%s8530_s4 + $0x340] sm:$0xff]  ;;  %v4603_v24 = vld [vmem:[%s8530_s4 + $0x358] sm:$0xff]  ;;  %v4622_v49 = vld [vmem:[%s8530_s4 + $0x3f0] sm:$0xff] }
 0x821   :  { %5358 = vmatprep.subr.bf16.mxu1 %v5357_v18  ;;  %5390 = vmatprep.subr.bf16.mxu0 %v5389_v19  ;;  %v7897_v18 = vpack.c.bf16 %v4574_v10, %v4570_v16  ;;  %v4577_v19 = vld [vmem:[%s8530_s4 + $0x288] sm:$0xff]  ;;  %v4604_v28 = vld [vmem:[%s8530_s4 + $0x360] sm:$0xff]  ;;  %v4607_v39 = vld [vmem:[%s8530_s4 + $0x378] sm:$0xff] }
 0x822   :  { %v7911_v35 = vpack.c.bf16 %v4581_v31, %v4577_v19  ;;  %v4602_v16 = vld [vmem:[%s8530_s4 + $0x350] sm:$0xff]  ;;  %v8035_v19 = vpack.c.bf16 %v4604_v28, %v4600_v11  ;;  %v8037_v31 = vpack.c.bf16 %v4607_v39, %v4603_v24 }
 0x823   :  { %v4606_v10 = vld [vmem:[%s8530_s4 + $0x370] sm:$0xff] }
 0x824   :  { %5360 = vmatpush1.bf16.msra.mxu1 %v5359_v3  ;;  %5392 = vmatpush1.bf16.msra.mxu0 %v5391_v4  ;;  %v7922_v3 = vpack.c.bf16 %v4580_v54, %v4576_v37  ;;  %v7924_v4 = vpack.c.bf16 %v4583_v51, %v4579_v17  ;;  %v4609_v17 = vld [vmem:[%s8530_s4 + $0x388] sm:$0xff]  ;;  %v4608_v54 = vld [vmem:[%s8530_s4 + $0x380] sm:$0xff]  ;;  %v8050_v51 = vpack.c.bf16 %v4606_v10, %v4602_v16 }
 0x825   :  { %5362 = vmatprep.subr.bf16.mxu1 %v5361_v55  ;;  %5394 = vmatprep.subr.bf16.mxu0 %v5393_v56  ;;  %v7933_v55 = vpack.c.bf16 %v4582_v42, %v4578_v21  ;;  %v4585_v56 = vld [vmem:[%s8530_s4 + $0x2c8] sm:$0xff]  ;;  %v4612_v42 = vld [vmem:[%s8530_s4 + $0x3a0] sm:$0xff] }
 0x826   :  { %v7947_v26 = vpack.c.bf16 %v4589_v41, %v4585_v56  ;;  %v4613_v37 = vld [vmem:[%s8530_s4 + $0x3a8] sm:$0xff]  ;;  %v4611_v56 = vld [vmem:[%s8530_s4 + $0x398] sm:$0xff] }
 0x827   :  { %v8052_v21 = vpack.c.bf16 %v4613_v37, %v4609_v17  ;;  %v4615_v41 = vld [vmem:[%s8530_s4 + $0x3b8] sm:$0xff] }
 0x828   :  { %5364 = vmatpush1.bf16.msra.mxu1 %v5363_v22  ;;  %5396 = vmatpush1.bf16.msra.mxu0 %v5395_v50  ;;  %v7958_v22 = vpack.c.bf16 %v4588_v52, %v4584_v45  ;;  %v7960_v50 = vpack.c.bf16 %v4591_v58, %v4587_v14  ;;  %v8064_v14 = vpack.c.bf16 %v4615_v41, %v4611_v56  ;;  %v4610_v45 = vld [vmem:[%s8530_s4 + $0x390] sm:$0xff]  ;;  %v4617_v58 = vld [vmem:[%s8530_s4 + $0x3c8] sm:$0xff] }
 0x829   :  { %5366 = vmatprep.subr.bf16.mxu1 %v5365_v29  ;;  %5398 = vmatprep.subr.bf16.mxu0 %v5397_v36  ;;  %v4590_v29 = vld [vmem:[%s8530_s4 + $0x2f0] sm:$0xff]  ;;  %v4593_v36 = vld [vmem:[%s8530_s4 + $0x308] sm:$0xff] }
 0x82a   :  { %v7972_v53 = vpack.c.bf16 %v4590_v29, %v4586_v38  ;;  %v4614_v52 = vld [vmem:[%s8530_s4 + $0x3b0] sm:$0xff]  ;;  %v4621_v38 = vld [vmem:[%s8530_s4 + $0x3e8] sm:$0xff]  ;;  %v8079_v29 = vpack.c.bf16 %v4612_v42, %v4608_v54 }
 0x82c   :  { %5368 = vmatpush1.bf16.msra.mxu1 %v5367_v13  ;;  %5400 = vmatpush1.bf16.msra.mxu0 %v5399_v30  ;;  %v4596_v13 = vld [vmem:[%s8530_s4 + $0x320] sm:$0xff]  ;;  %v7985_v30 = vpack.c.bf16 %v4597_v57, %v4593_v36  ;;  %v8083_v36 = vpack.c.bf16 %v4614_v52, %v4610_v45  ;;  %v8085_v57 = vpack.c.bf16 %v4621_v38, %v4617_v58 }
 0x82f   :  { %2623 = vmatmul.mubr.f32.vlgmr.msra.gmra.mrb[16].mxu1 %v7019_v6  ;;  %2736 = vmatmul.mubr.f32.vlgmr.msra.gmra.mrb[24].mxu0 %v7019_v6  ;;  %v4561_v6 = vld [vmem:[%s8530_s4 + $0x208] sm:$0xff] }
 0x830   :  { %2628 = vmatprep.mubr.f32.mxu1 %v6336_v48  ;;  %2741 = vmatprep.mubr.f32.mxu0 %v6336_v48 }
 0x833   :  { %2629 = vmatmul.mubr.f32.gmra.mrb[18].mxu1 %v7063_v47  ;;  %2742 = vmatmul.mubr.f32.gmra.mrb[26].mxu0 %v7063_v47  ;;  %v4565_v47 = vld [vmem:[%s8530_s4 + $0x228] sm:$0xff] }
 0x834   :  { %2634 = vmatprep.mubr.f32.mxu1 %v6336_v48  ;;  %2747 = vmatprep.mubr.f32.mxu0 %v6336_v48 }
 0x837   :  { %2635 = vmatmul.mubr.f32.gmra.mrb[20].mxu1 %v7199_v15  ;;  %2748 = vmatmul.mubr.f32.gmra.mrb[28].mxu0 %v7199_v15  ;;  %v4563_v15 = vld [vmem:[%s8530_s4 + $0x218] sm:$0xff] }
 0x838   :  { %2640 = vmatprep.mubr.f32.mxu1 %v6336_v48  ;;  %2753 = vmatprep.mubr.f32.mxu0 %v6336_v48 }
 0x83b   :  { %2641 = vmatmul.mubr.f32.gmra.mrb[22].mxu1 %v7413_v34  ;;  %2754 = vmatmul.mubr.f32.gmra.mrb[30].mxu0 %v7413_v34  ;;  %v7839_v34 = vpack.c.bf16 %v4565_v47, %v4561_v6  ;;  %v7987_v6 = vpack.c.bf16 %v4596_v13, %v4592_v32  ;;  %v4595_v47 = vld [vmem:[%s8530_s4 + $0x318] sm:$0xff] }
 0x83c   :  { %2646 = vmatprep.mubr.f32.mxu1 %v6336_v48  ;;  %2759 = vmatprep.mubr.f32.mxu0 %v6336_v48  ;;  %v4619_v32 = vld [vmem:[%s8530_s4 + $0x3d8] sm:$0xff] }
 0x83d   :  { %5402 = vmatprep.subr.bf16.mxu1 %v7839_v34  ;;  %v4623_v13 = vld [vmem:[%s8530_s4 + $0x3f8] sm:$0xff] }
 0x83f   :  { %2647 = vmatmul.mubr.f32.gmra.mrb[24].mxu1 %v7459_v12  ;;  %2760 = vmatmul.mubr.f32.gmra.mrb[32].mxu0 %v7459_v12  ;;  %v4560_v12 = vld [vmem:[%s8530_s4 + $0x200] sm:$0xff] }
 0x840   :  { %2652 = vmatprep.mubr.f32.mxu1 %v6336_v48  ;;  %2765 = vmatprep.mubr.f32.mxu0 %v6336_v48 }
 0x843   :  { %2653 = vmatmul.mubr.f32.gmra.mrb[26].mxu1 %v7503_v44  ;;  %2766 = vmatmul.mubr.f32.gmra.mrb[34].mxu0 %v7503_v44  ;;  %v4564_v44 = vld [vmem:[%s8530_s4 + $0x220] sm:$0xff] }
 0x844   :  { %2658 = vmatprep.mubr.f32.mxu1 %v6336_v48  ;;  %2771 = vmatprep.mubr.f32.mxu0 %v6336_v48  ;;  %v7850_v43 = vpack.c.bf16 %v4564_v44, %v4560_v12  ;;  %v4594_v12 = vld [vmem:[%s8530_s4 + $0x310] sm:$0xff] }
 0x846   :  { %5404 = vmatpush1.bf16.msra.mxu1 %v7850_v43 }
 0x847   :  { %2659 = vmatmul.mubr.f32.gmra.mrb[28].mxu1 %v7646_v8  ;;  %2772 = vmatmul.mubr.f32.gmra.mrb[36].mxu0 %v7646_v8  ;;  %v4567_v8 = vld [vmem:[%s8530_s4 + $0x238] sm:$0xff] }
 0x848   :  { %2664 = vmatprep.mubr.f32.mxu1 %v6336_v48  ;;  %2777 = vmatprep.mubr.f32.mxu0 %v6336_v48  ;;  %v7852_v60 = vpack.c.bf16 %v4567_v8, %v4563_v15  ;;  %v4599_v15 = vld [vmem:[%s8530_s4 + $0x338] sm:$0xff]  ;;  %v4598_v8 = vld [vmem:[%s8530_s4 + $0x330] sm:$0xff] }
 0x849   :  { %5406 = vmatprep.subr.bf16.mxu1 %v7875_v62  ;;  %v7999_v44 = vpack.c.bf16 %v4599_v15, %v4595_v47  ;;  %v8011_v9 = vpack.c.bf16 %v4598_v8, %v4594_v12  ;;  %v4616_v47 = vld [vmem:[%s8530_s4 + $0x3c0] sm:$0xff]  ;;  %v8103_v12 = vpack.c.bf16 %v4623_v13, %v4619_v32  ;;  %v4618_v8 = vld [vmem:[%s8530_s4 + $0x3d0] sm:$0xff] }
 0x84a   :  { %5434 = vmatprep.subr.bf16.mxu0 %v7852_v60  ;;  %5408 = vmatpush1.bf16.msra.mxu1 %v7886_v40  ;;  %v4620_v15 = vld [vmem:[%s8530_s4 + $0x3e0] sm:$0xff]  ;;  %v8114_v11 = vpack.c.bf16 %v4622_v49, %v4618_v8 }
 0x84b   :  { %5436 = vmatpush1.bf16.msra.mxu0 %v7861_v63  ;;  %5410 = vmatprep.subr.bf16.mxu1 %v7911_v35  ;;  %v8108_v1 = vpack.c.bf16 %v4620_v15, %v4616_v47 }
 0x84c   :  { %5438 = vmatprep.subr.bf16.mxu0 %v7888_v59 }
 0x84e   :  { %5412 = vmatpush1.bf16.msra.mxu1 %v7922_v3 }
 0x84f   :  { %5440 = vmatpush1.bf16.msra.mxu0 %v7897_v18  ;;  %5414 = vmatprep.subr.bf16.mxu1 %v7947_v26 }
 0x850   :  { %5442 = vmatprep.subr.bf16.mxu0 %v7924_v4 }
 0x852   :  { %5416 = vmatpush1.bf16.msra.mxu1 %v7958_v22 }
 0x853   :  { %5444 = vmatpush1.bf16.msra.mxu0 %v7933_v55  ;;  %5418 = vmatprep.subr.bf16.mxu1 %v7985_v30 }
 0x854   :  { %5446 = vmatprep.subr.bf16.mxu0 %v7960_v50 }
 0x856   :  { %5420 = vmatpush1.bf16.msra.mxu1 %v7987_v6 }
 0x857   :  { %5448 = vmatpush1.bf16.msra.mxu0 %v7972_v53  ;;  %5422 = vmatprep.subr.bf16.mxu1 %v8013_v23 }
 0x858   :  { %5450 = vmatprep.subr.bf16.mxu0 %v7999_v44 }
 0x85a   :  { %5424 = vmatpush1.bf16.msra.mxu1 %v8035_v19 }
 0x85b   :  { %5452 = vmatpush1.bf16.msra.mxu0 %v8011_v9  ;;  %5426 = vmatprep.subr.bf16.mxu1 %v8052_v21 }
 0x85c   :  { %5454 = vmatprep.subr.bf16.mxu0 %v8037_v31 }
 0x85e   :  { %5428 = vmatpush1.bf16.msra.mxu1 %v8079_v29 }
 0x85f   :  { %5456 = vmatpush1.bf16.msra.mxu0 %v8050_v51  ;;  %5430 = vmatprep.subr.bf16.mxu1 %v8085_v57 }
 0x860   :  { %5458 = vmatprep.subr.bf16.mxu0 %v8064_v14 }
 0x862   :  { %5432 = vmatpush1.bf16.msra.mxu1 %v8108_v1 }
 0x863   :  { %5460 = vmatpush1.bf16.msra.mxu0 %v8083_v36  ;;  %5466 = vmatprep.subr.bf16.mxu1 %v7839_v34 }
 0x864   :  { %5462 = vmatprep.subr.bf16.mxu0 %v8103_v12 }
 0x867   :  { %5464 = vmatpush1.bf16.msra.mxu0 %v8114_v11 }
 0x868   :  { %5498 = vmatprep.subr.bf16.mxu0 %v7852_v60 }
 0x8e2   :  { %v2357_v28 = vpop.f32.mrb[14].mxu1  ;;  %v2428_v24 = vpop.f32.mrb[22].mxu0 }
 0x8e3   :  { %v5963_v39 = vadd.f32 %v2357_v28, %v6996_v5  ;;  %v2359_v16 = vpop.f32.mrb[15].mxu1  ;;  %v2430_v10 = vpop.f32.mrb[23].mxu0  ;;  %v5979_v41 = vadd.f32 %v2428_v24, %v7013_v27 }
 0x8e4   :  { %v5964_v17 = vadd.f32 %v2359_v16, %v7000_v46  ;;  %v5980_v42 = vadd.f32 %v2430_v10, %v7007_v20 }
 0x8e5   :  { %v4492_v37 = vmul.f32 -1.442695, %v5963_v39 }
 0x8e6   :  { %v4493_v54 = vmul.f32 -1.442695, %v5964_v17  ;;  %v4494_v56 = vmul.f32 -1.442695, %v5980_v42 }
 0x8e7   :  { %6192 = vpow2.f32 %v4492_v37 }
 0x8e8   :  { %6194 = vpow2.f32 %v4493_v54 }
 0x8e9   :  { %6196 = vpow2.f32 %v4494_v56 }
 0x8ea   :  { %6198 = vtanh.f32 %v5979_v41 }
 0x8f1   :  { %v6193_v45 = vpop.eup %6192 }
 0x8f2   :  { %v6195_v52 = vpop.eup %6194  ;;  %v2440_v58 = vadd.f32 1.0, %v6193_v45 }
 0x8f3   :  { %v2446_v38 = vadd.f32 1.0, %v6195_v52  ;;  %v6197_v5 = vpop.eup %6196 }
 0x8f4   :  { %6200 = vrcp.f32 %v2440_v58  ;;  %v6199_v32 = vpop.eup %6198  ;;  %v2453_v15 = vadd.f32 1.0, %v6197_v5 }
 0x8f5   :  { %6202 = vrcp.f32 %v2446_v38 }
 0x8f6   :  { %6204 = vrcp.f32 %v2453_v15 }
 0x8fe   :  { %v6201_v46 = vpop.eup %6200 }
 0x8ff   :  { %v6203_v13 = vpop.eup %6202  ;;  %v2457_v47 = vmul.f32 %v6201_v46, %v6199_v32 }
 0x900   :  { %v2456_v8 = vmul.f32 %v6203_v13, %v7613_v33  ;;  %v6205_v27 = vpop.eup %6204  ;;  %v4559_v33 = vld [vmem:[%s8532_s5 + $0x4] sm:$0xf] }
 0x901   :  { %v8168_v24 = vrot.slane %v4559_v33, %v274_v0  ;;  %v8172_v39 = vrot.slane %v4559_v33, %v278_v2  ;;  %v8178_v45 = vrot.slane %v4559_v33, %v286_v7  ;;  %v8183_v2 = vrot.slane %v4559_v33, %v282_v25 }
 0x902   :  { %v2458_v20 = vadd.f32 %v2457_v47, %v2456_v8 }
 0x904   :  { %6206 = vtanh.f32 %v2458_v20 }
 0x90e   :  { %v6207_v49 = vpop.eup %6206 }
 0x90f   :  { %v2460_v28 = vmul.f32 %v6207_v49, %v6205_v27 }
 0x911   :  { %2665 = vmatmul.mubr.f32.gmra.mrb[30].mxu1 %v2460_v28  ;;  %2778 = vmatmul.mubr.f32.gmra.mrb[38].mxu0 %v2460_v28 }
 0x912   :  { %2949 = vmatprep.mubr.f32.mxu1 %v6336_v48  ;;  %3020 = vmatprep.mubr.f32.mxu0 %v6336_v48 }
 0x915   :  { %2950 = vmatmul.mubr.f32.vlgmr.msra.gmra.mrb[16].mxu1 %v6336_v48  ;;  %3021 = vmatmul.mubr.f32.vlgmr.msra.gmra.mrb[24].mxu0 %v6336_v48 }
 0x916   :  { %5468 = vmatpush1.bf16.msra.mxu1 %v7850_v43  ;;  %5500 = vmatpush1.bf16.msra.mxu0 %v7861_v63 }
 0x917   :  { %5470 = vmatprep.subr.bf16.mxu1 %v7875_v62  ;;  %5502 = vmatprep.subr.bf16.mxu0 %v7888_v59 }
 0x918   :  { %3123 = vmatprep.mubr.f32.mxu1 %v6336_v48  ;;  %3194 = vmatprep.mubr.f32.mxu0 %v6336_v48 }
 0x91a   :  { %5472 = vmatpush1.bf16.msra.mxu1 %v7886_v40  ;;  %5504 = vmatpush1.bf16.msra.mxu0 %v7897_v18 }
 0x91b   :  { %5474 = vmatprep.subr.bf16.mxu1 %v7911_v35  ;;  %5506 = vmatprep.subr.bf16.mxu0 %v7924_v4 }
 0x91e   :  { %5476 = vmatpush1.bf16.msra.mxu1 %v7922_v3  ;;  %5508 = vmatpush1.bf16.msra.mxu0 %v7933_v55 }
 0x91f   :  { %5478 = vmatprep.subr.bf16.mxu1 %v7947_v26  ;;  %5510 = vmatprep.subr.bf16.mxu0 %v7960_v50 }
 0x922   :  { %5480 = vmatpush1.bf16.msra.mxu1 %v7958_v22  ;;  %5512 = vmatpush1.bf16.msra.mxu0 %v7972_v53 }
 0x923   :  { %5482 = vmatprep.subr.bf16.mxu1 %v7985_v30  ;;  %5514 = vmatprep.subr.bf16.mxu0 %v7999_v44 }
 0x926   :  { %5484 = vmatpush1.bf16.msra.mxu1 %v7987_v6  ;;  %5516 = vmatpush1.bf16.msra.mxu0 %v8011_v9 }
 0x927   :  { %5486 = vmatprep.subr.bf16.mxu1 %v8013_v23  ;;  %5518 = vmatprep.subr.bf16.mxu0 %v8037_v31 }
 0x92a   :  { %5488 = vmatpush1.bf16.msra.mxu1 %v8035_v19  ;;  %5520 = vmatpush1.bf16.msra.mxu0 %v8050_v51 }
 0x92b   :  { %5490 = vmatprep.subr.bf16.mxu1 %v8052_v21  ;;  %5522 = vmatprep.subr.bf16.mxu0 %v8064_v14 }
 0x92e   :  { %5492 = vmatpush1.bf16.msra.mxu1 %v8079_v29  ;;  %5524 = vmatpush1.bf16.msra.mxu0 %v8083_v36 }
 0x92f   :  { %5494 = vmatprep.subr.bf16.mxu1 %v8085_v57  ;;  %5526 = vmatprep.subr.bf16.mxu0 %v8103_v12 }
 0x932   :  { %5496 = vmatpush1.bf16.msra.mxu1 %v8108_v1  ;;  %5528 = vmatpush1.bf16.msra.mxu0 %v8114_v11 }
 0x933   :  { %5530 = vmatprep.subr.bf16.mxu1 %v7839_v34  ;;  %5562 = vmatprep.subr.bf16.mxu0 %v7852_v60 }
 0x9e8   :  { %v2951_v16 = vpop.f32.mrb[16].mxu1  ;;  %v3022_v10 = vpop.f32.mrb[24].mxu0 }
 0x9e9   :  { %v5981_v17 = vadd.f32 %v2951_v16, %v8168_v24  ;;  %v2953_v37 = vpop.f32.mrb[17].mxu1  ;;  %v3024_v54 = vpop.f32.mrb[25].mxu0  ;;  %v5997_v58 = vadd.f32 %v3022_v10, %v8183_v2 }
 0x9ea   :  { %v5982_v42 = vadd.f32 %v2953_v37, %v8172_v39  ;;  %v5998_v0 = vadd.f32 %v3024_v54, %v8178_v45 }
 0x9eb   :  { %v4624_v56 = vmul.f32 -1.442695, %v5981_v17 }
 0x9ec   :  { %v4625_v41 = vmul.f32 -1.442695, %v5982_v42  ;;  %v4626_v52 = vmul.f32 -1.442695, %v5998_v0 }
 0x9ed   :  { %6208 = vpow2.f32 %v4624_v56 }
 0x9ee   :  { %6210 = vpow2.f32 %v4625_v41 }
 0x9ef   :  { %6212 = vpow2.f32 %v4626_v52 }
 0x9f0   :  { %6214 = vtanh.f32 %v5997_v58 }
 0x9f7   :  { %v6209_v38 = vpop.eup %6208 }
 0x9f8   :  { %v6211_v5 = vpop.eup %6210  ;;  %v3034_v32 = vadd.f32 1.0, %v6209_v38 }
 0x9f9   :  { %v3040_v46 = vadd.f32 1.0, %v6211_v5  ;;  %v6213_v7 = vpop.eup %6212 }
 0x9fa   :  { %6216 = vrcp.f32 %v3034_v32  ;;  %v6215_v13 = vpop.eup %6214  ;;  %v3047_v20 = vadd.f32 1.0, %v6213_v7 }
 0x9fb   :  { %6218 = vrcp.f32 %v3040_v46 }
 0x9fc   :  { %6220 = vrcp.f32 %v3047_v20 }
 0xa04   :  { %v6217_v47 = vpop.eup %6216 }
 0xa05   :  { %v6219_v15 = vpop.eup %6218  ;;  %v3051_v8 = vmul.f32 %v6217_v47, %v6215_v13 }
 0xa06   :  { %v3050_v61 = vmul.f32 0.0, %v6219_v15  ;;  %v6221_v27 = vpop.eup %6220 }
 0xa08   :  { %v8186_v25 = vadd.f32 %v3051_v8, %v3050_v61 }
 0xa0a   :  { %6222 = vtanh.f32 %v8186_v25 }
 0xa14   :  { %v6223_v49 = vpop.eup %6222 }
 0xa15   :  { %v3054_v28 = vmul.f32 %v6223_v49, %v6221_v27 }
 0xa17   :  { %3124 = vmatmul.mubr.f32.vlgmr.msra.gmra.mrb[18].mxu1 %v3054_v28  ;;  %3195 = vmatmul.mubr.f32.vlgmr.msra.gmra.mrb[26].mxu0 %v3054_v28 }
 0xa18   :  { %5532 = vmatpush1.bf16.msra.mxu1 %v7850_v43  ;;  %5564 = vmatpush1.bf16.msra.mxu0 %v7861_v63 }
 0xa19   :  { %5534 = vmatprep.subr.bf16.mxu1 %v7875_v62  ;;  %5566 = vmatprep.subr.bf16.mxu0 %v7888_v59 }
 0xa1a   :  { %3297 = vmatprep.mubr.f32.mxu1 %v6336_v48  ;;  %3368 = vmatprep.mubr.f32.mxu0 %v6336_v48 }
 0xa1c   :  { %5536 = vmatpush1.bf16.msra.mxu1 %v7886_v40  ;;  %5568 = vmatpush1.bf16.msra.mxu0 %v7897_v18 }
 0xa1d   :  { %5538 = vmatprep.subr.bf16.mxu1 %v7911_v35  ;;  %5570 = vmatprep.subr.bf16.mxu0 %v7924_v4 }
 0xa20   :  { %5540 = vmatpush1.bf16.msra.mxu1 %v7922_v3  ;;  %5572 = vmatpush1.bf16.msra.mxu0 %v7933_v55 }
 0xa21   :  { %5542 = vmatprep.subr.bf16.mxu1 %v7947_v26  ;;  %5574 = vmatprep.subr.bf16.mxu0 %v7960_v50 }
 0xa24   :  { %5544 = vmatpush1.bf16.msra.mxu1 %v7958_v22  ;;  %5576 = vmatpush1.bf16.msra.mxu0 %v7972_v53 }
 0xa25   :  { %5546 = vmatprep.subr.bf16.mxu1 %v7985_v30  ;;  %5578 = vmatprep.subr.bf16.mxu0 %v7999_v44 }
 0xa28   :  { %5548 = vmatpush1.bf16.msra.mxu1 %v7987_v6  ;;  %5580 = vmatpush1.bf16.msra.mxu0 %v8011_v9 }
 0xa29   :  { %5550 = vmatprep.subr.bf16.mxu1 %v8013_v23  ;;  %5582 = vmatprep.subr.bf16.mxu0 %v8037_v31 }
 0xa2c   :  { %5552 = vmatpush1.bf16.msra.mxu1 %v8035_v19  ;;  %5584 = vmatpush1.bf16.msra.mxu0 %v8050_v51 }
 0xa2d   :  { %5554 = vmatprep.subr.bf16.mxu1 %v8052_v21  ;;  %5586 = vmatprep.subr.bf16.mxu0 %v8064_v14 }
 0xa30   :  { %5556 = vmatpush1.bf16.msra.mxu1 %v8079_v29  ;;  %5588 = vmatpush1.bf16.msra.mxu0 %v8083_v36 }
 0xa31   :  { %5558 = vmatprep.subr.bf16.mxu1 %v8085_v57  ;;  %5590 = vmatprep.subr.bf16.mxu0 %v8103_v12 }
 0xa34   :  { %5560 = vmatpush1.bf16.msra.mxu1 %v8108_v1  ;;  %5592 = vmatpush1.bf16.msra.mxu0 %v8114_v11 }
 0xa35   :  { %5594 = vmatprep.subr.bf16.mxu1 %v7839_v34  ;;  %5626 = vmatprep.subr.bf16.mxu0 %v7852_v60 }
 0xaea   :  { %v3125_v33 = vpop.f32.mrb[18].mxu1  ;;  %v3196_v16 = vpop.f32.mrb[26].mxu0 }
 0xaeb   :  { %v5983_v10 = vadd.f32 %v3125_v33, %v8168_v24  ;;  %v3127_v17 = vpop.f32.mrb[19].mxu1  ;;  %v3198_v37 = vpop.f32.mrb[27].mxu0  ;;  %v5999_v52 = vadd.f32 %v3196_v16, %v8183_v2 }
 0xaec   :  { %v5984_v54 = vadd.f32 %v3127_v17, %v8172_v39  ;;  %v6000_v41 = vadd.f32 %v3198_v37, %v8178_v45 }
 0xaed   :  { %v4627_v42 = vmul.f32 -1.442695, %v5983_v10 }
 0xaee   :  { %v4628_v56 = vmul.f32 -1.442695, %v5984_v54  ;;  %v4629_v0 = vmul.f32 -1.442695, %v6000_v41 }
 0xaef   :  { %6224 = vpow2.f32 %v4627_v42 }
 0xaf0   :  { %6226 = vpow2.f32 %v4628_v56 }
 0xaf1   :  { %6228 = vpow2.f32 %v4629_v0 }
 0xaf2   :  { %6230 = vtanh.f32 %v5999_v52 }
 0xaf9   :  { %v6225_v58 = vpop.eup %6224 }
 0xafa   :  { %v6227_v38 = vpop.eup %6226  ;;  %v3208_v5 = vadd.f32 1.0, %v6225_v58 }
 0xafb   :  { %v3214_v32 = vadd.f32 1.0, %v6227_v38  ;;  %v6229_v46 = vpop.eup %6228 }
 0xafc   :  { %6232 = vrcp.f32 %v3208_v5  ;;  %v6231_v7 = vpop.eup %6230  ;;  %v3221_v8 = vadd.f32 1.0, %v6229_v46 }
 0xafd   :  { %6234 = vrcp.f32 %v3214_v32 }
 0xafe   :  { %6236 = vrcp.f32 %v3221_v8 }
 0xb06   :  { %v6233_v13 = vpop.eup %6232 }
 0xb07   :  { %v6235_v47 = vpop.eup %6234  ;;  %v3225_v15 = vmul.f32 %v6233_v13, %v6231_v7 }
 0xb08   :  { %v3224_v20 = vmul.f32 %v6235_v47, %v8186_v25  ;;  %v6237_v27 = vpop.eup %6236 }
 0xb0a   :  { %v8228_v61 = vadd.f32 %v3225_v15, %v3224_v20 }
 0xb0c   :  { %6238 = vtanh.f32 %v8228_v61 }
 0xb16   :  { %v6239_v49 = vpop.eup %6238 }
 0xb17   :  { %v3228_v28 = vmul.f32 %v6239_v49, %v6237_v27 }
 0xb19   :  { %3298 = vmatmul.mubr.f32.vlgmr.msra.gmra.mrb[20].mxu1 %v3228_v28  ;;  %3369 = vmatmul.mubr.f32.vlgmr.msra.gmra.mrb[28].mxu0 %v3228_v28 }
 0xb1a   :  { %5596 = vmatpush1.bf16.msra.mxu1 %v7850_v43  ;;  %5628 = vmatpush1.bf16.msra.mxu0 %v7861_v63 }
 0xb1b   :  { %5598 = vmatprep.subr.bf16.mxu1 %v7875_v62  ;;  %5630 = vmatprep.subr.bf16.mxu0 %v7888_v59 }
 0xb1c   :  { %3471 = vmatprep.mubr.f32.mxu1 %v6336_v48  ;;  %3542 = vmatprep.mubr.f32.mxu0 %v6336_v48 }
 0xb1e   :  { %5600 = vmatpush1.bf16.msra.mxu1 %v7886_v40  ;;  %5632 = vmatpush1.bf16.msra.mxu0 %v7897_v18 }
 0xb1f   :  { %5602 = vmatprep.subr.bf16.mxu1 %v7911_v35  ;;  %5634 = vmatprep.subr.bf16.mxu0 %v7924_v4 }
 0xb22   :  { %5604 = vmatpush1.bf16.msra.mxu1 %v7922_v3  ;;  %5636 = vmatpush1.bf16.msra.mxu0 %v7933_v55 }
 0xb23   :  { %5606 = vmatprep.subr.bf16.mxu1 %v7947_v26  ;;  %5638 = vmatprep.subr.bf16.mxu0 %v7960_v50 }
 0xb26   :  { %5608 = vmatpush1.bf16.msra.mxu1 %v7958_v22  ;;  %5640 = vmatpush1.bf16.msra.mxu0 %v7972_v53 }
 0xb27   :  { %5610 = vmatprep.subr.bf16.mxu1 %v7985_v30  ;;  %5642 = vmatprep.subr.bf16.mxu0 %v7999_v44 }
 0xb2a   :  { %5612 = vmatpush1.bf16.msra.mxu1 %v7987_v6  ;;  %5644 = vmatpush1.bf16.msra.mxu0 %v8011_v9 }
 0xb2b   :  { %5614 = vmatprep.subr.bf16.mxu1 %v8013_v23  ;;  %5646 = vmatprep.subr.bf16.mxu0 %v8037_v31 }
 0xb2e   :  { %5616 = vmatpush1.bf16.msra.mxu1 %v8035_v19  ;;  %5648 = vmatpush1.bf16.msra.mxu0 %v8050_v51 }
 0xb2f   :  { %5618 = vmatprep.subr.bf16.mxu1 %v8052_v21  ;;  %5650 = vmatprep.subr.bf16.mxu0 %v8064_v14 }
 0xb32   :  { %5620 = vmatpush1.bf16.msra.mxu1 %v8079_v29  ;;  %5652 = vmatpush1.bf16.msra.mxu0 %v8083_v36 }
 0xb33   :  { %5622 = vmatprep.subr.bf16.mxu1 %v8085_v57  ;;  %5654 = vmatprep.subr.bf16.mxu0 %v8103_v12 }
 0xb36   :  { %5624 = vmatpush1.bf16.msra.mxu1 %v8108_v1  ;;  %5656 = vmatpush1.bf16.msra.mxu0 %v8114_v11 }
 0xb37   :  { %5658 = vmatprep.subr.bf16.mxu1 %v7839_v34  ;;  %5690 = vmatprep.subr.bf16.mxu0 %v7852_v60 }
 0xbec   :  { %v3299_v25 = vpop.f32.mrb[20].mxu1  ;;  %v3370_v33 = vpop.f32.mrb[28].mxu0 }
 0xbed   :  { %v5985_v16 = vadd.f32 %v3299_v25, %v8168_v24  ;;  %v3301_v10 = vpop.f32.mrb[21].mxu1  ;;  %v3372_v17 = vpop.f32.mrb[29].mxu0  ;;  %v6001_v0 = vadd.f32 %v3370_v33, %v8183_v2 }
 0xbee   :  { %v5986_v37 = vadd.f32 %v3301_v10, %v8172_v39  ;;  %v6002_v56 = vadd.f32 %v3372_v17, %v8178_v45 }
 0xbef   :  { %v4630_v54 = vmul.f32 -1.442695, %v5985_v16 }
 0xbf0   :  { %v4631_v42 = vmul.f32 -1.442695, %v5986_v37  ;;  %v4632_v41 = vmul.f32 -1.442695, %v6002_v56 }
 0xbf1   :  { %6240 = vpow2.f32 %v4630_v54 }
 0xbf2   :  { %6242 = vpow2.f32 %v4631_v42 }
 0xbf3   :  { %6244 = vpow2.f32 %v4632_v41 }
 0xbf4   :  { %6246 = vtanh.f32 %v6001_v0 }
 0xbfb   :  { %v6241_v52 = vpop.eup %6240 }
 0xbfc   :  { %v6243_v58 = vpop.eup %6242  ;;  %v3382_v38 = vadd.f32 1.0, %v6241_v52 }
 0xbfd   :  { %v3388_v5 = vadd.f32 1.0, %v6243_v58  ;;  %v6245_v32 = vpop.eup %6244 }
 0xbfe   :  { %6248 = vrcp.f32 %v3382_v38  ;;  %v6247_v46 = vpop.eup %6246  ;;  %v3395_v15 = vadd.f32 1.0, %v6245_v32 }
 0xbff   :  { %6250 = vrcp.f32 %v3388_v5 }
 0xc00   :  { %6252 = vrcp.f32 %v3395_v15 }
 0xc08   :  { %v6249_v7 = vpop.eup %6248 }
 0xc09   :  { %v6251_v13 = vpop.eup %6250  ;;  %v3399_v47 = vmul.f32 %v6249_v7, %v6247_v46 }
 0xc0a   :  { %v3398_v8 = vmul.f32 %v6251_v13, %v8228_v61  ;;  %v6253_v27 = vpop.eup %6252 }
 0xc0c   :  { %v8270_v20 = vadd.f32 %v3399_v47, %v3398_v8 }
 0xc0e   :  { %6254 = vtanh.f32 %v8270_v20 }
 0xc18   :  { %v6255_v49 = vpop.eup %6254 }
 0xc19   :  { %v3402_v28 = vmul.f32 %v6255_v49, %v6253_v27 }
 0xc1b   :  { %3472 = vmatmul.mubr.f32.vlgmr.msra.gmra.mrb[22].mxu1 %v3402_v28  ;;  %3543 = vmatmul.mubr.f32.vlgmr.msra.gmra.mrb[30].mxu0 %v3402_v28 }
 0xc1c   :  { %5660 = vmatpush1.bf16.msra.mxu1 %v7850_v43  ;;  %5692 = vmatpush1.bf16.msra.mxu0 %v7861_v63 }
 0xc1d   :  { %5662 = vmatprep.subr.bf16.mxu1 %v7875_v62  ;;  %5694 = vmatprep.subr.bf16.mxu0 %v7888_v59 }
 0xc1e   :  { %3645 = vmatprep.mubr.f32.mxu1 %v6336_v48  ;;  %3716 = vmatprep.mubr.f32.mxu0 %v6336_v48 }
 0xc20   :  { %5664 = vmatpush1.bf16.msra.mxu1 %v7886_v40  ;;  %5696 = vmatpush1.bf16.msra.mxu0 %v7897_v18 }
 0xc21   :  { %5666 = vmatprep.subr.bf16.mxu1 %v7911_v35  ;;  %5698 = vmatprep.subr.bf16.mxu0 %v7924_v4 }
 0xc24   :  { %5668 = vmatpush1.bf16.msra.mxu1 %v7922_v3  ;;  %5700 = vmatpush1.bf16.msra.mxu0 %v7933_v55 }
 0xc25   :  { %5670 = vmatprep.subr.bf16.mxu1 %v7947_v26  ;;  %5702 = vmatprep.subr.bf16.mxu0 %v7960_v50 }
 0xc28   :  { %5672 = vmatpush1.bf16.msra.mxu1 %v7958_v22  ;;  %5704 = vmatpush1.bf16.msra.mxu0 %v7972_v53 }
 0xc29   :  { %5674 = vmatprep.subr.bf16.mxu1 %v7985_v30  ;;  %5706 = vmatprep.subr.bf16.mxu0 %v7999_v44 }
 0xc2c   :  { %5676 = vmatpush1.bf16.msra.mxu1 %v7987_v6  ;;  %5708 = vmatpush1.bf16.msra.mxu0 %v8011_v9 }
 0xc2d   :  { %5678 = vmatprep.subr.bf16.mxu1 %v8013_v23  ;;  %5710 = vmatprep.subr.bf16.mxu0 %v8037_v31 }
 0xc30   :  { %5680 = vmatpush1.bf16.msra.mxu1 %v8035_v19  ;;  %5712 = vmatpush1.bf16.msra.mxu0 %v8050_v51 }
 0xc31   :  { %5682 = vmatprep.subr.bf16.mxu1 %v8052_v21  ;;  %5714 = vmatprep.subr.bf16.mxu0 %v8064_v14 }
 0xc34   :  { %5684 = vmatpush1.bf16.msra.mxu1 %v8079_v29  ;;  %5716 = vmatpush1.bf16.msra.mxu0 %v8083_v36 }
 0xc35   :  { %5686 = vmatprep.subr.bf16.mxu1 %v8085_v57  ;;  %5718 = vmatprep.subr.bf16.mxu0 %v8103_v12 }
 0xc38   :  { %5688 = vmatpush1.bf16.msra.mxu1 %v8108_v1  ;;  %5720 = vmatpush1.bf16.msra.mxu0 %v8114_v11 }
 0xc39   :  { %5722 = vmatprep.subr.bf16.mxu1 %v7839_v34  ;;  %5754 = vmatprep.subr.bf16.mxu0 %v7852_v60 }
 0xcee   :  { %v3473_v61 = vpop.f32.mrb[22].mxu1  ;;  %v3544_v25 = vpop.f32.mrb[30].mxu0 }
 0xcef   :  { %v5987_v33 = vadd.f32 %v3473_v61, %v8168_v24  ;;  %v3475_v16 = vpop.f32.mrb[23].mxu1  ;;  %v3546_v10 = vpop.f32.mrb[31].mxu0  ;;  %v6003_v41 = vadd.f32 %v3544_v25, %v8183_v2 }
 0xcf0   :  { %v5988_v17 = vadd.f32 %v3475_v16, %v8172_v39  ;;  %v6004_v42 = vadd.f32 %v3546_v10, %v8178_v45 }
 0xcf1   :  { %v4633_v37 = vmul.f32 -1.442695, %v5987_v33 }
 0xcf2   :  { %v4634_v54 = vmul.f32 -1.442695, %v5988_v17  ;;  %v4635_v56 = vmul.f32 -1.442695, %v6004_v42 }
 0xcf3   :  { %6256 = vpow2.f32 %v4633_v37 }
 0xcf4   :  { %6258 = vpow2.f32 %v4634_v54 }
 0xcf5   :  { %6260 = vpow2.f32 %v4635_v56 }
 0xcf6   :  { %6262 = vtanh.f32 %v6003_v41 }
 0xcfd   :  { %v6257_v0 = vpop.eup %6256 }
 0xcfe   :  { %v6259_v52 = vpop.eup %6258  ;;  %v3556_v58 = vadd.f32 1.0, %v6257_v0 }
 0xcff   :  { %v3562_v38 = vadd.f32 1.0, %v6259_v52  ;;  %v6261_v5 = vpop.eup %6260 }
 0xd00   :  { %6264 = vrcp.f32 %v3556_v58  ;;  %v6263_v32 = vpop.eup %6262  ;;  %v3569_v47 = vadd.f32 1.0, %v6261_v5 }
 0xd01   :  { %6266 = vrcp.f32 %v3562_v38 }
 0xd02   :  { %6268 = vrcp.f32 %v3569_v47 }
 0xd0a   :  { %v6265_v46 = vpop.eup %6264 }
 0xd0b   :  { %v6267_v7 = vpop.eup %6266  ;;  %v3573_v13 = vmul.f32 %v6265_v46, %v6263_v32 }
 0xd0c   :  { %v3572_v15 = vmul.f32 %v6267_v7, %v8270_v20  ;;  %v6269_v27 = vpop.eup %6268 }
 0xd0e   :  { %v8312_v8 = vadd.f32 %v3573_v13, %v3572_v15 }
 0xd10   :  { %6270 = vtanh.f32 %v8312_v8 }
 0xd1a   :  { %v6271_v49 = vpop.eup %6270 }
 0xd1b   :  { %v3576_v28 = vmul.f32 %v6271_v49, %v6269_v27 }
 0xd1d   :  { %3646 = vmatmul.mubr.f32.vlgmr.msra.gmra.mrb[24].mxu1 %v3576_v28  ;;  %3717 = vmatmul.mubr.f32.vlgmr.msra.gmra.mrb[32].mxu0 %v3576_v28 }
 0xd1e   :  { %5724 = vmatpush1.bf16.msra.mxu1 %v7850_v43  ;;  %5756 = vmatpush1.bf16.msra.mxu0 %v7861_v63 }
 0xd1f   :  { %5726 = vmatprep.subr.bf16.mxu1 %v7875_v62  ;;  %5758 = vmatprep.subr.bf16.mxu0 %v7888_v59 }
 0xd20   :  { %3819 = vmatprep.mubr.f32.mxu1 %v6336_v48  ;;  %3890 = vmatprep.mubr.f32.mxu0 %v6336_v48 }
 0xd22   :  { %5728 = vmatpush1.bf16.msra.mxu1 %v7886_v40  ;;  %5760 = vmatpush1.bf16.msra.mxu0 %v7897_v18 }
 0xd23   :  { %5730 = vmatprep.subr.bf16.mxu1 %v7911_v35  ;;  %5762 = vmatprep.subr.bf16.mxu0 %v7924_v4 }
 0xd26   :  { %5732 = vmatpush1.bf16.msra.mxu1 %v7922_v3  ;;  %5764 = vmatpush1.bf16.msra.mxu0 %v7933_v55 }
 0xd27   :  { %5734 = vmatprep.subr.bf16.mxu1 %v7947_v26  ;;  %5766 = vmatprep.subr.bf16.mxu0 %v7960_v50 }
 0xd2a   :  { %5736 = vmatpush1.bf16.msra.mxu1 %v7958_v22  ;;  %5768 = vmatpush1.bf16.msra.mxu0 %v7972_v53 }
 0xd2b   :  { %5738 = vmatprep.subr.bf16.mxu1 %v7985_v30  ;;  %5770 = vmatprep.subr.bf16.mxu0 %v7999_v44 }
 0xd2e   :  { %5740 = vmatpush1.bf16.msra.mxu1 %v7987_v6  ;;  %5772 = vmatpush1.bf16.msra.mxu0 %v8011_v9 }
 0xd2f   :  { %5742 = vmatprep.subr.bf16.mxu1 %v8013_v23  ;;  %5774 = vmatprep.subr.bf16.mxu0 %v8037_v31 }
 0xd32   :  { %5744 = vmatpush1.bf16.msra.mxu1 %v8035_v19  ;;  %5776 = vmatpush1.bf16.msra.mxu0 %v8050_v51 }
 0xd33   :  { %5746 = vmatprep.subr.bf16.mxu1 %v8052_v21  ;;  %5778 = vmatprep.subr.bf16.mxu0 %v8064_v14 }
 0xd36   :  { %5748 = vmatpush1.bf16.msra.mxu1 %v8079_v29  ;;  %5780 = vmatpush1.bf16.msra.mxu0 %v8083_v36 }
 0xd37   :  { %5750 = vmatprep.subr.bf16.mxu1 %v8085_v57  ;;  %5782 = vmatprep.subr.bf16.mxu0 %v8103_v12 }
 0xd3a   :  { %5752 = vmatpush1.bf16.msra.mxu1 %v8108_v1  ;;  %5784 = vmatpush1.bf16.msra.mxu0 %v8114_v11 }
 0xd3b   :  { %5786 = vmatprep.subr.bf16.mxu1 %v7839_v34  ;;  %5818 = vmatprep.subr.bf16.mxu0 %v7852_v60 }
 0xdf0   :  { %v3647_v20 = vpop.f32.mrb[24].mxu1  ;;  %v3718_v61 = vpop.f32.mrb[32].mxu0 }
 0xdf1   :  { %v5989_v25 = vadd.f32 %v3647_v20, %v8168_v24  ;;  %v3649_v33 = vpop.f32.mrb[25].mxu1  ;;  %v3720_v16 = vpop.f32.mrb[33].mxu0  ;;  %v6005_v56 = vadd.f32 %v3718_v61, %v8183_v2 }
 0xdf2   :  { %v5990_v10 = vadd.f32 %v3649_v33, %v8172_v39  ;;  %v6006_v54 = vadd.f32 %v3720_v16, %v8178_v45 }
 0xdf3   :  { %v4636_v17 = vmul.f32 -1.442695, %v5989_v25 }
 0xdf4   :  { %v4637_v37 = vmul.f32 -1.442695, %v5990_v10  ;;  %v4638_v42 = vmul.f32 -1.442695, %v6006_v54 }
 0xdf5   :  { %6272 = vpow2.f32 %v4636_v17 }
 0xdf6   :  { %6274 = vpow2.f32 %v4637_v37 }
 0xdf7   :  { %6276 = vpow2.f32 %v4638_v42 }
 0xdf8   :  { %6278 = vtanh.f32 %v6005_v56 }
 0xdff   :  { %v6273_v41 = vpop.eup %6272 }
 0xe00   :  { %v6275_v0 = vpop.eup %6274  ;;  %v3730_v52 = vadd.f32 1.0, %v6273_v41 }
 0xe01   :  { %v3736_v58 = vadd.f32 1.0, %v6275_v0  ;;  %v6277_v38 = vpop.eup %6276 }
 0xe02   :  { %6280 = vrcp.f32 %v3730_v52  ;;  %v6279_v5 = vpop.eup %6278  ;;  %v3743_v13 = vadd.f32 1.0, %v6277_v38 }
 0xe03   :  { %6282 = vrcp.f32 %v3736_v58 }
 0xe04   :  { %6284 = vrcp.f32 %v3743_v13 }
 0xe0c   :  { %v6281_v32 = vpop.eup %6280 }
 0xe0d   :  { %v6283_v46 = vpop.eup %6282  ;;  %v3747_v7 = vmul.f32 %v6281_v32, %v6279_v5 }
 0xe0e   :  { %v3746_v47 = vmul.f32 %v6283_v46, %v8312_v8  ;;  %v6285_v27 = vpop.eup %6284 }
 0xe10   :  { %v8354_v15 = vadd.f32 %v3747_v7, %v3746_v47 }
 0xe12   :  { %6286 = vtanh.f32 %v8354_v15 }
 0xe1c   :  { %v6287_v49 = vpop.eup %6286 }
 0xe1d   :  { %v3750_v28 = vmul.f32 %v6287_v49, %v6285_v27  ;;  %v4276_v49 = vld [vmem:[%s8533_s6 + $0x18] sm:$0xff] }
 0xe1f   :  { %3820 = vmatmul.mubr.f32.vlgmr.msra.gmra.mrb[26].mxu1 %v3750_v28  ;;  %3891 = vmatmul.mubr.f32.vlgmr.msra.gmra.mrb[34].mxu0 %v3750_v28 }
 0xe20   :  { %5788 = vmatpush1.bf16.msra.mxu1 %v7850_v43  ;;  %5820 = vmatpush1.bf16.msra.mxu0 %v7861_v63 }
 0xe21   :  { %5790 = vmatprep.subr.bf16.mxu1 %v7875_v62  ;;  %5822 = vmatprep.subr.bf16.mxu0 %v7888_v59 }
 0xe22   :  { %3993 = vmatprep.mubr.f32.mxu1 %v6336_v48  ;;  %4064 = vmatprep.mubr.f32.mxu0 %v6336_v48 }
 0xe24   :  { %5792 = vmatpush1.bf16.msra.mxu1 %v7886_v40  ;;  %5824 = vmatpush1.bf16.msra.mxu0 %v7897_v18 }
 0xe25   :  { %5794 = vmatprep.subr.bf16.mxu1 %v7911_v35  ;;  %5826 = vmatprep.subr.bf16.mxu0 %v7924_v4 }
 0xe28   :  { %5796 = vmatpush1.bf16.msra.mxu1 %v7922_v3  ;;  %5828 = vmatpush1.bf16.msra.mxu0 %v7933_v55 }
 0xe29   :  { %5798 = vmatprep.subr.bf16.mxu1 %v7947_v26  ;;  %5830 = vmatprep.subr.bf16.mxu0 %v7960_v50 }
 0xe2c   :  { %5800 = vmatpush1.bf16.msra.mxu1 %v7958_v22  ;;  %5832 = vmatpush1.bf16.msra.mxu0 %v7972_v53 }
 0xe2d   :  { %5802 = vmatprep.subr.bf16.mxu1 %v7985_v30  ;;  %5834 = vmatprep.subr.bf16.mxu0 %v7999_v44 }
 0xe30   :  { %5804 = vmatpush1.bf16.msra.mxu1 %v7987_v6  ;;  %5836 = vmatpush1.bf16.msra.mxu0 %v8011_v9 }
 0xe31   :  { %5806 = vmatprep.subr.bf16.mxu1 %v8013_v23  ;;  %5838 = vmatprep.subr.bf16.mxu0 %v8037_v31 }
 0xe34   :  { %5808 = vmatpush1.bf16.msra.mxu1 %v8035_v19  ;;  %5840 = vmatpush1.bf16.msra.mxu0 %v8050_v51 }
 0xe35   :  { %5810 = vmatprep.subr.bf16.mxu1 %v8052_v21  ;;  %5842 = vmatprep.subr.bf16.mxu0 %v8064_v14 }
 0xe38   :  { %5812 = vmatpush1.bf16.msra.mxu1 %v8079_v29  ;;  %5844 = vmatpush1.bf16.msra.mxu0 %v8083_v36 }
 0xe39   :  { %5814 = vmatprep.subr.bf16.mxu1 %v8085_v57  ;;  %5846 = vmatprep.subr.bf16.mxu0 %v8103_v12 }
 0xe3c   :  { %5816 = vmatpush1.bf16.msra.mxu1 %v8108_v1  ;;  %5848 = vmatpush1.bf16.msra.mxu0 %v8114_v11 }
 0xe3d   :  { %5850 = vmatprep.subr.bf16.mxu1 %v7839_v34  ;;  %5882 = vmatprep.subr.bf16.mxu0 %v7852_v60 }
 0xef2   :  { %v3821_v8 = vpop.f32.mrb[26].mxu1  ;;  %v3892_v20 = vpop.f32.mrb[34].mxu0 }
 0xef3   :  { %v5991_v61 = vadd.f32 %v3821_v8, %v8168_v24  ;;  %v3823_v25 = vpop.f32.mrb[27].mxu1  ;;  %v3894_v33 = vpop.f32.mrb[35].mxu0  ;;  %v6007_v42 = vadd.f32 %v3892_v20, %v8183_v2  ;;  %v4277_v8 = vld [vmem:[%s8533_s6 + $0x20] sm:$0xff]  ;;  %v4278_v20 = vld [vmem:[%s8533_s6 + $0x28] sm:$0xff] }
 0xef4   :  { %v5992_v16 = vadd.f32 %v3823_v25, %v8172_v39  ;;  %v6008_v37 = vadd.f32 %v3894_v33, %v8178_v45  ;;  %v4279_v25 = vld [vmem:[%s8533_s6 + $0x30] sm:$0xff]  ;;  %v4280_v33 = vld [vmem:[%s8533_s6 + $0x38] sm:$0xff] }
 0xef5   :  { %v4639_v10 = vmul.f32 -1.442695, %v5991_v61  ;;  %v5920_v61 = vpack.c.bf16 %v4278_v20, %v4277_v8 }
 0xef6   :  { %v4640_v17 = vmul.f32 -1.442695, %v5992_v16  ;;  %v4641_v54 = vmul.f32 -1.442695, %v6008_v37  ;;  %v5923_v16 = vpack.c.bf16 %v4280_v33, %v4279_v25 }
 0xef7   :  { %6288 = vpow2.f32 %v4639_v10  ;;  %v4281_v10 = vld [vmem:[%s8533_s6 + $0x40] sm:$0xff] }
 0xef8   :  { %6290 = vpow2.f32 %v4640_v17  ;;  %v4282_v17 = vld [vmem:[%s8533_s6 + $0x48] sm:$0xff] }
 0xef9   :  { %6292 = vpow2.f32 %v4641_v54  ;;  %v5926_v37 = vpack.c.bf16 %v4282_v17, %v4281_v10  ;;  %v4283_v54 = vld [vmem:[%s8533_s6 + $0x50] sm:$0xff] }
 0xefa   :  { %6294 = vtanh.f32 %v6007_v42  ;;  %v4284_v42 = vld [vmem:[%s8533_s6 + $0x58] sm:$0xff] }
 0xf01   :  { %v6289_v34 = vpop.eup %6288 }
 0xf02   :  { %v6291_v56 = vpop.eup %6290  ;;  %v3904_v60 = vadd.f32 1.0, %v6289_v34  ;;  %v4285_v34 = vld [vmem:[%s8533_s6 + $0x60] sm:$0xff] }
 0xf03   :  { %v3910_v41 = vadd.f32 1.0, %v6291_v56  ;;  %v6293_v0 = vpop.eup %6292  ;;  %v5929_v56 = vpack.c.bf16 %v4284_v42, %v4283_v54 }
 0xf04   :  { %6296 = vrcp.f32 %v3904_v60  ;;  %v6295_v52 = vpop.eup %6294  ;;  %v3917_v32 = vadd.f32 1.0, %v6293_v0  ;;  %v4286_v60 = vld [vmem:[%s8533_s6 + $0x68] sm:$0xff]  ;;  %v4287_v0 = vld [vmem:[%s8533_s6 + $0x70] sm:$0xff] }
 0xf05   :  { %6298 = vrcp.f32 %v3910_v41  ;;  %v5932_v41 = vpack.c.bf16 %v4286_v60, %v4285_v34 }
 0xf06   :  { %6300 = vrcp.f32 %v3917_v32 }
 0xf0e   :  { %v6297_v58 = vpop.eup %6296 }
 0xf0f   :  { %v6299_v38 = vpop.eup %6298  ;;  %v3921_v5 = vmul.f32 %v6297_v58, %v6295_v52  ;;  %v4288_v52 = vld [vmem:[%s8533_s6 + $0x78] sm:$0xff] }
 0xf10   :  { %v3920_v46 = vmul.f32 %v6299_v38, %v8354_v15  ;;  %v6301_v13 = vpop.eup %6300  ;;  %v4275_v15 = vld [vmem:[%s8533_s6 + $0x10] sm:$0xff]  ;;  %v5935_v58 = vpack.c.bf16 %v4288_v52, %v4287_v0  ;;  %v4367_v38 = vld [vmem:[%s8534_s8] sm:$0xff] }
 0xf11   :  { %v5917_v28 = vpack.c.bf16 %v4276_v49, %v4275_v15  ;;  %v4649_v15 = vld [vmem:[%s8536_s9] ss:$0 sm:$0xff] }
 0xf12   :  { %v8396_v7 = vadd.f32 %v3921_v5, %v3920_v46  ;;  %v4369_v5 = vld [vmem:[%s8534_s8 + $0x10] sm:$0xff]  ;;  %v4370_v46 = vld [vmem:[%s8534_s8 + $0x18] sm:$0xff] }
 0xf14   :  { %6302 = vtanh.f32 %v8396_v7 }
 0xf1e   :  { %v6303_v47 = vpop.eup %6302 }
 0xf1f   :  { %v3924_v27 = vmul.f32 %v6303_v47, %v6301_v13  ;;  %v4371_v13 = vld [vmem:[%s8534_s8 + $0x20] sm:$0xff]  ;;  %v4372_v47 = vld [vmem:[%s8534_s8 + $0x28] sm:$0xff] }
 0xf21   :  { %3994 = vmatmul.mubr.f32.vlgmr.msra.gmra.mrb[28].mxu1 %v3924_v27  ;;  %4065 = vmatmul.mubr.f32.vlgmr.msra.gmra.mrb[36].mxu0 %v3924_v27  ;;  %v5944_v27 = vpack.c.bf16 %v4372_v47, %v4371_v13 }
 0xf22   :  { %5852 = vmatpush1.bf16.msra.mxu1 %v7850_v43  ;;  %5884 = vmatpush1.bf16.msra.mxu0 %v7861_v63 }
 0xf23   :  { %5854 = vmatprep.subr.bf16.mxu1 %v7875_v62  ;;  %5886 = vmatprep.subr.bf16.mxu0 %v7888_v59 }
 0xf24   :  { %4167 = vmatprep.mubr.f32.mxu1 %v6336_v48  ;;  %4238 = vmatprep.mubr.f32.mxu0 %v6336_v48 }
 0xf26   :  { %5856 = vmatpush1.bf16.msra.mxu1 %v7886_v40  ;;  %5888 = vmatpush1.bf16.msra.mxu0 %v7897_v18 }
 0xf27   :  { %5858 = vmatprep.subr.bf16.mxu1 %v7911_v35  ;;  %5890 = vmatprep.subr.bf16.mxu0 %v7924_v4 }
 0xf2a   :  { %5860 = vmatpush1.bf16.msra.mxu1 %v7922_v3  ;;  %5892 = vmatpush1.bf16.msra.mxu0 %v7933_v55 }
 0xf2b   :  { %5862 = vmatprep.subr.bf16.mxu1 %v7947_v26  ;;  %5894 = vmatprep.subr.bf16.mxu0 %v7960_v50 }
 0xf2e   :  { %5864 = vmatpush1.bf16.msra.mxu1 %v7958_v22  ;;  %5896 = vmatpush1.bf16.msra.mxu0 %v7972_v53 }
 0xf2f   :  { %5866 = vmatprep.subr.bf16.mxu1 %v7985_v30  ;;  %5898 = vmatprep.subr.bf16.mxu0 %v7999_v44 }
 0xf32   :  { %5868 = vmatpush1.bf16.msra.mxu1 %v7987_v6  ;;  %5900 = vmatpush1.bf16.msra.mxu0 %v8011_v9 }
 0xf33   :  { %5870 = vmatprep.subr.bf16.mxu1 %v8013_v23  ;;  %5902 = vmatprep.subr.bf16.mxu0 %v8037_v31 }
 0xf36   :  { %5872 = vmatpush1.bf16.msra.mxu1 %v8035_v19  ;;  %5904 = vmatpush1.bf16.msra.mxu0 %v8050_v51 }
 0xf37   :  { %5874 = vmatprep.subr.bf16.mxu1 %v8052_v21  ;;  %5906 = vmatprep.subr.bf16.mxu0 %v8064_v14 }
 0xf3a   :  { %5876 = vmatpush1.bf16.msra.mxu1 %v8079_v29  ;;  %5908 = vmatpush1.bf16.msra.mxu0 %v8083_v36 }
 0xf3b   :  { %5878 = vmatprep.subr.bf16.mxu1 %v8085_v57  ;;  %5910 = vmatprep.subr.bf16.mxu0 %v8103_v12  ;;  %v4273_v57 = vld [vmem:[%s8533_s6] sm:$0xff]  ;;  %v4274_v12 = vld [vmem:[%s8533_s6 + $0x8] sm:$0xff] }
 0xf3e   :  { %5880 = vmatpush1.bf16.msra.mxu1 %v8108_v1  ;;  %5912 = vmatpush1.bf16.msra.mxu0 %v8114_v11  ;;  %v5914_v1 = vpack.c.bf16 %v4274_v12, %v4273_v57  ;;  %v6337_v11 = vmov 0.0|0.0  }
 0xf3f   :  { %5913 = vmatprep.subr.bf16.mxu1 %v6337_v11  ;;  %5937 = vmatprep.subr.bf16.mxu0 %v6337_v11 }
 0xff4   :  { %v3995_v43 = vpop.f32.mrb[28].mxu1  ;;  %v4066_v63 = vpop.f32.mrb[36].mxu0 }
 0xff5   :  { %v5993_v62 = vadd.f32 %v3995_v43, %v8168_v24  ;;  %v3997_v40 = vpop.f32.mrb[29].mxu1  ;;  %v4068_v59 = vpop.f32.mrb[37].mxu0  ;;  %v6009_v26 = vadd.f32 %v4066_v63, %v8183_v2 }
 0xff6   :  { %v5994_v18 = vadd.f32 %v3997_v40, %v8172_v39  ;;  %v6010_v4 = vadd.f32 %v4068_v59, %v8178_v45 }
 0xff7   :  { %v4642_v35 = vmul.f32 -1.442695, %v5993_v62 }
 0xff8   :  { %v4643_v3 = vmul.f32 -1.442695, %v5994_v18  ;;  %v4644_v55 = vmul.f32 -1.442695, %v6010_v4 }
 0xff9   :  { %6304 = vpow2.f32 %v4642_v35 }
 0xffa   :  { %6306 = vpow2.f32 %v4643_v3 }
 0xffb   :  { %6308 = vpow2.f32 %v4644_v55 }
 0xffc   :  { %6310 = vtanh.f32 %v6009_v26 }
0x1003   :  { %v6305_v22 = vpop.eup %6304 }
0x1004   :  { %v6307_v50 = vpop.eup %6306  ;;  %v4078_v53 = vadd.f32 1.0, %v6305_v22 }
0x1005   :  { %v4084_v30 = vadd.f32 1.0, %v6307_v50  ;;  %v6309_v6 = vpop.eup %6308 }
0x1006   :  { %6312 = vrcp.f32 %v4078_v53  ;;  %v6311_v44 = vpop.eup %6310  ;;  %v4091_v31 = vadd.f32 1.0, %v6309_v6 }
0x1007   :  { %6314 = vrcp.f32 %v4084_v30 }
0x1008   :  { %6316 = vrcp.f32 %v4091_v31 }
0x1010   :  { %v6313_v9 = vpop.eup %6312 }
0x1011   :  { %v6315_v23 = vpop.eup %6314  ;;  %v4095_v19 = vmul.f32 %v6313_v9, %v6311_v44 }
0x1012   :  { %v4094_v51 = vmul.f32 %v6315_v23, %v8396_v7  ;;  %v6317_v14 = vpop.eup %6316  ;;  %v5941_v7 = vpack.c.bf16 %v4370_v46, %v4369_v5 }
0x1014   :  { %v8436_v21 = vadd.f32 %v4095_v19, %v4094_v51 }
0x1016   :  { %6318 = vtanh.f32 %v8436_v21 }
0x1020   :  { %v6319_v29 = vpop.eup %6318 }
0x1021   :  { %v4098_v36 = vmul.f32 %v6319_v29, %v6317_v14  ;;  %v4373_v14 = vld [vmem:[%s8534_s8 + $0x30] sm:$0xff]  ;;  %v4374_v29 = vld [vmem:[%s8534_s8 + $0x38] sm:$0xff] }
0x1023   :  { %4168 = vmatmul.mubr.f32.vlgmr.msra.gmra.mrb[30].mxu1 %v4098_v36  ;;  %4239 = vmatmul.mubr.f32.vlgmr.msra.gmra.mrb[38].mxu0 %v4098_v36  ;;  %v5947_v36 = vpack.c.bf16 %v4374_v29, %v4373_v14 }
0x1024   :  { %5915 = vmatpush3.bf16.msra.mxu1 %v5914_v1  ;;  %4735 = vmatprep.mubr.msk.f32.mxu1 %vm6338_vm1, %v6336_v48 }
0x1025   :  { %5916 = vmatprep.subr.bf16.mxu1 %v6337_v11  ;;  %4754 = vmatprep.mubr.msk.f32.mxu0 %vm6338_vm1, %v6336_v48  ;;  %v4368_v48 = vld [vmem:[%s8534_s8 + $0x8] sm:$0xff] }
0x1026   :  { %v5938_v32 = vpack.c.bf16 %v4368_v48, %v4367_v38 }
0x1028   :  { %5918 = vmatpush3.bf16.msra.mxu1 %v5917_v28  ;;  %5939 = vmatpush3.bf16.msra.mxu0 %v5938_v32 }
0x1029   :  { %5919 = vmatprep.subr.bf16.mxu1 %v6337_v11  ;;  %5940 = vmatprep.subr.bf16.mxu0 %v6337_v11 }
0x102c   :  { %5921 = vmatpush3.bf16.msra.mxu1 %v5920_v61  ;;  %5942 = vmatpush3.bf16.msra.mxu0 %v5941_v7 }
0x102d   :  { %5922 = vmatprep.subr.bf16.mxu1 %v6337_v11  ;;  %5943 = vmatprep.subr.bf16.mxu0 %v6337_v11 }
0x1030   :  { %5924 = vmatpush3.bf16.msra.mxu1 %v5923_v16  ;;  %5945 = vmatpush3.bf16.msra.mxu0 %v5944_v27 }
0x1031   :  { %5925 = vmatprep.subr.bf16.mxu1 %v6337_v11  ;;  %5946 = vmatprep.subr.bf16.mxu0 %v6337_v11 }
0x1034   :  { %5927 = vmatpush3.bf16.msra.mxu1 %v5926_v37  ;;  %5948 = vmatpush3.bf16.msra.mxu0 %v5947_v36 }
0x1035   :  { %5928 = vmatprep.subr.bf16.mxu1 %v6337_v11 }
0x1038   :  { %5930 = vmatpush3.bf16.msra.mxu1 %v5929_v56 }
0x1039   :  { %5931 = vmatprep.subr.bf16.mxu1 %v6337_v11 }
0x103c   :  { %5933 = vmatpush3.bf16.msra.mxu1 %v5932_v41 }
0x103d   :  { %5934 = vmatprep.subr.bf16.mxu1 %v6337_v11 }
0x1040   :  { %5936 = vmatpush3.bf16.msra.mxu1 %v5935_v58 }
0x10f6   :  { %v4169_v43 = vpop.f32.mrb[30].mxu1  ;;  %v4240_v63 = vpop.f32.mrb[38].mxu0 }
0x10f7   :  { %v5995_v62 = vadd.f32 %v4169_v43, %v8168_v24  ;;  %v4171_v40 = vpop.f32.mrb[31].mxu1  ;;  %v4242_v59 = vpop.f32.mrb[39].mxu0  ;;  %v6011_v26 = vadd.f32 %v4240_v63, %v8183_v2 }
0x10f8   :  { %v5996_v18 = vadd.f32 %v4171_v40, %v8172_v39  ;;  %v6012_v4 = vadd.f32 %v4242_v59, %v8178_v45 }
0x10f9   :  { %v4645_v35 = vmul.f32 -1.442695, %v5995_v62 }
0x10fa   :  { %v4646_v3 = vmul.f32 -1.442695, %v5996_v18  ;;  %v4647_v55 = vmul.f32 -1.442695, %v6012_v4 }
0x10fb   :  { %6320 = vpow2.f32 %v4645_v35 }
0x10fc   :  { %6322 = vpow2.f32 %v4646_v3 }
0x10fd   :  { %6324 = vpow2.f32 %v4647_v55 }
0x10fe   :  { %6326 = vtanh.f32 %v6011_v26 }
0x1105   :  { %v6321_v22 = vpop.eup %6320 }
0x1106   :  { %v6323_v50 = vpop.eup %6322  ;;  %v4252_v53 = vadd.f32 1.0, %v6321_v22 }
0x1107   :  { %v4258_v30 = vadd.f32 1.0, %v6323_v50  ;;  %v6325_v24 = vpop.eup %6324 }
0x1108   :  { %6328 = vrcp.f32 %v4252_v53  ;;  %v6327_v6 = vpop.eup %6326  ;;  %v4265_v23 = vadd.f32 1.0, %v6325_v24 }
0x1109   :  { %6330 = vrcp.f32 %v4258_v30 }
0x110a   :  { %6332 = vrcp.f32 %v4265_v23 }
0x1112   :  { %v6329_v39 = vpop.eup %6328 }
0x1113   :  { %v6331_v44 = vpop.eup %6330  ;;  %v4269_v9 = vmul.f32 %v6329_v39, %v6327_v6 }
0x1114   :  { %v4268_v19 = vmul.f32 %v6331_v44, %v8436_v21  ;;  %v6333_v2 = vpop.eup %6332  ;;  %v4648_v21 = vld [vmem:[%s8535_s7] ss:$0 sm:$0xff] }
0x1116   :  { %v4270_v45 = vadd.f32 %v4269_v9, %v4268_v19 }
0x1118   :  { %6334 = vtanh.f32 %v4270_v45 }
0x1122   :  { %v6335_v31 = vpop.eup %6334 }
0x1123   :  { %v4272_v51 = vmul.f32 %v6335_v31, %v6333_v2 }
0x1125   :  { %4736 = vmatmul.mubr.f32.vlgmr.msra.gmra.mrb[32].mxu1 %v4272_v51 }
0x11f8   :  { %v4362_v57 = vpop.f32.mrb[32].mxu1 }
0x11f9   :  { %v4363_v12 = vadd.f32 %v4648_v21, %v4362_v57  ;;  %v4737_v1 = vpop.f32.mrb[33].mxu1 }
0x11fb   :  { %v4366_v11 = vmax.f32 %v4363_v12, 0.0 }
0x11fd   :  { %4755 = vmatmul.mubr.msk.f32.vlgmr.msra.gmra.mrb[40].mxu0 %vm4382_vm2, %v4366_v11 }
0x12d0   :  { %v4452_v49 = vpop.f32.mrb[40].mxu0 }
0x12d1   :  { %v4453_v28 = vadd.f32 %v4649_v15, %v4452_v49  ;;  %v4756_v8 = vpop.f32.mrb[41].mxu0 }
0x12d3   :  { %4457 = vst.msk [vmem:[%s8537_s10] sm:$0xff] %vm4456_vm3, %v4453_v28 }

</bundles_post_ra>
